<compile_context>
chip_gen: v6e
topology: v6e:2x2x1
jax: 0.10.0
libtpu: 0.0.40
codegen_flags: <defaults>
</compile_context>

<pallas_src>
import functools

import jax
import jax.numpy as jnp
from jax.experimental import pallas as pl
from jax.experimental.pallas import tpu as pltpu


def _round_up(x, m):
    return ((x + m - 1) // m) * m


def _pad_gate_cols(w, h, h_pad):
    """Pad each of the 4 gate blocks along the last axis: (..., 4*h) -> (..., 4*h_pad)."""
    if h_pad == h:
        return w
    lead = w.shape[:-1]
    w4 = w.reshape(lead + (4, h))
    pad = [(0, 0)] * (len(lead) + 1) + [(0, h_pad - h)]
    return jnp.pad(w4, pad).reshape(lead + (4 * h_pad,))


# ---------------------------------------------------------------------------
# Fused kernel: all LSTM layers + online-softmax attention + fc
# ---------------------------------------------------------------------------
def _fused_lstm_attn_fc_kernel(num_layers, t_chunk, b_chunk, h_pad, *args):
    n_in = 1 + 3 * num_layers + 4
    x_ref = args[0]
    layer_refs = [(args[1 + 3 * i], args[2 + 3 * i], args[3 + 3 * i])
                  for i in range(num_layers)]
    wattn_ref, battn_ref, wfc_ref, bfc_ref = args[1 + 3 * num_layers:n_in]
    y_ref = args[n_in]
    h_scr, c_scr, act_scr, m_scr, l_scr, acc_scr = args[n_in + 1:]

    H = h_pad
    t_idx = pl.program_id(1)

    # Reset recurrent state and attention statistics at the start of each
    # batch block's sweep over time.
    @pl.when(t_idx == 0)
    def _init():
        h_scr[...] = jnp.zeros_like(h_scr)
        c_scr[...] = jnp.zeros_like(c_scr)
        m_scr[...] = jnp.full_like(m_scr, -jnp.inf)
        l_scr[...] = jnp.zeros_like(l_scr)
        acc_scr[...] = jnp.zeros_like(acc_scr)

    # (T_CHUNK, B, D) -> (T_CHUNK*B, D); B is a multiple of 8, so this is a
    # pure sublane tile stack (no lane movement).
    act = x_ref[...].reshape(t_chunk * b_chunk, -1)

    for l_idx, (wih_ref, whh_ref, b_ref) in enumerate(layer_refs):
        # Hoisted input projection: one big MXU matmul for the whole chunk,
        # bias folded in (keeps the recurrence body to a single small matmul).
        xproj = jnp.dot(act, wih_ref[...],
                        preferred_element_type=jnp.float32) + b_ref[...]
        whh = whh_ref[...]                                   # (H, 4H) held in vregs
        h = h_scr[l_idx]                                     # (B, H)
        c = c_scr[l_idx]                                     # (B, H)
        # Short recurrence, fully unrolled: only h @ Whh is on the serial path.
        for t in range(t_chunk):
            rows = slice(t * b_chunk, (t + 1) * b_chunk)
            gates = xproj[rows, :] + jnp.dot(
                h, whh, preferred_element_type=jnp.float32)  # (B, 4H)
            # H is a multiple of 128, so every gate slice is lane-tile aligned.
            i_g = jax.nn.sigmoid(gates[:, 0 * H:1 * H])
            f_g = jax.nn.sigmoid(gates[:, 1 * H:2 * H])
            g_g = jnp.tanh(gates[:, 2 * H:3 * H])
            o_g = jax.nn.sigmoid(gates[:, 3 * H:4 * H])
            c = f_g * c + i_g * g_g
            h = o_g * jnp.tanh(c)
            act_scr[rows, :] = h
        h_scr[l_idx] = h
        c_scr[l_idx] = c
        act = act_scr[...]        # (T_CHUNK*B, H): this layer's output chunk

    # ---- online-softmax attention pooling over time (flash-style) ----
    logits = jnp.dot(act, wattn_ref[...],
                     preferred_element_type=jnp.float32) + battn_ref[...]
    logits = logits.reshape(t_chunk, b_chunk, 1)            # (Tc, B, 1)
    act3 = act.reshape(t_chunk, b_chunk, H)                 # (Tc, B, H)

    m_prev = m_scr[...]                                     # (B, 1)
    m_new = jnp.maximum(m_prev, jnp.max(logits, axis=0))    # (B, 1)
    alpha = jnp.exp(m_prev - m_new)                         # (B, 1)
    p = jnp.exp(logits - m_new)                             # (Tc, B, 1)
    l_scr[...] = alpha * l_scr[...] + jnp.sum(p, axis=0)
    acc_scr[...] = alpha * acc_scr[...] + jnp.sum(p * act3, axis=0)
    m_scr[...] = m_new

    # ---- finalize: context = acc / l, then the fc head (lane-dense output) ----
    @pl.when(t_idx == pl.num_programs(1) - 1)
    def _finalize():
        context = acc_scr[...] / l_scr[...]                 # (B, H)
        y_ref[...] = (jnp.dot(context, wfc_ref[...],
                              preferred_element_type=jnp.float32)
                      + bfc_ref[...])


# ---------------------------------------------------------------------------
# Wrapper: padding / layout plumbing + the single pallas_call
# ---------------------------------------------------------------------------
def rnn_lstm_sophisticated_forward(x, params, *, t_chunk=None, b_chunk=8):
    """x: (B, T, input_size) -> (B, num_classes)."""
    B, T, D = x.shape
    layers = params["layers"]
    L = len(layers)
    H = layers[0]["whh"].shape[0]
    C = params["w_fc_t"].shape[1]

    H_pad = _round_up(H, 128)
    C_pad = _round_up(C, 128)
    B_pad = _round_up(B, b_chunk)
    if t_chunk is None:
        # keep per-chunk activations comfortably inside VMEM (v7x budget)
        t_chunk = min(T, max(1, (512 * 1024) // (b_chunk * H_pad * 4)))
        while T % t_chunk:
            t_chunk -= 1
    assert T % t_chunk == 0 and B_pad % b_chunk == 0

    # --- pad parameters so gate slices / lanes are hardware-tile aligned ---
    kernel_layers = []
    for i, layer in enumerate(layers):
        wih, whh, b = layer["wih"], layer["whh"], layer["b"]
        if i > 0:
            wih = jnp.pad(wih, ((0, H_pad - H), (0, 0)))
        wih = _pad_gate_cols(wih, H, H_pad)                          # (D_in, 4*H_pad)
        whh = _pad_gate_cols(jnp.pad(whh, ((0, H_pad - H), (0, 0))), H, H_pad)
        b = _pad_gate_cols(b, H, H_pad)                              # (1, 4*H_pad)
        kernel_layers.append((wih, whh, b))
    w_attn = jnp.pad(params["w_attn"], ((0, 0), (0, H_pad - H))).T   # (H_pad, 1)
    b_attn = params["b_attn"]                                        # (1, 1)
    w_fc = jnp.pad(params["w_fc_t"], ((0, H_pad - H), (0, C_pad - C)))
    b_fc = jnp.pad(params["b_fc"], ((0, 0), (0, C_pad - C)))

    x_pad = jnp.pad(x.astype(jnp.float32), ((0, B_pad - B), (0, 0), (0, 0)))
    x_tbd = jnp.transpose(x_pad, (1, 0, 2))                          # (T, B_pad, D)

    grid = (B_pad // b_chunk, T // t_chunk)

    in_specs = [pl.BlockSpec((t_chunk, b_chunk, D), lambda b, t: (t, b, 0))]
    inputs = [x_tbd]
    for wih, whh, bias in kernel_layers:
        in_specs += [pl.BlockSpec(wih.shape, lambda b, t: (0, 0)),
                     pl.BlockSpec(whh.shape, lambda b, t: (0, 0)),
                     pl.BlockSpec(bias.shape, lambda b, t: (0, 0))]
        inputs += [wih, whh, bias]
    for w in (w_attn, b_attn, w_fc, b_fc):
        in_specs.append(pl.BlockSpec(w.shape, lambda b, t: (0, 0)))
        inputs.append(w)

    kernel = functools.partial(_fused_lstm_attn_fc_kernel, L, t_chunk, b_chunk, H_pad)

    y_pad = pl.pallas_call(
        kernel,
        out_shape=jax.ShapeDtypeStruct((B_pad, C_pad), jnp.float32),
        grid_spec=pltpu.PrefetchScalarGridSpec(
            num_scalar_prefetch=0,
            grid=grid,
            in_specs=in_specs,
            out_specs=pl.BlockSpec((b_chunk, C_pad), lambda b, t: (b, 0)),
            scratch_shapes=[
                pltpu.VMEM((L, b_chunk, H_pad), jnp.float32),          # h state / layer
                pltpu.VMEM((L, b_chunk, H_pad), jnp.float32),          # c state / layer
                pltpu.VMEM((t_chunk * b_chunk, H_pad), jnp.float32),   # layer activations
                pltpu.VMEM((b_chunk, 1), jnp.float32),                 # attn running max
                pltpu.VMEM((b_chunk, 1), jnp.float32),                 # attn running denom
                pltpu.VMEM((b_chunk, H_pad), jnp.float32),             # attn context acc
            ]),
        compiler_params=pltpu.CompilerParams(
            dimension_semantics=("parallel", "arbitrary")),
    )(*inputs)
    return y_pad[:B, :C]


# ---------------------------------------------------------------------------
# Parameter init matching the PyTorch module (gate order i,f,g,o; b_ih + b_hh)
# ---------------------------------------------------------------------------
def init_params(key, input_size, hidden_size, num_layers, num_classes):
    total_layers = num_layers + 2                         # matches the PyTorch module
    k = 1.0 / jnp.sqrt(hidden_size)
    layers = []
    for l in range(total_layers):
        d_in = input_size if l == 0 else hidden_size
        key, k1, k2, k3, k4 = jax.random.split(key, 5)
        w_ih = jax.random.uniform(k1, (4 * hidden_size, d_in), jnp.float32, -k, k)
        w_hh = jax.random.uniform(k2, (4 * hidden_size, hidden_size), jnp.float32, -k, k)
        b_ih = jax.random.uniform(k3, (4 * hidden_size,), jnp.float32, -k, k)
        b_hh = jax.random.uniform(k4, (4 * hidden_size,), jnp.float32, -k, k)
        layers.append({
            "wih": w_ih.T,                                # (D_in, 4H)
            "whh": w_hh.T,                                # (H, 4H)
            "b": (b_ih + b_hh)[None, :],                  # (1, 4H)
        })
    key, k5, k6, k7, k8 = jax.random.split(key, 5)
    ka = 1.0 / jnp.sqrt(hidden_size)
    w_attn = jax.random.uniform(k5, (1, hidden_size), jnp.float32, -ka, ka)
    b_attn = jax.random.uniform(k6, (1, 1), jnp.float32, -ka, ka)
    w_fc = jax.random.uniform(k7, (num_classes, hidden_size), jnp.float32, -ka, ka)
    b_fc = jax.random.uniform(k8, (1, num_classes), jnp.float32, -ka, ka)
    return {"layers": layers, "w_attn": w_attn, "b_attn": b_attn,
            "w_fc_t": w_fc.T, "b_fc": b_fc}


# ---------------------------------------------------------------------------
# Pure-JAX reference (same math, no Pallas) for a correctness check
# ---------------------------------------------------------------------------
def ref_forward(x, params):
    B, T, _ = x.shape
    h_seq = x.astype(jnp.float32)
    for layer in params["layers"]:
        H = layer["whh"].shape[0]
        h = jnp.zeros((B, H), jnp.float32)
        c = jnp.zeros((B, H), jnp.float32)
        outs = []
        for t in range(T):
            gates = h_seq[:, t, :] @ layer["wih"] + h @ layer["whh"] + layer["b"]
            i_g = jax.nn.sigmoid(gates[:, :H])
            f_g = jax.nn.sigmoid(gates[:, H:2 * H])
            g_g = jnp.tanh(gates[:, 2 * H:3 * H])
            o_g = jax.nn.sigmoid(gates[:, 3 * H:])
            c = f_g * c + i_g * g_g
            h = o_g * jnp.tanh(c)
            outs.append(h)
        h_seq = jnp.stack(outs, axis=1)
    logits = jnp.sum(h_seq * params["w_attn"][0][None, None, :], axis=-1) + params["b_attn"][0, 0]
    w = jax.nn.softmax(logits, axis=1)
    context = jnp.einsum("bt,bth->bh", w, h_seq)
    return context @ params["w_fc_t"] + params["b_fc"][0]


if __name__ == "__main__":
    # batch=2, seq=8, input_size=16, hidden_size=32, num_layers=1 (-> 3 LSTM layers), classes=4
    B, T, INPUT, HIDDEN, NUM_LAYERS, CLASSES = 2, 8, 16, 32, 1, 4

    x = jax.random.normal(jax.random.PRNGKey(0), (B, T, INPUT), dtype=jnp.float32)
    params = init_params(jax.random.PRNGKey(1), INPUT, HIDDEN, NUM_LAYERS, CLASSES)

    # t_chunk=4 -> two time chunks, exercising the cross-chunk recurrent state
    # and the online-softmax attention accumulation.
    y = rnn_lstm_sophisticated_forward(x, params, t_chunk=4)
    y = jax.block_until_ready(y)

    y_ref = ref_forward(x, params)
    assert y.shape == (B, CLASSES)
    assert jnp.allclose(y, y_ref, atol=1e-5, rtol=1e-5), (y, y_ref)

    # TODO(synk): sample_action() uses host-side python RNG / argmax control flow; not a kernel op.
    print("KERNEL_OK")
</pallas_src>

<mosaic_0001>
module attributes {stable_mosaic.version = 11 : i64} {
  func.func @_fused_lstm_attn_fc_kernel(%arg0: i32, %arg1: i32, %arg2: memref<4x8x16xf32, #tpu.memory_space<vmem>>, %arg3: memref<16x512xf32, #tpu.memory_space<vmem>>, %arg4: memref<128x512xf32, #tpu.memory_space<vmem>>, %arg5: memref<1x512xf32, #tpu.memory_space<vmem>>, %arg6: memref<128x512xf32, #tpu.memory_space<vmem>>, %arg7: memref<128x512xf32, #tpu.memory_space<vmem>>, %arg8: memref<1x512xf32, #tpu.memory_space<vmem>>, %arg9: memref<128x512xf32, #tpu.memory_space<vmem>>, %arg10: memref<128x512xf32, #tpu.memory_space<vmem>>, %arg11: memref<1x512xf32, #tpu.memory_space<vmem>>, %arg12: memref<128x1xf32, #tpu.memory_space<vmem>>, %arg13: memref<1x1xf32, #tpu.memory_space<vmem>>, %arg14: memref<128x128xf32, #tpu.memory_space<vmem>>, %arg15: memref<1x128xf32, #tpu.memory_space<vmem>>, %arg16: memref<8x128xf32, #tpu.memory_space<vmem>>, %arg17: memref<3x8x128xf32, #tpu.memory_space<vmem>>, %arg18: memref<3x8x128xf32, #tpu.memory_space<vmem>>, %arg19: memref<32x128xf32, #tpu.memory_space<vmem>>, %arg20: memref<8x1xf32, #tpu.memory_space<vmem>>, %arg21: memref<8x1xf32, #tpu.memory_space<vmem>>, %arg22: memref<8x128xf32, #tpu.memory_space<vmem>>) attributes {dimension_semantics = [#tpu.dimension_semantics<parallel>, #tpu.dimension_semantics<arbitrary>], iteration_bounds = array<i64: 1, 2>, scalar_prefetch = 0 : i64, scratch_operands = 6 : i64, tpu.core_type = #tpu.core_type<tc>, window_params = [{transform_indices = @transform_0, window_bounds = array<i64: 4, 8, 16>}, {pipeline_mode = #tpu.pipeline_mode<synchronous>, transform_indices = @transform_1, window_bounds = array<i64: 16, 512>}, {pipeline_mode = #tpu.pipeline_mode<synchronous>, transform_indices = @transform_2, window_bounds = array<i64: 128, 512>}, {pipeline_mode = #tpu.pipeline_mode<synchronous>, transform_indices = @transform_3, window_bounds = array<i64: 1, 512>}, {pipeline_mode = #tpu.pipeline_mode<synchronous>, transform_indices = @transform_4, window_bounds = array<i64: 128, 512>}, {pipeline_mode = #tpu.pipeline_mode<synchronous>, transform_indices = @transform_5, window_bounds = array<i64: 128, 512>}, {pipeline_mode = #tpu.pipeline_mode<synchronous>, transform_indices = @transform_6, window_bounds = array<i64: 1, 512>}, {pipeline_mode = #tpu.pipeline_mode<synchronous>, transform_indices = @transform_7, window_bounds = array<i64: 128, 512>}, {pipeline_mode = #tpu.pipeline_mode<synchronous>, transform_indices = @transform_8, window_bounds = array<i64: 128, 512>}, {pipeline_mode = #tpu.pipeline_mode<synchronous>, transform_indices = @transform_9, window_bounds = array<i64: 1, 512>}, {pipeline_mode = #tpu.pipeline_mode<synchronous>, transform_indices = @transform_10, window_bounds = array<i64: 128, 1>}, {pipeline_mode = #tpu.pipeline_mode<synchronous>, transform_indices = @transform_11, window_bounds = array<i64: 1, 1>}, {pipeline_mode = #tpu.pipeline_mode<synchronous>, transform_indices = @transform_12, window_bounds = array<i64: 128, 128>}, {pipeline_mode = #tpu.pipeline_mode<synchronous>, transform_indices = @transform_13, window_bounds = array<i64: 1, 128>}, {transform_indices = @transform_14, window_bounds = array<i64: 8, 128>}]} {
    %c0_i32 = arith.constant 0 : i32
    %0 = arith.cmpi eq, %arg1, %c0_i32 : i32
    %1 = arith.extui %0 : i1 to i32
    %c0_i32_0 = arith.constant 0 : i32
    %2 = arith.cmpi ne, %1, %c0_i32_0 : i32
    scf.if %2 {
      %cst_153 = arith.constant 0.000000e+00 : f32
      %437 = vector.broadcast %cst_153 : f32 to vector<3x8x128xf32>
      %c0_154 = arith.constant 0 : index
      %c0_155 = arith.constant 0 : index
      %c0_156 = arith.constant 0 : index
      %438 = vector.load %arg17[%c0_154, %c0_155, %c0_156] : memref<3x8x128xf32, #tpu.memory_space<vmem>>, vector<3x8x128xf32>
      tpu.vector_store %arg17[%c0_154, %c0_155, %c0_156], %437 {strides = array<i32>} : memref<3x8x128xf32, #tpu.memory_space<vmem>>, vector<3x8x128xf32>,
      %cst_157 = arith.constant 0.000000e+00 : f32
      %439 = vector.broadcast %cst_157 : f32 to vector<3x8x128xf32>
      %c0_158 = arith.constant 0 : index
      %c0_159 = arith.constant 0 : index
      %c0_160 = arith.constant 0 : index
      %440 = vector.load %arg18[%c0_158, %c0_159, %c0_160] : memref<3x8x128xf32, #tpu.memory_space<vmem>>, vector<3x8x128xf32>
      tpu.vector_store %arg18[%c0_158, %c0_159, %c0_160], %439 {strides = array<i32>} : memref<3x8x128xf32, #tpu.memory_space<vmem>>, vector<3x8x128xf32>,
      %cst_161 = arith.constant 0xFF800000 : f32
      %441 = vector.broadcast %cst_161 : f32 to vector<8x1xf32>
      %c0_162 = arith.constant 0 : index
      %c0_163 = arith.constant 0 : index
      %442 = vector.load %arg20[%c0_162, %c0_163] : memref<8x1xf32, #tpu.memory_space<vmem>>, vector<8x1xf32>
      tpu.vector_store %arg20[%c0_162, %c0_163], %441 {strides = array<i32>} : memref<8x1xf32, #tpu.memory_space<vmem>>, vector<8x1xf32>,
      %cst_164 = arith.constant 0.000000e+00 : f32
      %443 = vector.broadcast %cst_164 : f32 to vector<8x1xf32>
      %c0_165 = arith.constant 0 : index
      %c0_166 = arith.constant 0 : index
      %444 = vector.load %arg21[%c0_165, %c0_166] : memref<8x1xf32, #tpu.memory_space<vmem>>, vector<8x1xf32>
      tpu.vector_store %arg21[%c0_165, %c0_166], %443 {strides = array<i32>} : memref<8x1xf32, #tpu.memory_space<vmem>>, vector<8x1xf32>,
      %cst_167 = arith.constant 0.000000e+00 : f32
      %445 = vector.broadcast %cst_167 : f32 to vector<8x128xf32>
      %c0_168 = arith.constant 0 : index
      %c0_169 = arith.constant 0 : index
      %446 = vector.load %arg22[%c0_168, %c0_169] : memref<8x128xf32, #tpu.memory_space<vmem>>, vector<8x128xf32>
      tpu.vector_store %arg22[%c0_168, %c0_169], %445 {strides = array<i32>} : memref<8x128xf32, #tpu.memory_space<vmem>>, vector<8x128xf32>,
    } else {
    }
    %c0 = arith.constant 0 : index
    %c0_1 = arith.constant 0 : index
    %c0_2 = arith.constant 0 : index
    %3 = vector.load %arg2[%c0, %c0_1, %c0_2] : memref<4x8x16xf32, #tpu.memory_space<vmem>>, vector<4x8x16xf32>
    %4 = vector.shape_cast %3 : vector<4x8x16xf32> to vector<32x16xf32>
    %c0_3 = arith.constant 0 : index
    %c0_4 = arith.constant 0 : index
    %5 = vector.load %arg3[%c0_3, %c0_4] : memref<16x512xf32, #tpu.memory_space<vmem>>, vector<16x512xf32>
    %cst = arith.constant dense<0.000000e+00> : vector<32x512xf32>
    %6 = tpu.matmul %4, %5, %cst {dimension_numbers = #tpu.dot_dimension_numbers<[1], [0], [0], [1], [0, 0, 1, 1], [], []>} : vector<32x16xf32>, vector<16x512xf32>, vector<32x512xf32> -> vector<32x512xf32>
    %c0_5 = arith.constant 0 : index
    %c0_6 = arith.constant 0 : index
    %7 = vector.load %arg5[%c0_5, %c0_6] : memref<1x512xf32, #tpu.memory_space<vmem>>, vector<1x512xf32>
    %8 = vector.broadcast %7 : vector<1x512xf32> to vector<32x512xf32>
    %9 = arith.addf %6, %8 : vector<32x512xf32>
    %c0_7 = arith.constant 0 : index
    %c0_8 = arith.constant 0 : index
    %10 = vector.load %arg4[%c0_7, %c0_8] : memref<128x512xf32, #tpu.memory_space<vmem>>, vector<128x512xf32>
    %c0_9 = arith.constant 0 : index
    %c0_10 = arith.constant 0 : index
    %c0_11 = arith.constant 0 : index
    %11 = vector.load %arg17[%c0_9, %c0_10, %c0_11] : memref<3x8x128xf32, #tpu.memory_space<vmem>>, vector<1x8x128xf32>
    %12 = vector.shape_cast %11 : vector<1x8x128xf32> to vector<8x128xf32>
    %c0_12 = arith.constant 0 : index
    %c0_13 = arith.constant 0 : index
    %c0_14 = arith.constant 0 : index
    %13 = vector.load %arg18[%c0_12, %c0_13, %c0_14] : memref<3x8x128xf32, #tpu.memory_space<vmem>>, vector<1x8x128xf32>
    %14 = vector.shape_cast %13 : vector<1x8x128xf32> to vector<8x128xf32>
    %15 = vector.extract_strided_slice %9 {offsets = [0, 0], sizes = [8, 512], strides = [1, 1]} : vector<32x512xf32> to vector<8x512xf32>
    %cst_15 = arith.constant dense<0.000000e+00> : vector<8x512xf32>
    %16 = tpu.matmul %12, %10, %cst_15 {dimension_numbers = #tpu.dot_dimension_numbers<[1], [0], [0], [1], [0, 0, 1, 1], [], []>} : vector<8x128xf32>, vector<128x512xf32>, vector<8x512xf32> -> vector<8x512xf32>
    %17 = arith.addf %15, %16 : vector<8x512xf32>
    %18 = vector.extract_strided_slice %17 {offsets = [0, 0], sizes = [8, 128], strides = [1, 1]} : vector<8x512xf32> to vector<8x128xf32>
    %19 = arith.negf %18 : vector<8x128xf32>
    %20 = math.exp %19 : vector<8x128xf32>
    %cst_16 = arith.constant 1.000000e+00 : f32
    %21 = vector.broadcast %cst_16 : f32 to vector<8x128xf32>
    %22 = arith.addf %21, %20 : vector<8x128xf32>
    %23 = arith.divf %21, %22 : vector<8x128xf32>
    %24 = vector.extract_strided_slice %17 {offsets = [0, 128], sizes = [8, 128], strides = [1, 1]} : vector<8x512xf32> to vector<8x128xf32>
    %25 = arith.negf %24 : vector<8x128xf32>
    %26 = math.exp %25 : vector<8x128xf32>
    %cst_17 = arith.constant 1.000000e+00 : f32
    %27 = vector.broadcast %cst_17 : f32 to vector<8x128xf32>
    %28 = arith.addf %27, %26 : vector<8x128xf32>
    %29 = arith.divf %27, %28 : vector<8x128xf32>
    %30 = vector.extract_strided_slice %17 {offsets = [0, 256], sizes = [8, 128], strides = [1, 1]} : vector<8x512xf32> to vector<8x128xf32>
    %31 = math.tanh %30 : vector<8x128xf32>
    %32 = vector.extract_strided_slice %17 {offsets = [0, 384], sizes = [8, 128], strides = [1, 1]} : vector<8x512xf32> to vector<8x128xf32>
    %33 = arith.negf %32 : vector<8x128xf32>
    %34 = math.exp %33 : vector<8x128xf32>
    %cst_18 = arith.constant 1.000000e+00 : f32
    %35 = vector.broadcast %cst_18 : f32 to vector<8x128xf32>
    %36 = arith.addf %35, %34 : vector<8x128xf32>
    %37 = arith.divf %35, %36 : vector<8x128xf32>
    %38 = arith.mulf %29, %14 : vector<8x128xf32>
    %39 = arith.mulf %23, %31 : vector<8x128xf32>
    %40 = arith.addf %38, %39 : vector<8x128xf32>
    %41 = math.tanh %40 : vector<8x128xf32>
    %42 = arith.mulf %37, %41 : vector<8x128xf32>
    %c0_19 = arith.constant 0 : index
    %c0_20 = arith.constant 0 : index
    %43 = vector.load %arg19[%c0_19, %c0_20] : memref<32x128xf32, #tpu.memory_space<vmem>>, vector<8x128xf32>
    tpu.vector_store %arg19[%c0_19, %c0_20], %42 {strides = array<i32>} : memref<32x128xf32, #tpu.memory_space<vmem>>, vector<8x128xf32>,
    %44 = vector.extract_strided_slice %9 {offsets = [8, 0], sizes = [8, 512], strides = [1, 1]} : vector<32x512xf32> to vector<8x512xf32>
    %cst_21 = arith.constant dense<0.000000e+00> : vector<8x512xf32>
    %45 = tpu.matmul %42, %10, %cst_21 {dimension_numbers = #tpu.dot_dimension_numbers<[1], [0], [0], [1], [0, 0, 1, 1], [], []>} : vector<8x128xf32>, vector<128x512xf32>, vector<8x512xf32> -> vector<8x512xf32>
    %46 = arith.addf %44, %45 : vector<8x512xf32>
    %47 = vector.extract_strided_slice %46 {offsets = [0, 0], sizes = [8, 128], strides = [1, 1]} : vector<8x512xf32> to vector<8x128xf32>
    %48 = arith.negf %47 : vector<8x128xf32>
    %49 = math.exp %48 : vector<8x128xf32>
    %cst_22 = arith.constant 1.000000e+00 : f32
    %50 = vector.broadcast %cst_22 : f32 to vector<8x128xf32>
    %51 = arith.addf %50, %49 : vector<8x128xf32>
    %52 = arith.divf %50, %51 : vector<8x128xf32>
    %53 = vector.extract_strided_slice %46 {offsets = [0, 128], sizes = [8, 128], strides = [1, 1]} : vector<8x512xf32> to vector<8x128xf32>
    %54 = arith.negf %53 : vector<8x128xf32>
    %55 = math.exp %54 : vector<8x128xf32>
    %cst_23 = arith.constant 1.000000e+00 : f32
    %56 = vector.broadcast %cst_23 : f32 to vector<8x128xf32>
    %57 = arith.addf %56, %55 : vector<8x128xf32>
    %58 = arith.divf %56, %57 : vector<8x128xf32>
    %59 = vector.extract_strided_slice %46 {offsets = [0, 256], sizes = [8, 128], strides = [1, 1]} : vector<8x512xf32> to vector<8x128xf32>
    %60 = math.tanh %59 : vector<8x128xf32>
    %61 = vector.extract_strided_slice %46 {offsets = [0, 384], sizes = [8, 128], strides = [1, 1]} : vector<8x512xf32> to vector<8x128xf32>
    %62 = arith.negf %61 : vector<8x128xf32>
    %63 = math.exp %62 : vector<8x128xf32>
    %cst_24 = arith.constant 1.000000e+00 : f32
    %64 = vector.broadcast %cst_24 : f32 to vector<8x128xf32>
    %65 = arith.addf %64, %63 : vector<8x128xf32>
    %66 = arith.divf %64, %65 : vector<8x128xf32>
    %67 = arith.mulf %58, %40 : vector<8x128xf32>
    %68 = arith.mulf %52, %60 : vector<8x128xf32>
    %69 = arith.addf %67, %68 : vector<8x128xf32>
    %70 = math.tanh %69 : vector<8x128xf32>
    %71 = arith.mulf %66, %70 : vector<8x128xf32>
    %c8 = arith.constant 8 : index
    %c0_25 = arith.constant 0 : index
    %72 = vector.load %arg19[%c8, %c0_25] : memref<32x128xf32, #tpu.memory_space<vmem>>, vector<8x128xf32>
    tpu.vector_store %arg19[%c8, %c0_25], %71 {strides = array<i32>} : memref<32x128xf32, #tpu.memory_space<vmem>>, vector<8x128xf32>,
    %73 = vector.extract_strided_slice %9 {offsets = [16, 0], sizes = [8, 512], strides = [1, 1]} : vector<32x512xf32> to vector<8x512xf32>
    %cst_26 = arith.constant dense<0.000000e+00> : vector<8x512xf32>
    %74 = tpu.matmul %71, %10, %cst_26 {dimension_numbers = #tpu.dot_dimension_numbers<[1], [0], [0], [1], [0, 0, 1, 1], [], []>} : vector<8x128xf32>, vector<128x512xf32>, vector<8x512xf32> -> vector<8x512xf32>
    %75 = arith.addf %73, %74 : vector<8x512xf32>
    %76 = vector.extract_strided_slice %75 {offsets = [0, 0], sizes = [8, 128], strides = [1, 1]} : vector<8x512xf32> to vector<8x128xf32>
    %77 = arith.negf %76 : vector<8x128xf32>
    %78 = math.exp %77 : vector<8x128xf32>
    %cst_27 = arith.constant 1.000000e+00 : f32
    %79 = vector.broadcast %cst_27 : f32 to vector<8x128xf32>
    %80 = arith.addf %79, %78 : vector<8x128xf32>
    %81 = arith.divf %79, %80 : vector<8x128xf32>
    %82 = vector.extract_strided_slice %75 {offsets = [0, 128], sizes = [8, 128], strides = [1, 1]} : vector<8x512xf32> to vector<8x128xf32>
    %83 = arith.negf %82 : vector<8x128xf32>
    %84 = math.exp %83 : vector<8x128xf32>
    %cst_28 = arith.constant 1.000000e+00 : f32
    %85 = vector.broadcast %cst_28 : f32 to vector<8x128xf32>
    %86 = arith.addf %85, %84 : vector<8x128xf32>
    %87 = arith.divf %85, %86 : vector<8x128xf32>
    %88 = vector.extract_strided_slice %75 {offsets = [0, 256], sizes = [8, 128], strides = [1, 1]} : vector<8x512xf32> to vector<8x128xf32>
    %89 = math.tanh %88 : vector<8x128xf32>
    %90 = vector.extract_strided_slice %75 {offsets = [0, 384], sizes = [8, 128], strides = [1, 1]} : vector<8x512xf32> to vector<8x128xf32>
    %91 = arith.negf %90 : vector<8x128xf32>
    %92 = math.exp %91 : vector<8x128xf32>
    %cst_29 = arith.constant 1.000000e+00 : f32
    %93 = vector.broadcast %cst_29 : f32 to vector<8x128xf32>
    %94 = arith.addf %93, %92 : vector<8x128xf32>
    %95 = arith.divf %93, %94 : vector<8x128xf32>
    %96 = arith.mulf %87, %69 : vector<8x128xf32>
    %97 = arith.mulf %81, %89 : vector<8x128xf32>
    %98 = arith.addf %96, %97 : vector<8x128xf32>
    %99 = math.tanh %98 : vector<8x128xf32>
    %100 = arith.mulf %95, %99 : vector<8x128xf32>
    %c16 = arith.constant 16 : index
    %c0_30 = arith.constant 0 : index
    %101 = vector.load %arg19[%c16, %c0_30] : memref<32x128xf32, #tpu.memory_space<vmem>>, vector<8x128xf32>
    tpu.vector_store %arg19[%c16, %c0_30], %100 {strides = array<i32>} : memref<32x128xf32, #tpu.memory_space<vmem>>, vector<8x128xf32>,
    %102 = vector.extract_strided_slice %9 {offsets = [24, 0], sizes = [8, 512], strides = [1, 1]} : vector<32x512xf32> to vector<8x512xf32>
    %cst_31 = arith.constant dense<0.000000e+00> : vector<8x512xf32>
    %103 = tpu.matmul %100, %10, %cst_31 {dimension_numbers = #tpu.dot_dimension_numbers<[1], [0], [0], [1], [0, 0, 1, 1], [], []>} : vector<8x128xf32>, vector<128x512xf32>, vector<8x512xf32> -> vector<8x512xf32>
    %104 = arith.addf %102, %103 : vector<8x512xf32>
    %105 = vector.extract_strided_slice %104 {offsets = [0, 0], sizes = [8, 128], strides = [1, 1]} : vector<8x512xf32> to vector<8x128xf32>
    %106 = arith.negf %105 : vector<8x128xf32>
    %107 = math.exp %106 : vector<8x128xf32>
    %cst_32 = arith.constant 1.000000e+00 : f32
    %108 = vector.broadcast %cst_32 : f32 to vector<8x128xf32>
    %109 = arith.addf %108, %107 : vector<8x128xf32>
    %110 = arith.divf %108, %109 : vector<8x128xf32>
    %111 = vector.extract_strided_slice %104 {offsets = [0, 128], sizes = [8, 128], strides = [1, 1]} : vector<8x512xf32> to vector<8x128xf32>
    %112 = arith.negf %111 : vector<8x128xf32>
    %113 = math.exp %112 : vector<8x128xf32>
    %cst_33 = arith.constant 1.000000e+00 : f32
    %114 = vector.broadcast %cst_33 : f32 to vector<8x128xf32>
    %115 = arith.addf %114, %113 : vector<8x128xf32>
    %116 = arith.divf %114, %115 : vector<8x128xf32>
    %117 = vector.extract_strided_slice %104 {offsets = [0, 256], sizes = [8, 128], strides = [1, 1]} : vector<8x512xf32> to vector<8x128xf32>
    %118 = math.tanh %117 : vector<8x128xf32>
    %119 = vector.extract_strided_slice %104 {offsets = [0, 384], sizes = [8, 128], strides = [1, 1]} : vector<8x512xf32> to vector<8x128xf32>
    %120 = arith.negf %119 : vector<8x128xf32>
    %121 = math.exp %120 : vector<8x128xf32>
    %cst_34 = arith.constant 1.000000e+00 : f32
    %122 = vector.broadcast %cst_34 : f32 to vector<8x128xf32>
    %123 = arith.addf %122, %121 : vector<8x128xf32>
    %124 = arith.divf %122, %123 : vector<8x128xf32>
    %125 = arith.mulf %116, %98 : vector<8x128xf32>
    %126 = arith.mulf %110, %118 : vector<8x128xf32>
    %127 = arith.addf %125, %126 : vector<8x128xf32>
    %128 = math.tanh %127 : vector<8x128xf32>
    %129 = arith.mulf %124, %128 : vector<8x128xf32>
    %c24 = arith.constant 24 : index
    %c0_35 = arith.constant 0 : index
    %130 = vector.load %arg19[%c24, %c0_35] : memref<32x128xf32, #tpu.memory_space<vmem>>, vector<8x128xf32>
    tpu.vector_store %arg19[%c24, %c0_35], %129 {strides = array<i32>} : memref<32x128xf32, #tpu.memory_space<vmem>>, vector<8x128xf32>,
    %c0_36 = arith.constant 0 : index
    %c0_37 = arith.constant 0 : index
    %c0_38 = arith.constant 0 : index
    %131 = vector.load %arg17[%c0_36, %c0_37, %c0_38] : memref<3x8x128xf32, #tpu.memory_space<vmem>>, vector<1x8x128xf32>
    %132 = vector.shape_cast %131 : vector<1x8x128xf32> to vector<8x128xf32>
    %133 = vector.shape_cast %129 : vector<8x128xf32> to vector<1x8x128xf32>
    tpu.vector_store %arg17[%c0_36, %c0_37, %c0_38], %133 {strides = array<i32>} : memref<3x8x128xf32, #tpu.memory_space<vmem>>, vector<1x8x128xf32>,
    %c0_39 = arith.constant 0 : index
    %c0_40 = arith.constant 0 : index
    %c0_41 = arith.constant 0 : index
    %134 = vector.load %arg18[%c0_39, %c0_40, %c0_41] : memref<3x8x128xf32, #tpu.memory_space<vmem>>, vector<1x8x128xf32>
    %135 = vector.shape_cast %134 : vector<1x8x128xf32> to vector<8x128xf32>
    %136 = vector.shape_cast %127 : vector<8x128xf32> to vector<1x8x128xf32>
    tpu.vector_store %arg18[%c0_39, %c0_40, %c0_41], %136 {strides = array<i32>} : memref<3x8x128xf32, #tpu.memory_space<vmem>>, vector<1x8x128xf32>,
    %c0_42 = arith.constant 0 : index
    %c0_43 = arith.constant 0 : index
    %137 = vector.load %arg19[%c0_42, %c0_43] : memref<32x128xf32, #tpu.memory_space<vmem>>, vector<32x128xf32>
    %c0_44 = arith.constant 0 : index
    %c0_45 = arith.constant 0 : index
    %138 = vector.load %arg6[%c0_44, %c0_45] : memref<128x512xf32, #tpu.memory_space<vmem>>, vector<128x512xf32>
    %cst_46 = arith.constant dense<0.000000e+00> : vector<32x512xf32>
    %139 = tpu.matmul %137, %138, %cst_46 {dimension_numbers = #tpu.dot_dimension_numbers<[1], [0], [0], [1], [0, 0, 1, 1], [], []>} : vector<32x128xf32>, vector<128x512xf32>, vector<32x512xf32> -> vector<32x512xf32>
    %c0_47 = arith.constant 0 : index
    %c0_48 = arith.constant 0 : index
    %140 = vector.load %arg8[%c0_47, %c0_48] : memref<1x512xf32, #tpu.memory_space<vmem>>, vector<1x512xf32>
    %141 = vector.broadcast %140 : vector<1x512xf32> to vector<32x512xf32>
    %142 = arith.addf %139, %141 : vector<32x512xf32>
    %c0_49 = arith.constant 0 : index
    %c0_50 = arith.constant 0 : index
    %143 = vector.load %arg7[%c0_49, %c0_50] : memref<128x512xf32, #tpu.memory_space<vmem>>, vector<128x512xf32>
    %c1 = arith.constant 1 : index
    %c0_51 = arith.constant 0 : index
    %c0_52 = arith.constant 0 : index
    %144 = vector.load %arg17[%c1, %c0_51, %c0_52] : memref<3x8x128xf32, #tpu.memory_space<vmem>>, vector<1x8x128xf32>
    %145 = vector.shape_cast %144 : vector<1x8x128xf32> to vector<8x128xf32>
    %c1_53 = arith.constant 1 : index
    %c0_54 = arith.constant 0 : index
    %c0_55 = arith.constant 0 : index
    %146 = vector.load %arg18[%c1_53, %c0_54, %c0_55] : memref<3x8x128xf32, #tpu.memory_space<vmem>>, vector<1x8x128xf32>
    %147 = vector.shape_cast %146 : vector<1x8x128xf32> to vector<8x128xf32>
    %148 = vector.extract_strided_slice %142 {offsets = [0, 0], sizes = [8, 512], strides = [1, 1]} : vector<32x512xf32> to vector<8x512xf32>
    %cst_56 = arith.constant dense<0.000000e+00> : vector<8x512xf32>
    %149 = tpu.matmul %145, %143, %cst_56 {dimension_numbers = #tpu.dot_dimension_numbers<[1], [0], [0], [1], [0, 0, 1, 1], [], []>} : vector<8x128xf32>, vector<128x512xf32>, vector<8x512xf32> -> vector<8x512xf32>
    %150 = arith.addf %148, %149 : vector<8x512xf32>
    %151 = vector.extract_strided_slice %150 {offsets = [0, 0], sizes = [8, 128], strides = [1, 1]} : vector<8x512xf32> to vector<8x128xf32>
    %152 = arith.negf %151 : vector<8x128xf32>
    %153 = math.exp %152 : vector<8x128xf32>
    %cst_57 = arith.constant 1.000000e+00 : f32
    %154 = vector.broadcast %cst_57 : f32 to vector<8x128xf32>
    %155 = arith.addf %154, %153 : vector<8x128xf32>
    %156 = arith.divf %154, %155 : vector<8x128xf32>
    %157 = vector.extract_strided_slice %150 {offsets = [0, 128], sizes = [8, 128], strides = [1, 1]} : vector<8x512xf32> to vector<8x128xf32>
    %158 = arith.negf %157 : vector<8x128xf32>
    %159 = math.exp %158 : vector<8x128xf32>
    %cst_58 = arith.constant 1.000000e+00 : f32
    %160 = vector.broadcast %cst_58 : f32 to vector<8x128xf32>
    %161 = arith.addf %160, %159 : vector<8x128xf32>
    %162 = arith.divf %160, %161 : vector<8x128xf32>
    %163 = vector.extract_strided_slice %150 {offsets = [0, 256], sizes = [8, 128], strides = [1, 1]} : vector<8x512xf32> to vector<8x128xf32>
    %164 = math.tanh %163 : vector<8x128xf32>
    %165 = vector.extract_strided_slice %150 {offsets = [0, 384], sizes = [8, 128], strides = [1, 1]} : vector<8x512xf32> to vector<8x128xf32>
    %166 = arith.negf %165 : vector<8x128xf32>
    %167 = math.exp %166 : vector<8x128xf32>
    %cst_59 = arith.constant 1.000000e+00 : f32
    %168 = vector.broadcast %cst_59 : f32 to vector<8x128xf32>
    %169 = arith.addf %168, %167 : vector<8x128xf32>
    %170 = arith.divf %168, %169 : vector<8x128xf32>
    %171 = arith.mulf %162, %147 : vector<8x128xf32>
    %172 = arith.mulf %156, %164 : vector<8x128xf32>
    %173 = arith.addf %171, %172 : vector<8x128xf32>
    %174 = math.tanh %173 : vector<8x128xf32>
    %175 = arith.mulf %170, %174 : vector<8x128xf32>
    %c0_60 = arith.constant 0 : index
    %c0_61 = arith.constant 0 : index
    %176 = vector.load %arg19[%c0_60, %c0_61] : memref<32x128xf32, #tpu.memory_space<vmem>>, vector<8x128xf32>
    tpu.vector_store %arg19[%c0_60, %c0_61], %175 {strides = array<i32>} : memref<32x128xf32, #tpu.memory_space<vmem>>, vector<8x128xf32>,
    %177 = vector.extract_strided_slice %142 {offsets = [8, 0], sizes = [8, 512], strides = [1, 1]} : vector<32x512xf32> to vector<8x512xf32>
    %cst_62 = arith.constant dense<0.000000e+00> : vector<8x512xf32>
    %178 = tpu.matmul %175, %143, %cst_62 {dimension_numbers = #tpu.dot_dimension_numbers<[1], [0], [0], [1], [0, 0, 1, 1], [], []>} : vector<8x128xf32>, vector<128x512xf32>, vector<8x512xf32> -> vector<8x512xf32>
    %179 = arith.addf %177, %178 : vector<8x512xf32>
    %180 = vector.extract_strided_slice %179 {offsets = [0, 0], sizes = [8, 128], strides = [1, 1]} : vector<8x512xf32> to vector<8x128xf32>
    %181 = arith.negf %180 : vector<8x128xf32>
    %182 = math.exp %181 : vector<8x128xf32>
    %cst_63 = arith.constant 1.000000e+00 : f32
    %183 = vector.broadcast %cst_63 : f32 to vector<8x128xf32>
    %184 = arith.addf %183, %182 : vector<8x128xf32>
    %185 = arith.divf %183, %184 : vector<8x128xf32>
    %186 = vector.extract_strided_slice %179 {offsets = [0, 128], sizes = [8, 128], strides = [1, 1]} : vector<8x512xf32> to vector<8x128xf32>
    %187 = arith.negf %186 : vector<8x128xf32>
    %188 = math.exp %187 : vector<8x128xf32>
    %cst_64 = arith.constant 1.000000e+00 : f32
    %189 = vector.broadcast %cst_64 : f32 to vector<8x128xf32>
    %190 = arith.addf %189, %188 : vector<8x128xf32>
    %191 = arith.divf %189, %190 : vector<8x128xf32>
    %192 = vector.extract_strided_slice %179 {offsets = [0, 256], sizes = [8, 128], strides = [1, 1]} : vector<8x512xf32> to vector<8x128xf32>
    %193 = math.tanh %192 : vector<8x128xf32>
    %194 = vector.extract_strided_slice %179 {offsets = [0, 384], sizes = [8, 128], strides = [1, 1]} : vector<8x512xf32> to vector<8x128xf32>
    %195 = arith.negf %194 : vector<8x128xf32>
    %196 = math.exp %195 : vector<8x128xf32>
    %cst_65 = arith.constant 1.000000e+00 : f32
    %197 = vector.broadcast %cst_65 : f32 to vector<8x128xf32>
    %198 = arith.addf %197, %196 : vector<8x128xf32>
    %199 = arith.divf %197, %198 : vector<8x128xf32>
    %200 = arith.mulf %191, %173 : vector<8x128xf32>
    %201 = arith.mulf %185, %193 : vector<8x128xf32>
    %202 = arith.addf %200, %201 : vector<8x128xf32>
    %203 = math.tanh %202 : vector<8x128xf32>
    %204 = arith.mulf %199, %203 : vector<8x128xf32>
    %c8_66 = arith.constant 8 : index
    %c0_67 = arith.constant 0 : index
    %205 = vector.load %arg19[%c8_66, %c0_67] : memref<32x128xf32, #tpu.memory_space<vmem>>, vector<8x128xf32>
    tpu.vector_store %arg19[%c8_66, %c0_67], %204 {strides = array<i32>} : memref<32x128xf32, #tpu.memory_space<vmem>>, vector<8x128xf32>,
    %206 = vector.extract_strided_slice %142 {offsets = [16, 0], sizes = [8, 512], strides = [1, 1]} : vector<32x512xf32> to vector<8x512xf32>
    %cst_68 = arith.constant dense<0.000000e+00> : vector<8x512xf32>
    %207 = tpu.matmul %204, %143, %cst_68 {dimension_numbers = #tpu.dot_dimension_numbers<[1], [0], [0], [1], [0, 0, 1, 1], [], []>} : vector<8x128xf32>, vector<128x512xf32>, vector<8x512xf32> -> vector<8x512xf32>
    %208 = arith.addf %206, %207 : vector<8x512xf32>
    %209 = vector.extract_strided_slice %208 {offsets = [0, 0], sizes = [8, 128], strides = [1, 1]} : vector<8x512xf32> to vector<8x128xf32>
    %210 = arith.negf %209 : vector<8x128xf32>
    %211 = math.exp %210 : vector<8x128xf32>
    %cst_69 = arith.constant 1.000000e+00 : f32
    %212 = vector.broadcast %cst_69 : f32 to vector<8x128xf32>
    %213 = arith.addf %212, %211 : vector<8x128xf32>
    %214 = arith.divf %212, %213 : vector<8x128xf32>
    %215 = vector.extract_strided_slice %208 {offsets = [0, 128], sizes = [8, 128], strides = [1, 1]} : vector<8x512xf32> to vector<8x128xf32>
    %216 = arith.negf %215 : vector<8x128xf32>
    %217 = math.exp %216 : vector<8x128xf32>
    %cst_70 = arith.constant 1.000000e+00 : f32
    %218 = vector.broadcast %cst_70 : f32 to vector<8x128xf32>
    %219 = arith.addf %218, %217 : vector<8x128xf32>
    %220 = arith.divf %218, %219 : vector<8x128xf32>
    %221 = vector.extract_strided_slice %208 {offsets = [0, 256], sizes = [8, 128], strides = [1, 1]} : vector<8x512xf32> to vector<8x128xf32>
    %222 = math.tanh %221 : vector<8x128xf32>
    %223 = vector.extract_strided_slice %208 {offsets = [0, 384], sizes = [8, 128], strides = [1, 1]} : vector<8x512xf32> to vector<8x128xf32>
    %224 = arith.negf %223 : vector<8x128xf32>
    %225 = math.exp %224 : vector<8x128xf32>
    %cst_71 = arith.constant 1.000000e+00 : f32
    %226 = vector.broadcast %cst_71 : f32 to vector<8x128xf32>
    %227 = arith.addf %226, %225 : vector<8x128xf32>
    %228 = arith.divf %226, %227 : vector<8x128xf32>
    %229 = arith.mulf %220, %202 : vector<8x128xf32>
    %230 = arith.mulf %214, %222 : vector<8x128xf32>
    %231 = arith.addf %229, %230 : vector<8x128xf32>
    %232 = math.tanh %231 : vector<8x128xf32>
    %233 = arith.mulf %228, %232 : vector<8x128xf32>
    %c16_72 = arith.constant 16 : index
    %c0_73 = arith.constant 0 : index
    %234 = vector.load %arg19[%c16_72, %c0_73] : memref<32x128xf32, #tpu.memory_space<vmem>>, vector<8x128xf32>
    tpu.vector_store %arg19[%c16_72, %c0_73], %233 {strides = array<i32>} : memref<32x128xf32, #tpu.memory_space<vmem>>, vector<8x128xf32>,
    %235 = vector.extract_strided_slice %142 {offsets = [24, 0], sizes = [8, 512], strides = [1, 1]} : vector<32x512xf32> to vector<8x512xf32>
    %cst_74 = arith.constant dense<0.000000e+00> : vector<8x512xf32>
    %236 = tpu.matmul %233, %143, %cst_74 {dimension_numbers = #tpu.dot_dimension_numbers<[1], [0], [0], [1], [0, 0, 1, 1], [], []>} : vector<8x128xf32>, vector<128x512xf32>, vector<8x512xf32> -> vector<8x512xf32>
    %237 = arith.addf %235, %236 : vector<8x512xf32>
    %238 = vector.extract_strided_slice %237 {offsets = [0, 0], sizes = [8, 128], strides = [1, 1]} : vector<8x512xf32> to vector<8x128xf32>
    %239 = arith.negf %238 : vector<8x128xf32>
    %240 = math.exp %239 : vector<8x128xf32>
    %cst_75 = arith.constant 1.000000e+00 : f32
    %241 = vector.broadcast %cst_75 : f32 to vector<8x128xf32>
    %242 = arith.addf %241, %240 : vector<8x128xf32>
    %243 = arith.divf %241, %242 : vector<8x128xf32>
    %244 = vector.extract_strided_slice %237 {offsets = [0, 128], sizes = [8, 128], strides = [1, 1]} : vector<8x512xf32> to vector<8x128xf32>
    %245 = arith.negf %244 : vector<8x128xf32>
    %246 = math.exp %245 : vector<8x128xf32>
    %cst_76 = arith.constant 1.000000e+00 : f32
    %247 = vector.broadcast %cst_76 : f32 to vector<8x128xf32>
    %248 = arith.addf %247, %246 : vector<8x128xf32>
    %249 = arith.divf %247, %248 : vector<8x128xf32>
    %250 = vector.extract_strided_slice %237 {offsets = [0, 256], sizes = [8, 128], strides = [1, 1]} : vector<8x512xf32> to vector<8x128xf32>
    %251 = math.tanh %250 : vector<8x128xf32>
    %252 = vector.extract_strided_slice %237 {offsets = [0, 384], sizes = [8, 128], strides = [1, 1]} : vector<8x512xf32> to vector<8x128xf32>
    %253 = arith.negf %252 : vector<8x128xf32>
    %254 = math.exp %253 : vector<8x128xf32>
    %cst_77 = arith.constant 1.000000e+00 : f32
    %255 = vector.broadcast %cst_77 : f32 to vector<8x128xf32>
    %256 = arith.addf %255, %254 : vector<8x128xf32>
    %257 = arith.divf %255, %256 : vector<8x128xf32>
    %258 = arith.mulf %249, %231 : vector<8x128xf32>
    %259 = arith.mulf %243, %251 : vector<8x128xf32>
    %260 = arith.addf %258, %259 : vector<8x128xf32>
    %261 = math.tanh %260 : vector<8x128xf32>
    %262 = arith.mulf %257, %261 : vector<8x128xf32>
    %c24_78 = arith.constant 24 : index
    %c0_79 = arith.constant 0 : index
    %263 = vector.load %arg19[%c24_78, %c0_79] : memref<32x128xf32, #tpu.memory_space<vmem>>, vector<8x128xf32>
    tpu.vector_store %arg19[%c24_78, %c0_79], %262 {strides = array<i32>} : memref<32x128xf32, #tpu.memory_space<vmem>>, vector<8x128xf32>,
    %c1_80 = arith.constant 1 : index
    %c0_81 = arith.constant 0 : index
    %c0_82 = arith.constant 0 : index
    %264 = vector.load %arg17[%c1_80, %c0_81, %c0_82] : memref<3x8x128xf32, #tpu.memory_space<vmem>>, vector<1x8x128xf32>
    %265 = vector.shape_cast %264 : vector<1x8x128xf32> to vector<8x128xf32>
    %266 = vector.shape_cast %262 : vector<8x128xf32> to vector<1x8x128xf32>
    tpu.vector_store %arg17[%c1_80, %c0_81, %c0_82], %266 {strides = array<i32>} : memref<3x8x128xf32, #tpu.memory_space<vmem>>, vector<1x8x128xf32>,
    %c1_83 = arith.constant 1 : index
    %c0_84 = arith.constant 0 : index
    %c0_85 = arith.constant 0 : index
    %267 = vector.load %arg18[%c1_83, %c0_84, %c0_85] : memref<3x8x128xf32, #tpu.memory_space<vmem>>, vector<1x8x128xf32>
    %268 = vector.shape_cast %267 : vector<1x8x128xf32> to vector<8x128xf32>
    %269 = vector.shape_cast %260 : vector<8x128xf32> to vector<1x8x128xf32>
    tpu.vector_store %arg18[%c1_83, %c0_84, %c0_85], %269 {strides = array<i32>} : memref<3x8x128xf32, #tpu.memory_space<vmem>>, vector<1x8x128xf32>,
    %c0_86 = arith.constant 0 : index
    %c0_87 = arith.constant 0 : index
    %270 = vector.load %arg19[%c0_86, %c0_87] : memref<32x128xf32, #tpu.memory_space<vmem>>, vector<32x128xf32>
    %c0_88 = arith.constant 0 : index
    %c0_89 = arith.constant 0 : index
    %271 = vector.load %arg9[%c0_88, %c0_89] : memref<128x512xf32, #tpu.memory_space<vmem>>, vector<128x512xf32>
    %cst_90 = arith.constant dense<0.000000e+00> : vector<32x512xf32>
    %272 = tpu.matmul %270, %271, %cst_90 {dimension_numbers = #tpu.dot_dimension_numbers<[1], [0], [0], [1], [0, 0, 1, 1], [], []>} : vector<32x128xf32>, vector<128x512xf32>, vector<32x512xf32> -> vector<32x512xf32>
    %c0_91 = arith.constant 0 : index
    %c0_92 = arith.constant 0 : index
    %273 = vector.load %arg11[%c0_91, %c0_92] : memref<1x512xf32, #tpu.memory_space<vmem>>, vector<1x512xf32>
    %274 = vector.broadcast %273 : vector<1x512xf32> to vector<32x512xf32>
    %275 = arith.addf %272, %274 : vector<32x512xf32>
    %c0_93 = arith.constant 0 : index
    %c0_94 = arith.constant 0 : index
    %276 = vector.load %arg10[%c0_93, %c0_94] : memref<128x512xf32, #tpu.memory_space<vmem>>, vector<128x512xf32>
    %c2 = arith.constant 2 : index
    %c0_95 = arith.constant 0 : index
    %c0_96 = arith.constant 0 : index
    %277 = vector.load %arg17[%c2, %c0_95, %c0_96] : memref<3x8x128xf32, #tpu.memory_space<vmem>>, vector<1x8x128xf32>
    %278 = vector.shape_cast %277 : vector<1x8x128xf32> to vector<8x128xf32>
    %c2_97 = arith.constant 2 : index
    %c0_98 = arith.constant 0 : index
    %c0_99 = arith.constant 0 : index
    %279 = vector.load %arg18[%c2_97, %c0_98, %c0_99] : memref<3x8x128xf32, #tpu.memory_space<vmem>>, vector<1x8x128xf32>
    %280 = vector.shape_cast %279 : vector<1x8x128xf32> to vector<8x128xf32>
    %281 = vector.extract_strided_slice %275 {offsets = [0, 0], sizes = [8, 512], strides = [1, 1]} : vector<32x512xf32> to vector<8x512xf32>
    %cst_100 = arith.constant dense<0.000000e+00> : vector<8x512xf32>
    %282 = tpu.matmul %278, %276, %cst_100 {dimension_numbers = #tpu.dot_dimension_numbers<[1], [0], [0], [1], [0, 0, 1, 1], [], []>} : vector<8x128xf32>, vector<128x512xf32>, vector<8x512xf32> -> vector<8x512xf32>
    %283 = arith.addf %281, %282 : vector<8x512xf32>
    %284 = vector.extract_strided_slice %283 {offsets = [0, 0], sizes = [8, 128], strides = [1, 1]} : vector<8x512xf32> to vector<8x128xf32>
    %285 = arith.negf %284 : vector<8x128xf32>
    %286 = math.exp %285 : vector<8x128xf32>
    %cst_101 = arith.constant 1.000000e+00 : f32
    %287 = vector.broadcast %cst_101 : f32 to vector<8x128xf32>
    %288 = arith.addf %287, %286 : vector<8x128xf32>
    %289 = arith.divf %287, %288 : vector<8x128xf32>
    %290 = vector.extract_strided_slice %283 {offsets = [0, 128], sizes = [8, 128], strides = [1, 1]} : vector<8x512xf32> to vector<8x128xf32>
    %291 = arith.negf %290 : vector<8x128xf32>
    %292 = math.exp %291 : vector<8x128xf32>
    %cst_102 = arith.constant 1.000000e+00 : f32
    %293 = vector.broadcast %cst_102 : f32 to vector<8x128xf32>
    %294 = arith.addf %293, %292 : vector<8x128xf32>
    %295 = arith.divf %293, %294 : vector<8x128xf32>
    %296 = vector.extract_strided_slice %283 {offsets = [0, 256], sizes = [8, 128], strides = [1, 1]} : vector<8x512xf32> to vector<8x128xf32>
    %297 = math.tanh %296 : vector<8x128xf32>
    %298 = vector.extract_strided_slice %283 {offsets = [0, 384], sizes = [8, 128], strides = [1, 1]} : vector<8x512xf32> to vector<8x128xf32>
    %299 = arith.negf %298 : vector<8x128xf32>
    %300 = math.exp %299 : vector<8x128xf32>
    %cst_103 = arith.constant 1.000000e+00 : f32
    %301 = vector.broadcast %cst_103 : f32 to vector<8x128xf32>
    %302 = arith.addf %301, %300 : vector<8x128xf32>
    %303 = arith.divf %301, %302 : vector<8x128xf32>
    %304 = arith.mulf %295, %280 : vector<8x128xf32>
    %305 = arith.mulf %289, %297 : vector<8x128xf32>
    %306 = arith.addf %304, %305 : vector<8x128xf32>
    %307 = math.tanh %306 : vector<8x128xf32>
    %308 = arith.mulf %303, %307 : vector<8x128xf32>
    %c0_104 = arith.constant 0 : index
    %c0_105 = arith.constant 0 : index
    %309 = vector.load %arg19[%c0_104, %c0_105] : memref<32x128xf32, #tpu.memory_space<vmem>>, vector<8x128xf32>
    tpu.vector_store %arg19[%c0_104, %c0_105], %308 {strides = array<i32>} : memref<32x128xf32, #tpu.memory_space<vmem>>, vector<8x128xf32>,
    %310 = vector.extract_strided_slice %275 {offsets = [8, 0], sizes = [8, 512], strides = [1, 1]} : vector<32x512xf32> to vector<8x512xf32>
    %cst_106 = arith.constant dense<0.000000e+00> : vector<8x512xf32>
    %311 = tpu.matmul %308, %276, %cst_106 {dimension_numbers = #tpu.dot_dimension_numbers<[1], [0], [0], [1], [0, 0, 1, 1], [], []>} : vector<8x128xf32>, vector<128x512xf32>, vector<8x512xf32> -> vector<8x512xf32>
    %312 = arith.addf %310, %311 : vector<8x512xf32>
    %313 = vector.extract_strided_slice %312 {offsets = [0, 0], sizes = [8, 128], strides = [1, 1]} : vector<8x512xf32> to vector<8x128xf32>
    %314 = arith.negf %313 : vector<8x128xf32>
    %315 = math.exp %314 : vector<8x128xf32>
    %cst_107 = arith.constant 1.000000e+00 : f32
    %316 = vector.broadcast %cst_107 : f32 to vector<8x128xf32>
    %317 = arith.addf %316, %315 : vector<8x128xf32>
    %318 = arith.divf %316, %317 : vector<8x128xf32>
    %319 = vector.extract_strided_slice %312 {offsets = [0, 128], sizes = [8, 128], strides = [1, 1]} : vector<8x512xf32> to vector<8x128xf32>
    %320 = arith.negf %319 : vector<8x128xf32>
    %321 = math.exp %320 : vector<8x128xf32>
    %cst_108 = arith.constant 1.000000e+00 : f32
    %322 = vector.broadcast %cst_108 : f32 to vector<8x128xf32>
    %323 = arith.addf %322, %321 : vector<8x128xf32>
    %324 = arith.divf %322, %323 : vector<8x128xf32>
    %325 = vector.extract_strided_slice %312 {offsets = [0, 256], sizes = [8, 128], strides = [1, 1]} : vector<8x512xf32> to vector<8x128xf32>
    %326 = math.tanh %325 : vector<8x128xf32>
    %327 = vector.extract_strided_slice %312 {offsets = [0, 384], sizes = [8, 128], strides = [1, 1]} : vector<8x512xf32> to vector<8x128xf32>
    %328 = arith.negf %327 : vector<8x128xf32>
    %329 = math.exp %328 : vector<8x128xf32>
    %cst_109 = arith.constant 1.000000e+00 : f32
    %330 = vector.broadcast %cst_109 : f32 to vector<8x128xf32>
    %331 = arith.addf %330, %329 : vector<8x128xf32>
    %332 = arith.divf %330, %331 : vector<8x128xf32>
    %333 = arith.mulf %324, %306 : vector<8x128xf32>
    %334 = arith.mulf %318, %326 : vector<8x128xf32>
    %335 = arith.addf %333, %334 : vector<8x128xf32>
    %336 = math.tanh %335 : vector<8x128xf32>
    %337 = arith.mulf %332, %336 : vector<8x128xf32>
    %c8_110 = arith.constant 8 : index
    %c0_111 = arith.constant 0 : index
    %338 = vector.load %arg19[%c8_110, %c0_111] : memref<32x128xf32, #tpu.memory_space<vmem>>, vector<8x128xf32>
    tpu.vector_store %arg19[%c8_110, %c0_111], %337 {strides = array<i32>} : memref<32x128xf32, #tpu.memory_space<vmem>>, vector<8x128xf32>,
    %339 = vector.extract_strided_slice %275 {offsets = [16, 0], sizes = [8, 512], strides = [1, 1]} : vector<32x512xf32> to vector<8x512xf32>
    %cst_112 = arith.constant dense<0.000000e+00> : vector<8x512xf32>
    %340 = tpu.matmul %337, %276, %cst_112 {dimension_numbers = #tpu.dot_dimension_numbers<[1], [0], [0], [1], [0, 0, 1, 1], [], []>} : vector<8x128xf32>, vector<128x512xf32>, vector<8x512xf32> -> vector<8x512xf32>
    %341 = arith.addf %339, %340 : vector<8x512xf32>
    %342 = vector.extract_strided_slice %341 {offsets = [0, 0], sizes = [8, 128], strides = [1, 1]} : vector<8x512xf32> to vector<8x128xf32>
    %343 = arith.negf %342 : vector<8x128xf32>
    %344 = math.exp %343 : vector<8x128xf32>
    %cst_113 = arith.constant 1.000000e+00 : f32
    %345 = vector.broadcast %cst_113 : f32 to vector<8x128xf32>
    %346 = arith.addf %345, %344 : vector<8x128xf32>
    %347 = arith.divf %345, %346 : vector<8x128xf32>
    %348 = vector.extract_strided_slice %341 {offsets = [0, 128], sizes = [8, 128], strides = [1, 1]} : vector<8x512xf32> to vector<8x128xf32>
    %349 = arith.negf %348 : vector<8x128xf32>
    %350 = math.exp %349 : vector<8x128xf32>
    %cst_114 = arith.constant 1.000000e+00 : f32
    %351 = vector.broadcast %cst_114 : f32 to vector<8x128xf32>
    %352 = arith.addf %351, %350 : vector<8x128xf32>
    %353 = arith.divf %351, %352 : vector<8x128xf32>
    %354 = vector.extract_strided_slice %341 {offsets = [0, 256], sizes = [8, 128], strides = [1, 1]} : vector<8x512xf32> to vector<8x128xf32>
    %355 = math.tanh %354 : vector<8x128xf32>
    %356 = vector.extract_strided_slice %341 {offsets = [0, 384], sizes = [8, 128], strides = [1, 1]} : vector<8x512xf32> to vector<8x128xf32>
    %357 = arith.negf %356 : vector<8x128xf32>
    %358 = math.exp %357 : vector<8x128xf32>
    %cst_115 = arith.constant 1.000000e+00 : f32
    %359 = vector.broadcast %cst_115 : f32 to vector<8x128xf32>
    %360 = arith.addf %359, %358 : vector<8x128xf32>
    %361 = arith.divf %359, %360 : vector<8x128xf32>
    %362 = arith.mulf %353, %335 : vector<8x128xf32>
    %363 = arith.mulf %347, %355 : vector<8x128xf32>
    %364 = arith.addf %362, %363 : vector<8x128xf32>
    %365 = math.tanh %364 : vector<8x128xf32>
    %366 = arith.mulf %361, %365 : vector<8x128xf32>
    %c16_116 = arith.constant 16 : index
    %c0_117 = arith.constant 0 : index
    %367 = vector.load %arg19[%c16_116, %c0_117] : memref<32x128xf32, #tpu.memory_space<vmem>>, vector<8x128xf32>
    tpu.vector_store %arg19[%c16_116, %c0_117], %366 {strides = array<i32>} : memref<32x128xf32, #tpu.memory_space<vmem>>, vector<8x128xf32>,
    %368 = vector.extract_strided_slice %275 {offsets = [24, 0], sizes = [8, 512], strides = [1, 1]} : vector<32x512xf32> to vector<8x512xf32>
    %cst_118 = arith.constant dense<0.000000e+00> : vector<8x512xf32>
    %369 = tpu.matmul %366, %276, %cst_118 {dimension_numbers = #tpu.dot_dimension_numbers<[1], [0], [0], [1], [0, 0, 1, 1], [], []>} : vector<8x128xf32>, vector<128x512xf32>, vector<8x512xf32> -> vector<8x512xf32>
    %370 = arith.addf %368, %369 : vector<8x512xf32>
    %371 = vector.extract_strided_slice %370 {offsets = [0, 0], sizes = [8, 128], strides = [1, 1]} : vector<8x512xf32> to vector<8x128xf32>
    %372 = arith.negf %371 : vector<8x128xf32>
    %373 = math.exp %372 : vector<8x128xf32>
    %cst_119 = arith.constant 1.000000e+00 : f32
    %374 = vector.broadcast %cst_119 : f32 to vector<8x128xf32>
    %375 = arith.addf %374, %373 : vector<8x128xf32>
    %376 = arith.divf %374, %375 : vector<8x128xf32>
    %377 = vector.extract_strided_slice %370 {offsets = [0, 128], sizes = [8, 128], strides = [1, 1]} : vector<8x512xf32> to vector<8x128xf32>
    %378 = arith.negf %377 : vector<8x128xf32>
    %379 = math.exp %378 : vector<8x128xf32>
    %cst_120 = arith.constant 1.000000e+00 : f32
    %380 = vector.broadcast %cst_120 : f32 to vector<8x128xf32>
    %381 = arith.addf %380, %379 : vector<8x128xf32>
    %382 = arith.divf %380, %381 : vector<8x128xf32>
    %383 = vector.extract_strided_slice %370 {offsets = [0, 256], sizes = [8, 128], strides = [1, 1]} : vector<8x512xf32> to vector<8x128xf32>
    %384 = math.tanh %383 : vector<8x128xf32>
    %385 = vector.extract_strided_slice %370 {offsets = [0, 384], sizes = [8, 128], strides = [1, 1]} : vector<8x512xf32> to vector<8x128xf32>
    %386 = arith.negf %385 : vector<8x128xf32>
    %387 = math.exp %386 : vector<8x128xf32>
    %cst_121 = arith.constant 1.000000e+00 : f32
    %388 = vector.broadcast %cst_121 : f32 to vector<8x128xf32>
    %389 = arith.addf %388, %387 : vector<8x128xf32>
    %390 = arith.divf %388, %389 : vector<8x128xf32>
    %391 = arith.mulf %382, %364 : vector<8x128xf32>
    %392 = arith.mulf %376, %384 : vector<8x128xf32>
    %393 = arith.addf %391, %392 : vector<8x128xf32>
    %394 = math.tanh %393 : vector<8x128xf32>
    %395 = arith.mulf %390, %394 : vector<8x128xf32>
    %c24_122 = arith.constant 24 : index
    %c0_123 = arith.constant 0 : index
    %396 = vector.load %arg19[%c24_122, %c0_123] : memref<32x128xf32, #tpu.memory_space<vmem>>, vector<8x128xf32>
    tpu.vector_store %arg19[%c24_122, %c0_123], %395 {strides = array<i32>} : memref<32x128xf32, #tpu.memory_space<vmem>>, vector<8x128xf32>,
    %c2_124 = arith.constant 2 : index
    %c0_125 = arith.constant 0 : index
    %c0_126 = arith.constant 0 : index
    %397 = vector.load %arg17[%c2_124, %c0_125, %c0_126] : memref<3x8x128xf32, #tpu.memory_space<vmem>>, vector<1x8x128xf32>
    %398 = vector.shape_cast %397 : vector<1x8x128xf32> to vector<8x128xf32>
    %399 = vector.shape_cast %395 : vector<8x128xf32> to vector<1x8x128xf32>
    tpu.vector_store %arg17[%c2_124, %c0_125, %c0_126], %399 {strides = array<i32>} : memref<3x8x128xf32, #tpu.memory_space<vmem>>, vector<1x8x128xf32>,
    %c2_127 = arith.constant 2 : index
    %c0_128 = arith.constant 0 : index
    %c0_129 = arith.constant 0 : index
    %400 = vector.load %arg18[%c2_127, %c0_128, %c0_129] : memref<3x8x128xf32, #tpu.memory_space<vmem>>, vector<1x8x128xf32>
    %401 = vector.shape_cast %400 : vector<1x8x128xf32> to vector<8x128xf32>
    %402 = vector.shape_cast %393 : vector<8x128xf32> to vector<1x8x128xf32>
    tpu.vector_store %arg18[%c2_127, %c0_128, %c0_129], %402 {strides = array<i32>} : memref<3x8x128xf32, #tpu.memory_space<vmem>>, vector<1x8x128xf32>,
    %c0_130 = arith.constant 0 : index
    %c0_131 = arith.constant 0 : index
    %403 = vector.load %arg19[%c0_130, %c0_131] : memref<32x128xf32, #tpu.memory_space<vmem>>, vector<32x128xf32>
    %c0_132 = arith.constant 0 : index
    %c0_133 = arith.constant 0 : index
    %404 = vector.load %arg12[%c0_132, %c0_133] : memref<128x1xf32, #tpu.memory_space<vmem>>, vector<128x1xf32>
    %cst_134 = arith.constant dense<0.000000e+00> : vector<32x1xf32>
    %405 = tpu.matmul %403, %404, %cst_134 {dimension_numbers = #tpu.dot_dimension_numbers<[1], [0], [0], [1], [0, 0, 1, 1], [], []>} : vector<32x128xf32>, vector<128x1xf32>, vector<32x1xf32> -> vector<32x1xf32>
    %c0_135 = arith.constant 0 : index
    %c0_136 = arith.constant 0 : index
    %406 = vector.load %arg13[%c0_135, %c0_136] : memref<1x1xf32, #tpu.memory_space<vmem>>, vector<1x1xf32>
    %407 = vector.broadcast %406 : vector<1x1xf32> to vector<32x1xf32>
    %408 = arith.addf %405, %407 : vector<32x1xf32>
    %409 = vector.shape_cast %408 : vector<32x1xf32> to vector<4x8x1xf32>
    %410 = vector.shape_cast %403 : vector<32x128xf32> to vector<4x8x128xf32>
    %c0_137 = arith.constant 0 : index
    %c0_138 = arith.constant 0 : index
    %411 = vector.load %arg20[%c0_137, %c0_138] : memref<8x1xf32, #tpu.memory_space<vmem>>, vector<8x1xf32>
    %cst_139 = arith.constant dense<0xFF800000> : vector<8x1xf32>
    %412 = vector.multi_reduction <maximumf>, %409, %cst_139 [0] : vector<4x8x1xf32> to vector<8x1xf32>
    %413 = arith.maximumf %411, %412 : vector<8x1xf32>
    %414 = arith.subf %411, %413 : vector<8x1xf32>
    %415 = math.exp %414 : vector<8x1xf32>
    %416 = vector.shape_cast %413 : vector<8x1xf32> to vector<1x8x1xf32>
    %417 = vector.broadcast %416 : vector<1x8x1xf32> to vector<4x8x1xf32>
    %418 = arith.subf %409, %417 : vector<4x8x1xf32>
    %419 = math.exp %418 : vector<4x8x1xf32>
    %c0_140 = arith.constant 0 : index
    %c0_141 = arith.constant 0 : index
    %420 = vector.load %arg21[%c0_140, %c0_141] : memref<8x1xf32, #tpu.memory_space<vmem>>, vector<8x1xf32>
    %421 = arith.mulf %415, %420 : vector<8x1xf32>
    %cst_142 = arith.constant dense<0.000000e+00> : vector<8x1xf32>
    %422 = vector.multi_reduction <add>, %419, %cst_142 [0] : vector<4x8x1xf32> to vector<8x1xf32>
    %423 = arith.addf %421, %422 : vector<8x1xf32>
    %c0_143 = arith.constant 0 : index
    %c0_144 = arith.constant 0 : index
    %424 = vector.load %arg21[%c0_143, %c0_144] : memref<8x1xf32, #tpu.memory_space<vmem>>, vector<8x1xf32>
    tpu.vector_store %arg21[%c0_143, %c0_144], %423 {strides = array<i32>} : memref<8x1xf32, #tpu.memory_space<vmem>>, vector<8x1xf32>,
    %c0_145 = arith.constant 0 : index
    %c0_146 = arith.constant 0 : index
    %425 = vector.load %arg22[%c0_145, %c0_146] : memref<8x128xf32, #tpu.memory_space<vmem>>, vector<8x128xf32>
    %426 = vector.broadcast %415 : vector<8x1xf32> to vector<8x128xf32>
    %427 = arith.mulf %426, %425 : vector<8x128xf32>
    %428 = vector.broadcast %419 : vector<4x8x1xf32> to vector<4x8x128xf32>
    %429 = arith.mulf %428, %410 : vector<4x8x128xf32>
    %cst_147 = arith.constant dense<0.000000e+00> : vector<8x128xf32>
    %430 = vector.multi_reduction <add>, %429, %cst_147 [0] : vector<4x8x128xf32> to vector<8x128xf32>
    %431 = arith.addf %427, %430 : vector<8x128xf32>
    %c0_148 = arith.constant 0 : index
    %c0_149 = arith.constant 0 : index
    %432 = vector.load %arg22[%c0_148, %c0_149] : memref<8x128xf32, #tpu.memory_space<vmem>>, vector<8x128xf32>
    tpu.vector_store %arg22[%c0_148, %c0_149], %431 {strides = array<i32>} : memref<8x128xf32, #tpu.memory_space<vmem>>, vector<8x128xf32>,
    %c0_150 = arith.constant 0 : index
    %c0_151 = arith.constant 0 : index
    %433 = vector.load %arg20[%c0_150, %c0_151] : memref<8x1xf32, #tpu.memory_space<vmem>>, vector<8x1xf32>
    tpu.vector_store %arg20[%c0_150, %c0_151], %413 {strides = array<i32>} : memref<8x1xf32, #tpu.memory_space<vmem>>, vector<8x1xf32>,
    %c1_i32 = arith.constant 1 : i32
    %434 = arith.cmpi eq, %arg1, %c1_i32 : i32
    %435 = arith.extui %434 : i1 to i32
    %c0_i32_152 = arith.constant 0 : i32
    %436 = arith.cmpi ne, %435, %c0_i32_152 : i32
    scf.if %436 {
      %c0_153 = arith.constant 0 : index
      %c0_154 = arith.constant 0 : index
      %437 = vector.load %arg22[%c0_153, %c0_154] : memref<8x128xf32, #tpu.memory_space<vmem>>, vector<8x128xf32>
      %c0_155 = arith.constant 0 : index
      %c0_156 = arith.constant 0 : index
      %438 = vector.load %arg21[%c0_155, %c0_156] : memref<8x1xf32, #tpu.memory_space<vmem>>, vector<8x1xf32>
      %439 = vector.broadcast %438 : vector<8x1xf32> to vector<8x128xf32>
      %440 = arith.divf %437, %439 : vector<8x128xf32>
      %c0_157 = arith.constant 0 : index
      %c0_158 = arith.constant 0 : index
      %441 = vector.load %arg14[%c0_157, %c0_158] : memref<128x128xf32, #tpu.memory_space<vmem>>, vector<128x128xf32>
      %cst_159 = arith.constant dense<0.000000e+00> : vector<8x128xf32>
      %442 = tpu.matmul %440, %441, %cst_159 {dimension_numbers = #tpu.dot_dimension_numbers<[1], [0], [0], [1], [0, 0, 1, 1], [], []>} : vector<8x128xf32>, vector<128x128xf32>, vector<8x128xf32> -> vector<8x128xf32>
      %c0_160 = arith.constant 0 : index
      %c0_161 = arith.constant 0 : index
      %443 = vector.load %arg15[%c0_160, %c0_161] : memref<1x128xf32, #tpu.memory_space<vmem>>, vector<1x128xf32>
      %444 = vector.broadcast %443 : vector<1x128xf32> to vector<8x128xf32>
      %445 = arith.addf %442, %444 : vector<8x128xf32>
      %c0_162 = arith.constant 0 : index
      %c0_163 = arith.constant 0 : index
      %446 = vector.load %arg16[%c0_162, %c0_163] : memref<8x128xf32, #tpu.memory_space<vmem>>, vector<8x128xf32>
      tpu.vector_store %arg16[%c0_162, %c0_163], %445 {strides = array<i32>} : memref<8x128xf32, #tpu.memory_space<vmem>>, vector<8x128xf32>,
    } else {
    }
    return
  }
  func.func @transform_0(%arg0: i32, %arg1: i32) -> (i32, i32, i32) {
    %c0_i32 = arith.constant 0 : i32
    %c0_i32_0 = arith.constant 0 : i32
    return %arg1, %arg0, %c0_i32 : i32, i32, i32
  }
  func.func @transform_1(%arg0: i32, %arg1: i32) -> (i32, i32) {
    %c0_i32 = arith.constant 0 : i32
    %c0_i32_0 = arith.constant 0 : i32
    %c0_i32_1 = arith.constant 0 : i32
    return %c0_i32, %c0_i32_0 : i32, i32
  }
  func.func @transform_2(%arg0: i32, %arg1: i32) -> (i32, i32) {
    %c0_i32 = arith.constant 0 : i32
    %c0_i32_0 = arith.constant 0 : i32
    %c0_i32_1 = arith.constant 0 : i32
    return %c0_i32, %c0_i32_0 : i32, i32
  }
  func.func @transform_3(%arg0: i32, %arg1: i32) -> (i32, i32) {
    %c0_i32 = arith.constant 0 : i32
    %c0_i32_0 = arith.constant 0 : i32
    %c0_i32_1 = arith.constant 0 : i32
    return %c0_i32, %c0_i32_0 : i32, i32
  }
  func.func @transform_4(%arg0: i32, %arg1: i32) -> (i32, i32) {
    %c0_i32 = arith.constant 0 : i32
    %c0_i32_0 = arith.constant 0 : i32
    %c0_i32_1 = arith.constant 0 : i32
    return %c0_i32, %c0_i32_0 : i32, i32
  }
  func.func @transform_5(%arg0: i32, %arg1: i32) -> (i32, i32) {
    %c0_i32 = arith.constant 0 : i32
    %c0_i32_0 = arith.constant 0 : i32
    %c0_i32_1 = arith.constant 0 : i32
    return %c0_i32, %c0_i32_0 : i32, i32
  }
  func.func @transform_6(%arg0: i32, %arg1: i32) -> (i32, i32) {
    %c0_i32 = arith.constant 0 : i32
    %c0_i32_0 = arith.constant 0 : i32
    %c0_i32_1 = arith.constant 0 : i32
    return %c0_i32, %c0_i32_0 : i32, i32
  }
  func.func @transform_7(%arg0: i32, %arg1: i32) -> (i32, i32) {
    %c0_i32 = arith.constant 0 : i32
    %c0_i32_0 = arith.constant 0 : i32
    %c0_i32_1 = arith.constant 0 : i32
    return %c0_i32, %c0_i32_0 : i32, i32
  }
  func.func @transform_8(%arg0: i32, %arg1: i32) -> (i32, i32) {
    %c0_i32 = arith.constant 0 : i32
    %c0_i32_0 = arith.constant 0 : i32
    %c0_i32_1 = arith.constant 0 : i32
    return %c0_i32, %c0_i32_0 : i32, i32
  }
  func.func @transform_9(%arg0: i32, %arg1: i32) -> (i32, i32) {
    %c0_i32 = arith.constant 0 : i32
    %c0_i32_0 = arith.constant 0 : i32
    %c0_i32_1 = arith.constant 0 : i32
    return %c0_i32, %c0_i32_0 : i32, i32
  }
  func.func @transform_10(%arg0: i32, %arg1: i32) -> (i32, i32) {
    %c0_i32 = arith.constant 0 : i32
    %c0_i32_0 = arith.constant 0 : i32
    %c0_i32_1 = arith.constant 0 : i32
    return %c0_i32, %c0_i32_0 : i32, i32
  }
  func.func @transform_11(%arg0: i32, %arg1: i32) -> (i32, i32) {
    %c0_i32 = arith.constant 0 : i32
    %c0_i32_0 = arith.constant 0 : i32
    %c0_i32_1 = arith.constant 0 : i32
    return %c0_i32, %c0_i32_0 : i32, i32
  }
  func.func @transform_12(%arg0: i32, %arg1: i32) -> (i32, i32) {
    %c0_i32 = arith.constant 0 : i32
    %c0_i32_0 = arith.constant 0 : i32
    %c0_i32_1 = arith.constant 0 : i32
    return %c0_i32, %c0_i32_0 : i32, i32
  }
  func.func @transform_13(%arg0: i32, %arg1: i32) -> (i32, i32) {
    %c0_i32 = arith.constant 0 : i32
    %c0_i32_0 = arith.constant 0 : i32
    %c0_i32_1 = arith.constant 0 : i32
    return %c0_i32, %c0_i32_0 : i32, i32
  }
  func.func @transform_14(%arg0: i32, %arg1: i32) -> (i32, i32) {
    %c0_i32 = arith.constant 0 : i32
    %c0_i32_0 = arith.constant 0 : i32
    return %arg0, %c0_i32 : i32, i32
  }
}

</mosaic_0001>

<bundles_post_ra>
// kernel: tpu_custom_call.1
= control target key start
LH: loop header
LB: loop body
LE: loop exit
PB: predicated region body
PF: predicated region fallthrough
CT: control target
= control target key end

     0   :  { %s6769_s0 = inlined_call_operand.hbm [shape: f32[8,8,16], index: 0, kind: input, shape index: {}]   ;;  %s6770_s1 = inlined_call_operand.hbm [shape: f32[16,512], index: 1, kind: input, shape index: {}]   ;;  %s6771_s2 = inlined_call_operand.hbm [shape: f32[128,512], index: 2, kind: input, shape index: {}]   ;;  %s6772_s3 = inlined_call_operand.vmem [shape: f32[1,512], index: 3, kind: input, shape index: {}]   ;;  %s6773_s4 = inlined_call_operand.hbm [shape: f32[128,512], index: 4, kind: input, shape index: {}]   ;;  %s6774_s5 = inlined_call_operand.hbm [shape: f32[128,512], index: 5, kind: input, shape index: {}]   ;;  %s6775_s6 = inlined_call_operand.vmem [shape: f32[1,512], index: 6, kind: input, shape index: {}]   ;;  %s6776_s7 = inlined_call_operand.hbm [shape: f32[128,512], index: 7, kind: input, shape index: {}]   ;;  %s6777_s8 = inlined_call_operand.hbm [shape: f32[128,512], index: 8, kind: input, shape index: {}]   ;;  %s6778_s9 = inlined_call_operand.vmem [shape: f32[1,512], index: 9, kind: input, shape index: {}]   ;;  %s6779_s10 = inlined_call_operand.vmem [shape: f32[128,1], index: 10, kind: input, shape index: {}]   ;;  %s6780_s11 = inlined_call_operand.<no memory space> [shape: f32[1,1], index: 11, kind: input, shape index: {}]   ;;  %s6781_s12 = inlined_call_operand.vmem [shape: f32[128,128], index: 12, kind: input, shape index: {}]   ;;  %s6782_s13 = inlined_call_operand.vmem [shape: f32[1,128], index: 13, kind: input, shape index: {}]   ;;  %s6783_s14 = inlined_call_operand.hbm [shape: f32[8,128], index: 14, kind: output, shape index: {}]  }
   0x1   :  { %6953 = sst [smem:[#allocation69_spill]] %s6770_s1  ;;  %v19_v0 = vstv %s6780_s11 }
   0x2   :  { %6954 = sst [smem:[#allocation70_spill]] %s6771_s2  ;;  %20 = vst [vmem:[#allocation8] sm:$0x1] %v19_v0 }
   0x3   :  { %6955 = sst [smem:[#allocation71_spill]] %s6773_s4 }
   0x4   :  { %6956 = sst [smem:[#allocation72_spill]] %s6774_s5 }
   0x5   :  { %6957 = sst [smem:[#allocation73_spill]] %s6781_s12 }
   0x6   :  { %6958 = sst [smem:[#allocation74_spill]] %s6782_s13 }
   0x7   :  { %6959 = sst [smem:[#allocation75_spill]] %s6783_s14 }
   0x8   :  { %21 = vsyncpa [#allocation10], 0 }
   0x9   :  { %23 = vsyncpa [#allocation10 + $0x1], 0 }
   0xa   :  { %24 = vsyncpa [#allocation13], 0 }
   0xb   :  { %25 = vsyncpa [#allocation16], 0 }
   0xc   :  { %26 = vsyncpa [#allocation19], 0 }
   0xd   :  { %27 = vsyncpa [#allocation11], 0  ;;  %s4937_s15 = smov 0   ;;  %s4939_s16 = smov 0  }
   0xe   :  { %s4941_s17 = smov 0   ;;  %s4943_s18 = smov 0  }
   0xf   :  { %s4945_s19 = smov 0   ;;  %s4947_s20 = smov 0  }
  0x10 LB: > { %s6784_s11 = sadd.s32 4294967295, %s4838_s20   ;;  %p4041_p0 = scmp.ge.s32.totalorder %s4838_s20, 1  ;;  %s4838_s20 = sphi %s4947_s20, %s33_s20   ;;  %s4834_s19 = sphi %s4945_s19, %s7320_s19   ;;  %s4830_s18 = sphi %s4943_s18, %s7319_s18   ;;  %s4826_s17 = sphi %s4941_s17, %s7318_s17   ;;  %s4822_s16 = sphi %s4939_s16, %s7317_s16   ;;  %s4818_s15 = sphi %s4937_s15, %s7316_s15  }
  0x11   : > { %p4971_p1 = scmp.eq.s32.totalorder %s6784_s11, 0  ;;  %p377_p2 = scmp.lt.s32.totalorder %s4838_s20, 3 }
  0x12   : > { %s4840_s23 = smov [#allocation12]   ;;  %s4841_s26 = smov [#allocation15]  }
  0x13   : > { %p4976_p3 = pnand %p4041_p0, %p377_p2  ;;  %s389_s24 = sshll.u32 %s4840_s23, 4  ;;  %s390_s24 = int_to_ptr.vmem [resolvable:$true] %s389_s24 }
  0x14   : > { %s418_s27 = sshll.u32 %s4841_s26, 4  ;;  %s4842_s28 = smov [#allocation18]   ;;  %s419_s27 = int_to_ptr.vmem [resolvable:$true] %s418_s27 }
  0x15   : > { %p4253_p4 = pneg %p4976_p3  ;;  %s447_s29 = sshll.u32 %s4842_s28, 4  ;;  %s448_s29 = int_to_ptr.vmem [resolvable:$true] %s447_s29 }
  0x16   : > { %s4575_s23 = scalar_lea.vmem %s390_s24, 1024  ;;  %p4583_p10 = scmp.lt.s32.totalorder %s390_s24, %s390_s24 }
  0x17   : > { %p4984_p5 = pnand %p4253_p4, %p4971_p1  ;;  %p4576_p7 = scmp.ne.s32.totalorder %s390_s24, %s4575_s23 }
  0x18   : > { %p4584_p11 = scmp.lt.s32.totalorder %s4575_s23, %s4575_s23 }
  0x19   : > { %p4990_p6 = pneg %p4984_p5 }
  0x1a   : > { %p4585_p12 = por %p4584_p11, %p4583_p10 }
  0x1b   : > { %p4578_p8 = pnand %p4576_p7, %p4990_p6 }
  0x1d   : > { %p4579_p9 = pneg %p4578_p8 }
  0x1f   : > { %p4586_p13 = pnand %p4585_p12, %p4579_p9 }
  0x21   : > { %4589 = shalt.err (!%p4586_p13)
}
  0x22   : > { %s4843_s26 = smov 512   ;;  %s4844_s28 = smov 32  }
  0x23   : > { %s6964_s1 = sld [smem:[#allocation69_spill]]  ;;  %s4601_s13 = scalar_lea.vmem %s419_s27, 8192 }
  0x24   : > { %p4602_p0 = scmp.ne.s32.totalorder %s419_s27, %s4601_s13  ;;  %p4609_p7 = scmp.lt.s32.totalorder %s419_s27, %s419_s27 }
  0x25   : > { %p4610_p8 = scmp.lt.s32.totalorder %s4601_s13, %s4601_s13 }
  0x26   : > { %p4604_p2 = pnand %p4602_p0, %p4990_p6 }
  0x27   : > { %p4611_p9 = por %p4610_p8, %p4609_p7 }
  0x28   : > { %p4605_p4 = pneg %p4604_p2 }
  0x29   : > { %4256 = dma.hbm_to_vmem [thread:$0]  (!%p4984_p5), %s6964_s1, 1024, %s390_s24, [#allocation13], %s4843_s26, %s4843_s26, %s4844_s28  }
  0x2a   : > { %p4612_p10 = pnand %p4611_p9, %p4605_p4 }
  0x2c   : > { %4615 = shalt.err (!%p4612_p10)
}
  0x2d   : > { %s6965_s4 = sld [smem:[#allocation71_spill]]  ;;  %s4627_s14 = scalar_lea.vmem %s448_s29, 8192 }
  0x2e   : > { %p4628_p11 = scmp.ne.s32.totalorder %s448_s29, %s4627_s14  ;;  %p4635_p0 = scmp.lt.s32.totalorder %s448_s29, %s448_s29 }
  0x2f   : > { %p4636_p2 = scmp.lt.s32.totalorder %s4627_s14, %s4627_s14 }
  0x30   : > { %p4630_p12 = pnand %p4628_p11, %p4990_p6 }
  0x31   : > { %p4637_p4 = por %p4636_p2, %p4635_p0 }
  0x32   : > { %p4631_p13 = pneg %p4630_p12 }
  0x33   : > { %4262 = dma.hbm_to_vmem [thread:$0]  (!%p4984_p5), %s6965_s4, 8192, %s419_s27, [#allocation16], %s4843_s26, %s4843_s26, %s4844_s28  }
  0x34   : > { %p4638_p7 = pnand %p4637_p4, %p4631_p13 }
  0x36   : > { %4641 = shalt.err (!%p4638_p7)
}
  0x37   : > { %4268 = dma.hbm_to_vmem [thread:$0]  (!%p4984_p5), %s6776_s7, 8192, %s448_s29, [#allocation19], %s4843_s26, %s4843_s26, %s4844_s28  }
  0x38   : > { %s4845_s11 = smov [#allocation14]   ;;  %s4846_s27 = smov [#allocation17]  }
  0x39   : > { %s402_s24 = sshll.u32 %s4845_s11, 4  ;;  %s431_s23 = sshll.u32 %s4846_s27, 4  ;;  %s403_s24 = int_to_ptr.vmem [resolvable:$true] %s402_s24  ;;  %s432_s23 = int_to_ptr.vmem [resolvable:$true] %s431_s23 }
  0x3a   : > { %s4653_s1 = scalar_lea.vmem %s403_s24, 8192  ;;  %p4661_p11 = scmp.lt.s32.totalorder %s403_s24, %s403_s24 }
  0x3b   : > { %p4654_p8 = scmp.ne.s32.totalorder %s403_s24, %s4653_s1  ;;  %p4662_p12 = scmp.lt.s32.totalorder %s4653_s1, %s4653_s1 }
  0x3d   : > { %p4656_p9 = pnand %p4654_p8, %p4990_p6  ;;  %p4663_p13 = por %p4662_p12, %p4661_p11 }
  0x3f   : > { %p4657_p10 = pneg %p4656_p9 }
  0x41   : > { %p4664_p0 = pnand %p4663_p13, %p4657_p10 }
  0x43   : > { %4667 = shalt.err (!%p4664_p0)
}
  0x44   : > { %s6966_s2 = sld [smem:[#allocation70_spill]]  ;;  %s4679_s13 = scalar_lea.vmem %s432_s23, 8192 }
  0x45   : > { %p4680_p2 = scmp.ne.s32.totalorder %s432_s23, %s4679_s13  ;;  %p4687_p8 = scmp.lt.s32.totalorder %s432_s23, %s432_s23 }
  0x46   : > { %p4688_p9 = scmp.lt.s32.totalorder %s4679_s13, %s4679_s13 }
  0x47   : > { %p4682_p4 = pnand %p4680_p2, %p4990_p6 }
  0x48   : > { %p4689_p10 = por %p4688_p9, %p4687_p8 }
  0x49   : > { %p4683_p7 = pneg %p4682_p4 }
  0x4a   : > { %4259 = dma.hbm_to_vmem [thread:$0]  (!%p4984_p5), %s6966_s2, 8192, %s403_s24, [#allocation13], %s4843_s26, %s4843_s26, %s4844_s28  }
  0x4b   : > { %p4690_p11 = pnand %p4689_p10, %p4683_p7 }
  0x4d   : > { %4693 = shalt.err (!%p4690_p11)
}
  0x4e   : > { %s6967_s5 = sld [smem:[#allocation72_spill]]  ;;  %s4847_s11 = smov [#allocation20]  }
  0x4f   : > { %s460_s24 = sshll.u32 %s4847_s11, 4  ;;  %s461_s24 = int_to_ptr.vmem [resolvable:$true] %s460_s24 }
  0x50   : > { %s4705_s27 = scalar_lea.vmem %s461_s24, 8192  ;;  %p4713_p2 = scmp.lt.s32.totalorder %s461_s24, %s461_s24 }
  0x51   : > { %p4706_p12 = scmp.ne.s32.totalorder %s461_s24, %s4705_s27  ;;  %p4714_p4 = scmp.lt.s32.totalorder %s4705_s27, %s4705_s27 }
  0x53   : > { %p4708_p13 = pnand %p4706_p12, %p4990_p6  ;;  %p4715_p7 = por %p4714_p4, %p4713_p2 }
  0x54   : > { %4265 = dma.hbm_to_vmem [thread:$0]  (!%p4984_p5), %s6967_s5, 8192, %s432_s23, [#allocation16], %s4843_s26, %s4843_s26, %s4844_s28  }
  0x55   : > { %p4709_p0 = pneg %p4708_p13 }
  0x57   : > { %p4716_p8 = pnand %p4715_p7, %p4709_p0 }
  0x59   : > { %4719 = shalt.err (!%p4716_p8)
}
  0x5a   : > { %4271 = dma.hbm_to_vmem [thread:$0]  (!%p4984_p5), %s6777_s8, 8192, %s461_s24, [#allocation19], %s4843_s26, %s4843_s26, %s4844_s28  }
  0x5b   : > { %s42_s25 = sadd.s32 1, %s4834_s19  ;;  %s54_s30 = sadd.s32 1, %s4826_s17 }
  0x5c   : > { %p43_p6 = scmp.ge.s32.totalorder %s42_s25, 2  ;;  %p61_p9 = scmp.ne.s32.totalorder %s4826_s17, %s4822_s16 }
  0x5d   : > { %p62_p10 = scmp.eq.s32.totalorder %s4838_s20, 0  ;;  %p67_p11 = scmp.ne.s32.totalorder %s4822_s16, %s4818_s15 }
  0x5e   : > { %s7322_s25 = smov (%p43_p6, %s42_s25), 0  ;;  %p4282_p5 = scmp.lt.s32.totalorder %s4838_s20, 2 }
  0x5f   : > { %p5063_p12 = por %p62_p10, %p61_p9  ;;  %p5069_p13 = por %p4971_p1, %p67_p11 }
  0x60   : > { %s49_s26 = ssub.s32 %s4834_s19, %s7322_s25  ;;  %s489_s28 = sand.u32 1, %s4826_s17  }
  0x61   : > { %p52_p0 = scmp.eq.s32.totalorder %s49_s26, 0  ;;  %s4049_s1 = sshll.u32 %s489_s28, 5 }
  0x62   : > { %s4112_s15 = sshll.u32 %s4834_s19, 9  ;;  %s493_s29 = scalar_lea.vmem [#allocation9], %s4049_s1 }
  0x63   : > { %s5078_s12 = scalar_select %p52_p0, %s4826_s17, %s54_s30  }
  0x64   : > { %s500_s27 = scalar_lea.hbm %s6769_s0, %s4112_s15  ;;  %s501_s23 = sshll.u32 %s493_s29, 4  ;;  %s502_s23 = int_to_ptr.vmem [resolvable:$true] %s501_s23 }
  0x65   : > { %p5086_p2 = pnand %p4282_p5, %p5063_p12  ;;  %s490_s4 = scalar_lea.sflag [#allocation10], %s489_s28 }
  0x66   : > { %s4733_s26 = scalar_lea.vmem %s502_s23, 512  ;;  %s4848_s30 = smov [#allocation9]  }
  0x67   : > { %p4722_p4 = pneg %p5086_p2  ;;  %p4734_p7 = scmp.ne.s32.totalorder %s502_s23, %s4733_s26 }
  0x68   : > { %s4738_s5 = sshll.u32 %s4848_s30, 4  ;;  %s4739_s5 = int_to_ptr.vmem [resolvable:$false] %s4738_s5 }
  0x69   : > { %p4736_p8 = pnand %p4734_p7, %p4722_p4  ;;  %s4740_s15 = scalar_lea.vmem %s4739_s5, 1024 }
  0x6a   : > { %p4741_p9 = scmp.lt.s32.totalorder %s502_s23, %s4739_s5  ;;  %p4742_p10 = scmp.lt.s32.totalorder %s4740_s15, %s4733_s26 }
  0x6b   : > { %p4737_p6 = pneg %p4736_p8 }
  0x6c   : > { %p4743_p11 = por %p4742_p10, %p4741_p9 }
  0x6e   : > { %p4744_p0 = pnand %p4743_p11, %p4737_p6 }
  0x70   : > { %4747 = shalt.err (!%p4744_p0)
}
  0x71   : > { %s4849_s14 = smov 128   ;;  %s4850_s1 = smov 8  }
  0x72   : > { %4275 = dma.hbm_to_vmem [thread:$0]  (!%p5086_p2), %s500_s27, 512, %s502_s23, %s490_s4, %s4849_s14, %s4849_s14, %s4850_s1  }
  0x73   : > { %513 = sbr.rel (%p4976_p3) target bundleno = 3896 (0xf38), region = 76 }
  0x78   : > { %s515_s28 = sand.u32 1, %s4822_s16  }
  0x79   : > { %s4053_s11 = sshll.u32 %s515_s28, 5  ;;  %s516_s24 = scalar_lea.sflag [#allocation10], %s515_s28 }
  0x7a   : > { %s5097_s29 = scalar_lea.vmem [#allocation9], %s4053_s11 }
  0x7b   : > { %4797 = dma.done.wait (%p5069_p13), %s516_s24, 512  }
  0x7c   : > { %4799 = vsyncadd (%p5069_p13), %s516_s24, 4294966784 }
  0x7d   : > { %4801 = dma.done.wait (%p4971_p1), [#allocation13], 9216  }
  0x7e   : > { %4803 = vsyncadd (%p4971_p1), [#allocation13], 4294958080 }
  0x7f   : > { %4805 = dma.done.wait (%p4971_p1), [#allocation16], 16384  }
  0x80   : > { %4807 = vsyncadd (%p4971_p1), [#allocation16], 4294950912 }
  0x81   : > { %4809 = dma.done.wait (%p4971_p1), [#allocation19], 16384  }
  0x82   : > { %4811 = vsyncadd (%p4971_p1), [#allocation19], 4294950912  ;;  %p4060_p3 = scmp.ne.s32.totalorder %s4830_s18, 0 }
  0x84   : > { %587 = sbr.rel (%p4060_p3) target bundleno = 143 (0x8f), region = 108 }
  0x89   : > { %vm594_vm0 = vcmask 7168   ;;  %v4851_v1 = vmov 0.0   ;;  %v4852_v2 = vmov -inf  }
  0x8a   : > { %588 = vst [vmem:[#allocation2 + $0x10] sm:$0xff] %v4851_v1  ;;  %589 = vst [vmem:[#allocation2] sm:$0xff] %v4851_v1 }
  0x8b   : > { %590 = vst [vmem:[#allocation2 + $0x8] sm:$0xff] %v4851_v1  ;;  %591 = vst [vmem:[#allocation3 + $0x8] sm:$0xff] %v4851_v1 }
  0x8c   : > { %592 = vst [vmem:[#allocation3] sm:$0xff] %v4851_v1  ;;  %593 = vst [vmem:[#allocation3 + $0x10] sm:$0xff] %v4851_v1 }
  0x8d   : > { %597 = vst [vmem:[#allocation7] sm:$0xff] %v4851_v1  ;;  %595 = vst.msk [vmem:[#allocation5] sm:$0xff] %vm594_vm0, %v4852_v2 }
  0x8e   : > { %596 = vst.msk [vmem:[#allocation6] sm:$0xff] %vm594_vm0, %v4851_v1 }
  0x8f PF: > { %v607_v3 = vld [vmem:[#allocation12 + $0x28] sm:$0xff]  ;;  %v606_v5 = vld [vmem:[#allocation12 + $0x20] sm:$0xff]  ;;  %vm632_vm1 = vcmask 130048   ;;  %v609_v12 = vld [vmem:[#allocation12 + $0x38] sm:$0xff]  ;;  %v6790_v14 = vmov 0.0   ;;  %vm3732_vm2 = vcmask 7168  }
  0x90   : > { %v5116_v4 = vld [vmem:[#allocation14 + $0x1e8] sm:$0xff]  ;;  %673 = vmatprep.subr.mxu1 %v607_v3  ;;  %v5119_v6 = vld [vmem:[#allocation14 + $0x1e0] sm:$0xff]  ;;  %709 = vmatprep.mubr.f32.mxu1 %v6790_v14  ;;  %v608_v15 = vld [vmem:[#allocation12 + $0x30] sm:$0xff]  ;;  %p4106_p1 = scmp.ne.s32.totalorder %s4830_s18, 1 }
  0x91   : > { %6971 = vst [vmem:[#allocation27_spill] sm:$0xff] %v5116_v4  ;;  %889 = vmatprep.subr.mxu0 %v5116_v4  ;;  %v603_v7 = vld [vmem:[#allocation12 + $0x8] sm:$0xff]  ;;  %674 = vmatpush1.msra.mxu1 %v606_v5  ;;  %v602_v9 = vld [vmem:[#allocation12] sm:$0xff]  ;;  %v605_v22 = vld [vmem:[#allocation12 + $0x18] sm:$0xff]  ;;  %s7311_s27 = sld [smem:[#allocation73_spill]] (!%p4106_p1) }
  0x92   : > { %v5121_v8 = vld [vmem:[#allocation14 + $0x1c8] sm:$0xff]  ;;  %890 = vmatpush1.msra.mxu0 %v5119_v6  ;;  %v5124_v10 = vld [vmem:[#allocation14 + $0x1c0] sm:$0xff]  ;;  %675 = vmatprep.subr.mxu1 %v603_v7  ;;  %v604_v24 = vld [vmem:[#allocation12 + $0x10] sm:$0xff]  ;;  %s7312_s22 = sld [smem:[#allocation74_spill]] (!%p4106_p1) }
  0x93   : > { %6972 = vst [vmem:[#allocation28_spill] sm:$0xff] %v5124_v10  ;;  %v5127_v11 = vld [vmem:[%s5097_s29] sm:$0xff]  ;;  %891 = vmatprep.subr.mxu0 %v5121_v8  ;;  %v5130_v13 = vld [vmem:[#allocation14 + $0x1a8] sm:$0xff]  ;;  %676 = vmatpush1.msra.mxu1 %v602_v9  ;;  %v5163_v26 = vld [vmem:[%s5097_s29 + $0x10] sm:$0xff] }
  0x94   : > { %6973 = vst [vmem:[#allocation29_spill] sm:$0xff] %v5130_v13  ;;  %v5133_v16 = vld [vmem:[#allocation14 + $0x1a0] sm:$0xff]  ;;  %892 = vmatpush1.msra.mxu0 %v5124_v10  ;;  %4061 = vmatmul.mubr.msk.f32.vlgmr.msra.gmra.mxu1 %vm632_vm1, %v5127_v11  ;;  %v5138_v17 = vld [vmem:[#allocation14 + $0x188] sm:$0xff]  ;;  %v5171_v29 = vld [vmem:[#allocation14 + $0x1f8] sm:$0xff] }
  0x95   : > { %762 = vmatprep.subr.mxu1 %v609_v12  ;;  %893 = vmatprep.subr.mxu0 %v5130_v13  ;;  %v5141_v18 = vld [vmem:[#allocation14 + $0x180] sm:$0xff]  ;;  %v5144_v19 = vld [vmem:[%s5097_s29 + $0x8] sm:$0xff]  ;;  %6974 = vst [vmem:[#allocation30_spill] sm:$0xff] %v5171_v29  ;;  %v5183_v32 = vld [vmem:[%s5097_s29 + $0x18] sm:$0xff] }
  0x96   : > { %763 = vmatpush1.msra.mxu1 %v608_v15  ;;  %894 = vmatpush1.msra.mxu0 %v5133_v16  ;;  %v5147_v20 = vld [vmem:[#allocation14 + $0x168] sm:$0xff]  ;;  %v5151_v21 = vld [vmem:[#allocation14 + $0x160] sm:$0xff]  ;;  %v5205_v38 = vld [vmem:[#allocation14 + $0x1f0] sm:$0xff] }
  0x97   : > { %895 = vmatprep.subr.mxu0 %v5138_v17  ;;  %715 = vmatprep.mubr.f32.mxu1 %v6790_v14  ;;  %v5156_v23 = vld [vmem:[#allocation14 + $0x148] sm:$0xff]  ;;  %v5160_v25 = vld [vmem:[#allocation14 + $0x140] sm:$0xff]  ;;  %v5210_v40 = vld [vmem:[#allocation14 + $0x1d8] sm:$0xff] }
  0x98   : > { %896 = vmatpush1.msra.mxu0 %v5141_v18  ;;  %4062 = vmatmul.mubr.msk.f32.gmra.mxu1 %vm632_vm1, %v5144_v19  ;;  %v5166_v27 = vld [vmem:[#allocation14 + $0x128] sm:$0xff]  ;;  %v5169_v28 = vld [vmem:[#allocation14 + $0x120] sm:$0xff]  ;;  %v5217_v42 = vld [vmem:[#allocation14 + $0x1d0] sm:$0xff] }
  0x99   : > { %897 = vmatprep.subr.mxu0 %v5147_v20  ;;  %721 = vmatprep.mubr.f32.mxu1 %v6790_v14  ;;  %v5176_v30 = vld [vmem:[#allocation14 + $0x108] sm:$0xff]  ;;  %v5180_v31 = vld [vmem:[#allocation14 + $0x100] sm:$0xff]  ;;  %v5223_v44 = vld [vmem:[#allocation14 + $0x1b8] sm:$0xff] }
  0x9a   : > { %898 = vmatpush1.msra.mxu0 %v5151_v21  ;;  %764 = vmatprep.subr.mxu1 %v605_v22  ;;  %v5186_v33 = vld [vmem:[#allocation14 + $0xe8] sm:$0xff]  ;;  %v5190_v34 = vld [vmem:[#allocation14 + $0xe0] sm:$0xff]  ;;  %v5229_v46 = vld [vmem:[#allocation14 + $0x1b0] sm:$0xff] }
  0x9b   : > { %899 = vmatprep.subr.mxu0 %v5156_v23  ;;  %765 = vmatpush1.msra.mxu1 %v604_v24  ;;  %v5196_v35 = vld [vmem:[#allocation14 + $0xc8] sm:$0xff]  ;;  %v5200_v36 = vld [vmem:[#allocation14 + $0xc0] sm:$0xff]  ;;  %v5235_v48 = vld [vmem:[#allocation14 + $0x198] sm:$0xff] }
  0x9c   : > { %900 = vmatpush1.msra.mxu0 %v5160_v25  ;;  %4063 = vmatmul.mubr.msk.f32.gmra.mxu1 %vm632_vm1, %v5163_v26  ;;  %v5203_v37 = vld [vmem:[#allocation14 + $0xa8] sm:$0xff]  ;;  %v5208_v39 = vld [vmem:[#allocation14 + $0xa0] sm:$0xff]  ;;  %v5241_v50 = vld [vmem:[#allocation14 + $0x190] sm:$0xff] }
  0x9d   : > { %901 = vmatprep.subr.mxu0 %v5166_v27  ;;  %727 = vmatprep.mubr.f32.mxu1 %v6790_v14  ;;  %v5215_v41 = vld [vmem:[#allocation14 + $0x88] sm:$0xff]  ;;  %v5221_v43 = vld [vmem:[#allocation14 + $0x80] sm:$0xff]  ;;  %v5247_v52 = vld [vmem:[#allocation14 + $0x178] sm:$0xff] }
  0x9e   : > { %902 = vmatpush1.msra.mxu0 %v5169_v28  ;;  %960 = vmatprep.subr.mxu1 %v5171_v29  ;;  %6975 = vst [vmem:[#allocation31_spill] sm:$0xff] %v5221_v43  ;;  %v5227_v45 = vld [vmem:[#allocation14 + $0x68] sm:$0xff]  ;;  %v5233_v47 = vld [vmem:[#allocation14 + $0x60] sm:$0xff]  ;;  %v5253_v54 = vld [vmem:[#allocation14 + $0x170] sm:$0xff] }
  0x9f   : > { %903 = vmatprep.subr.mxu0 %v5176_v30  ;;  %953 = vmatprep.mubr.f32.mxu0 %v6790_v14  ;;  %6976 = vst [vmem:[#allocation32_spill] sm:$0xff] %v5227_v45  ;;  %6977 = vst [vmem:[#allocation33_spill] sm:$0xff] %v5233_v47  ;;  %v5239_v49 = vld [vmem:[#allocation14 + $0x48] sm:$0xff]  ;;  %v5245_v51 = vld [vmem:[#allocation14 + $0x40] sm:$0xff] }
  0xa0   : > { %904 = vmatpush1.msra.mxu0 %v5180_v31  ;;  %4064 = vmatmul.mubr.msk.f32.gmra.mxu1 %vm632_vm1, %v5183_v32  ;;  %6978 = vst [vmem:[#allocation34_spill] sm:$0xff] %v5239_v49  ;;  %6979 = vst [vmem:[#allocation35_spill] sm:$0xff] %v5245_v51  ;;  %v5251_v53 = vld [vmem:[#allocation14 + $0x28] sm:$0xff]  ;;  %v5257_v55 = vld [vmem:[#allocation14 + $0x20] sm:$0xff] }
  0xa1   : > { %905 = vmatprep.subr.mxu0 %v5186_v33  ;;  %798 = vmatprep.mubr.f32.mxu1 %v6790_v14  ;;  %6980 = vst [vmem:[#allocation36_spill] sm:$0xff] %v5251_v53  ;;  %6981 = vst [vmem:[#allocation37_spill] sm:$0xff] %v5257_v55  ;;  %v5259_v56 = vld [vmem:[#allocation14 + $0x158] sm:$0xff]  ;;  %v5263_v57 = vld [vmem:[#allocation14 + $0x8] sm:$0xff] }
  0xa2   : > { %906 = vmatpush1.msra.mxu0 %v5190_v34  ;;  %6982 = vst [vmem:[#allocation38_spill] sm:$0xff] %v5263_v57  ;;  %v5265_v58 = vld [vmem:[#allocation14 + $0x150] sm:$0xff]  ;;  %v5269_v59 = vld [vmem:[#allocation14] sm:$0xff]  ;;  %v5271_v60 = vld [vmem:[#allocation14 + $0x138] sm:$0xff] }
  0xa3   : > { %907 = vmatprep.subr.mxu0 %v5196_v35  ;;  %6983 = vst [vmem:[#allocation39_spill] sm:$0xff] %v5269_v59  ;;  %v887_v61 = vld [vmem:[#allocation2 + $0x10] sm:$0xff]  ;;  %v5275_v62 = vld [vmem:[#allocation14 + $0x130] sm:$0xff]  ;;  %v5279_v63 = vld [vmem:[#allocation14 + $0x118] sm:$0xff] }
  0xa4   : > { %908 = vmatpush1.msra.mxu0 %v5200_v36  ;;  %4065 = vmatmul.mubr.msk.f32.vlgmr.msra.gmra.mxu1 %vm632_vm1, %v5127_v11  ;;  %v5283_v0 = vld [vmem:[#allocation14 + $0x110] sm:$0xff]  ;;  %v5286_v1 = vld [vmem:[#allocation14 + $0xf8] sm:$0xff] }
  0xa5   : > { %909 = vmatprep.subr.mxu0 %v5203_v37  ;;  %961 = vmatpush1.msra.mxu1 %v5205_v38  ;;  %v5289_v2 = vld [vmem:[#allocation14 + $0xf0] sm:$0xff]  ;;  %v5293_v3 = vld [vmem:[#allocation14 + $0xd8] sm:$0xff] }
  0xa6   : > { %910 = vmatpush1.msra.mxu0 %v5208_v39  ;;  %962 = vmatprep.subr.mxu1 %v5210_v40  ;;  %v5299_v5 = vld [vmem:[#allocation14 + $0xd0] sm:$0xff]  ;;  %v5302_v7 = vld [vmem:[#allocation14 + $0xb8] sm:$0xff] }
  0xa7   : > { %911 = vmatprep.subr.mxu0 %v5215_v41  ;;  %963 = vmatpush1.msra.mxu1 %v5217_v42  ;;  %v5306_v9 = vld [vmem:[#allocation14 + $0xb0] sm:$0xff]  ;;  %v5310_v11 = vld [vmem:[#allocation14 + $0x98] sm:$0xff] }
  0xa8   : > { %912 = vmatpush1.msra.mxu0 %v5221_v43  ;;  %964 = vmatprep.subr.mxu1 %v5223_v44  ;;  %6984 = vst [vmem:[#allocation40_spill] sm:$0xff] %v5310_v11  ;;  %v5316_v12 = vld [vmem:[#allocation14 + $0x90] sm:$0xff]  ;;  %v5319_v15 = vld [vmem:[#allocation14 + $0x78] sm:$0xff] }
  0xa9   : > { %913 = vmatprep.subr.mxu0 %v5227_v45  ;;  %965 = vmatpush1.msra.mxu1 %v5229_v46  ;;  %6985 = vst [vmem:[#allocation41_spill] sm:$0xff] %v5316_v12  ;;  %6986 = vst [vmem:[#allocation42_spill] sm:$0xff] %v5319_v15  ;;  %v5327_v22 = vld [vmem:[#allocation14 + $0x58] sm:$0xff]  ;;  %v5333_v24 = vld [vmem:[#allocation14 + $0x50] sm:$0xff] }
  0xaa   : > { %914 = vmatpush1.msra.mxu0 %v5233_v47  ;;  %966 = vmatprep.subr.mxu1 %v5235_v48  ;;  %6988 = vst [vmem:[#allocation44_spill] sm:$0xff] %v5327_v22  ;;  %6989 = vst [vmem:[#allocation45_spill] sm:$0xff] %v5333_v24 }
  0xab   : > { %915 = vmatprep.subr.mxu0 %v5239_v49  ;;  %967 = vmatpush1.msra.mxu1 %v5241_v50 }
  0xac   : > { %916 = vmatpush1.msra.mxu0 %v5245_v51  ;;  %968 = vmatprep.subr.mxu1 %v5247_v52 }
  0xad   : > { %917 = vmatprep.subr.mxu0 %v5251_v53  ;;  %969 = vmatpush1.msra.mxu1 %v5253_v54 }
  0xae   : > { %918 = vmatpush1.msra.mxu0 %v5257_v55  ;;  %970 = vmatprep.subr.mxu1 %v5259_v56 }
  0xaf   : > { %919 = vmatprep.subr.mxu0 %v5263_v57  ;;  %971 = vmatpush1.msra.mxu1 %v5265_v58 }
  0xb0   : > { %920 = vmatpush1.msra.mxu0 %v5269_v59  ;;  %972 = vmatprep.subr.mxu1 %v5271_v60 }
  0xb1   : > { %954 = vmatmul.mubr.f32.vlgmr.msra.gmra.mxu0 %v887_v61  ;;  %973 = vmatpush1.msra.mxu1 %v5275_v62 }
  0xb2   : > { %974 = vmatprep.subr.mxu1 %v5279_v63  ;;  %804 = vmatprep.mubr.f32.mxu1 %v6790_v14 }
  0xb3   : > { %975 = vmatpush1.msra.mxu1 %v5283_v0  ;;  %1060 = vmatprep.subr.mxu0 %v5116_v4 }
  0xb4   : > { %976 = vmatprep.subr.mxu1 %v5286_v1  ;;  %4066 = vmatmul.mubr.msk.f32.gmra.mxu1 %vm632_vm1, %v5144_v19  ;;  %v5323_v19 = vld [vmem:[#allocation14 + $0x70] sm:$0xff] }
  0xb5   : > { %977 = vmatpush1.msra.mxu1 %v5289_v2  ;;  %810 = vmatprep.mubr.f32.mxu1 %v6790_v14  ;;  %6987 = vst [vmem:[#allocation43_spill] sm:$0xff] %v5323_v19 }
  0xb6   : > { %978 = vmatprep.subr.mxu1 %v5293_v3  ;;  %1061 = vmatpush1.msra.mxu0 %v5119_v6 }
  0xb7   : > { %979 = vmatpush1.msra.mxu1 %v5299_v5  ;;  %1062 = vmatprep.subr.mxu0 %v5121_v8 }
  0xb8   : > { %980 = vmatprep.subr.mxu1 %v5302_v7  ;;  %4067 = vmatmul.mubr.msk.f32.gmra.mxu1 %vm632_vm1, %v5163_v26  ;;  %v5336_v26 = vld [vmem:[#allocation14 + $0x38] sm:$0xff] }
  0xb9   : > { %981 = vmatpush1.msra.mxu1 %v5306_v9  ;;  %816 = vmatprep.mubr.f32.mxu1 %v6790_v14  ;;  %6990 = vst [vmem:[#allocation46_spill] sm:$0xff] %v5336_v26 }
  0xba   : > { %982 = vmatprep.subr.mxu1 %v5310_v11  ;;  %1063 = vmatpush1.msra.mxu0 %v5124_v10  ;;  %v5340_v10 = vld [vmem:[#allocation14 + $0x30] sm:$0xff] }
  0xbb   : > { %983 = vmatpush1.msra.mxu1 %v5316_v12  ;;  %1064 = vmatprep.subr.mxu0 %v5130_v13  ;;  %6991 = vst [vmem:[#allocation47_spill] sm:$0xff] %v5340_v10  ;;  %v5344_v13 = vld [vmem:[#allocation14 + $0x18] sm:$0xff] }
  0xbc   : > { %984 = vmatprep.subr.mxu1 %v5319_v15  ;;  %4068 = vmatmul.mubr.msk.f32.gmra.mxu1 %vm632_vm1, %v5183_v32  ;;  %6992 = vst [vmem:[#allocation48_spill] sm:$0xff] %v5344_v13  ;;  %v5348_v32 = vld [vmem:[#allocation14 + $0x10] sm:$0xff] }
  0xbd   : > { %985 = vmatpush1.msra.mxu1 %v5323_v19  ;;  %1024 = vmatprep.mubr.f32.mxu1 %v6790_v14  ;;  %6993 = vst [vmem:[#allocation49_spill] sm:$0xff] %v5348_v32 }
  0xbe   : > { %986 = vmatprep.subr.mxu1 %v5327_v22  ;;  %1065 = vmatpush1.msra.mxu0 %v5133_v16 }
  0xbf   : > { %987 = vmatpush1.msra.mxu1 %v5333_v24  ;;  %1066 = vmatprep.subr.mxu0 %v5138_v17 }
  0xc0   : > { %988 = vmatprep.subr.mxu1 %v5336_v26  ;;  %1067 = vmatpush1.msra.mxu0 %v5141_v18 }
  0xc1   : > { %989 = vmatpush1.msra.mxu1 %v5340_v10  ;;  %1068 = vmatprep.subr.mxu0 %v5147_v20 }
  0xc2   : > { %990 = vmatprep.subr.mxu1 %v5344_v13  ;;  %1069 = vmatpush1.msra.mxu0 %v5151_v21 }
  0xc3   : > { %991 = vmatpush1.msra.mxu1 %v5348_v32  ;;  %1070 = vmatprep.subr.mxu0 %v5156_v23 }
  0xc4   : > { %1025 = vmatmul.mubr.f32.vlgmr.msra.gmra.mxu1 %v887_v61  ;;  %1131 = vmatprep.subr.mxu1 %v5171_v29  ;;  %v612_v61 = vlaneseq }
  0xc5   : > { %1132 = vmatpush1.msra.mxu1 %v5205_v38  ;;  %1071 = vmatpush1.msra.mxu0 %v5160_v25 }
  0xc6   : > { %1133 = vmatprep.subr.mxu1 %v5210_v40  ;;  %1072 = vmatprep.subr.mxu0 %v5166_v27 }
  0xc7   : > { %1134 = vmatpush1.msra.mxu1 %v5217_v42  ;;  %1073 = vmatpush1.msra.mxu0 %v5169_v28 }
  0xc8   : > { %1135 = vmatprep.subr.mxu1 %v5223_v44  ;;  %1074 = vmatprep.subr.mxu0 %v5176_v30 }
  0xc9   : > { %1136 = vmatpush1.msra.mxu1 %v5229_v46  ;;  %1075 = vmatpush1.msra.mxu0 %v5180_v31 }
  0xca   : > { %1137 = vmatprep.subr.mxu1 %v5235_v48  ;;  %1076 = vmatprep.subr.mxu0 %v5186_v33 }
  0xcb   : > { %1138 = vmatpush1.msra.mxu1 %v5241_v50  ;;  %1077 = vmatpush1.msra.mxu0 %v5190_v34 }
  0xcc   : > { %1139 = vmatprep.subr.mxu1 %v5247_v52  ;;  %1078 = vmatprep.subr.mxu0 %v5196_v35 }
  0xcd   : > { %1140 = vmatpush1.msra.mxu1 %v5253_v54  ;;  %1079 = vmatpush1.msra.mxu0 %v5200_v36 }
  0xce   : > { %1141 = vmatprep.subr.mxu1 %v5259_v56  ;;  %1080 = vmatprep.subr.mxu0 %v5203_v37 }
  0xcf   : > { %1142 = vmatpush1.msra.mxu1 %v5265_v58  ;;  %1081 = vmatpush1.msra.mxu0 %v5208_v39 }
  0xd0   : > { %1143 = vmatprep.subr.mxu1 %v5271_v60  ;;  %1082 = vmatprep.subr.mxu0 %v5215_v41 }
  0xd1   : > { %1144 = vmatpush1.msra.mxu1 %v5275_v62  ;;  %1083 = vmatpush1.msra.mxu0 %v5221_v43 }
  0xd2   : > { %1145 = vmatprep.subr.mxu1 %v5279_v63  ;;  %1084 = vmatprep.subr.mxu0 %v5227_v45 }
  0xd3   : > { %1146 = vmatpush1.msra.mxu1 %v5283_v0  ;;  %1085 = vmatpush1.msra.mxu0 %v5233_v47 }
  0xd4   : > { %1147 = vmatprep.subr.mxu1 %v5286_v1  ;;  %1086 = vmatprep.subr.mxu0 %v5239_v49 }
  0xd5   : > { %1148 = vmatpush1.msra.mxu1 %v5289_v2  ;;  %1087 = vmatpush1.msra.mxu0 %v5245_v51 }
  0xd6   : > { %1149 = vmatprep.subr.mxu1 %v5293_v3  ;;  %1088 = vmatprep.subr.mxu0 %v5251_v53 }
  0xd7   : > { %1150 = vmatpush1.msra.mxu1 %v5299_v5  ;;  %1089 = vmatpush1.msra.mxu0 %v5257_v55 }
  0xd8   : > { %1151 = vmatprep.subr.mxu1 %v5302_v7  ;;  %1090 = vmatprep.subr.mxu0 %v5263_v57 }
  0xd9   : > { %1152 = vmatpush1.msra.mxu1 %v5306_v9  ;;  %1091 = vmatpush1.msra.mxu0 %v5269_v59 }
  0xda   : > { %1153 = vmatprep.subr.mxu1 %v5310_v11  ;;  %1124 = vmatprep.mubr.f32.mxu0 %v6790_v14 }
  0xdb   : > { %1154 = vmatpush1.msra.mxu1 %v5316_v12  ;;  %1195 = vmatprep.mubr.f32.mxu1 %v6790_v14  ;;  %v613_v14 = vshrl.u32 %v612_v61, 7 }
  0xdc   : > { %1155 = vmatprep.subr.mxu1 %v5319_v15  ;;  %1231 = vmatprep.subr.mxu0 %v5116_v4  ;;  %v610_v4 = vld [vmem:[%s6772_s3] sm:$0xf] }
  0xdd   : > { %1156 = vmatpush1.msra.mxu1 %v5323_v19  ;;  %v5414_v59 = vsub.s32 0, %v613_v14  ;;  %v5419_v55 = vsub.s32 1, %v613_v14  ;;  %v5435_v12 = vsub.s32 2, %v613_v14 }
  0xde   : > { %1157 = vmatprep.subr.mxu1 %v5327_v22 }
  0xdf   : > { %1158 = vmatpush1.msra.mxu1 %v5333_v24  ;;  %6994 = vst [vmem:[#allocation50_spill] sm:$0xff] %v5414_v59  ;;  %6995 = vst [vmem:[#allocation51_spill] sm:$0xff] %v5419_v55 }
  0xe0   : > { %1159 = vmatprep.subr.mxu1 %v5336_v26  ;;  %7002 = vst [vmem:[#allocation58_spill] sm:$0xff] %v5435_v12 }
  0xe1   : > { %1160 = vmatpush1.msra.mxu1 %v5340_v10  ;;  %v615_v10 = vrot.slane %v610_v4, %v5414_v59 }
  0xe2   : > { %1161 = vmatprep.subr.mxu1 %v5344_v13  ;;  %v619_v13 = vrot.slane %v610_v4, %v5419_v55  ;;  %v5437_v55 = vsub.s32 3, %v613_v14 }
  0xe3   : > { %1162 = vmatpush1.msra.mxu1 %v5348_v32 }
  0xe4   : > { %1302 = vmatprep.subr.mxu1 %v5171_v29  ;;  %7003 = vst [vmem:[#allocation59_spill] sm:$0xff] %v5437_v55 }
 0x154   : > { %v711_v57 = vpop.f32.mrf.mxu1 }
 0x156   : > { %v713_v26 = vpop.f32.mrf.mxu1 }
 0x158   : > { %v717_v53 = vpop.f32.mrf.mxu1 }
 0x159   : > { %v5423_v32 = vadd.f32 %v717_v53, %v615_v10  ;;  %v712_v53 = vadd.f32 %v711_v57, %v615_v10 }
 0x15a   : > { %v719_v29 = vpop.f32.mrf.mxu1 }
 0x15b   : > { %6996 = vst [vmem:[#allocation52_spill] sm:$0xff] %v5423_v32  ;;  %v5425_v24 = vadd.f32 %v719_v29, %v619_v13 }
 0x15c   : > { %v723_v61 = vpop.f32.mrf.mxu1 }
 0x15d   : > { %6997 = vst [vmem:[#allocation53_spill] sm:$0xff] %v5425_v24  ;;  %v5427_v51 = vadd.f32 %v723_v61, %v615_v10  ;;  %v714_v24 = vadd.f32 %v713_v26, %v619_v13 }
 0x15e   : > { %v725_v22 = vpop.f32.mrf.mxu1 }
 0x15f   : > { %6998 = vst [vmem:[#allocation54_spill] sm:$0xff] %v5427_v51  ;;  %v5429_v49 = vadd.f32 %v725_v22, %v619_v13  ;;  %v623_v51 = vrot.slane %v610_v4, %v5435_v12 }
 0x160   : > { %v729_v19 = vpop.f32.mrf.mxu1 }
 0x161   : > { %6999 = vst [vmem:[#allocation55_spill] sm:$0xff] %v5429_v49  ;;  %v5431_v47 = vadd.f32 %v729_v19, %v615_v10 }
 0x162   : > { %v731_v15 = vpop.f32.mrf.mxu1 }
 0x163   : > { %7000 = vst [vmem:[#allocation56_spill] sm:$0xff] %v5431_v47  ;;  %v5433_v45 = vadd.f32 %v731_v15, %v619_v13  ;;  %v627_v47 = vrot.slane %v610_v4, %v5437_v55 }
 0x164   : > { %v800_v59 = vpop.f32.mrf.mxu1 }
 0x165   : > { %7001 = vst [vmem:[#allocation57_spill] sm:$0xff] %v5433_v45 }
 0x166   : > { %v802_v32 = vpop.f32.mrf.mxu1 }
 0x171   : > { %v955_v29 = vpop.f32.mrf.mxu0 }
 0x172   : > { %v1031_v61 = vadd.f32 %v955_v29, %v712_v53 }
 0x173   : > { %v957_v22 = vpop.f32.mrf.mxu0 }
 0x174   : > { %v4069_v49 = vmul.f32 -1.442695, %v1031_v61  ;;  %v1032_v43 = vadd.f32 %v957_v22, %v714_v24  ;;  %v806_v19 = vpop.f32.mrf.mxu1  ;;  %v801_v22 = vadd.f32 %v800_v59, %v623_v51 }
 0x175   : > { %v5441_v15 = vadd.f32 %v806_v19, %v623_v51 }
 0x176   : > { %4359 = vpow2.f32 %v4069_v49  ;;  %v4070_v45 = vmul.f32 -1.442695, %v1032_v43  ;;  %v808_v11 = vpop.f32.mrf.mxu1 }
 0x177   : > { %v5443_v10 = vadd.f32 %v808_v11, %v627_v47  ;;  %v803_v11 = vadd.f32 %v802_v32, %v627_v47 }
 0x178   : > { %4361 = vpow2.f32 %v4070_v45  ;;  %v812_v14 = vpop.f32.mrf.mxu1 }
 0x179   : > { %v5445_v13 = vadd.f32 %v812_v14, %v623_v51 }
 0x17a   : > { %v814_v57 = vpop.f32.mrf.mxu1 }
 0x17b   : > { %7004 = vst [vmem:[#allocation60_spill] sm:$0xff] %v5445_v13  ;;  %v5447_v26 = vadd.f32 %v814_v57, %v627_v47 }
 0x17c   : > { %v818_v53 = vpop.f32.mrf.mxu1 }
 0x17d   : > { %7005 = vst [vmem:[#allocation61_spill] sm:$0xff] %v5447_v26  ;;  %v5449_v29 = vadd.f32 %v818_v53, %v623_v51 }
 0x17e   : > { %v820_v24 = vpop.f32.mrf.mxu1 }
 0x17f   : > { %7006 = vst [vmem:[#allocation62_spill] sm:$0xff] %v5449_v29  ;;  %v5451_v61 = vadd.f32 %v820_v24, %v627_v47  ;;  %v888_v29 = vld [vmem:[#allocation3 + $0x8] sm:$0xff] }
 0x181   : > { %7007 = vst [vmem:[#allocation63_spill] sm:$0xff] %v5451_v61 }
 0x183   : > { %v4360_v4 = vpop.eup %4359 }
 0x184   : > { %v1038_v49 = vadd.f32 1.0, %v4360_v4  ;;  %v1026_v43 = vpop.f32.mrf.mxu1 }
 0x185   : > { %v4362_v19 = vpop.eup %4361  ;;  %v1033_v12 = vadd.f32 %v1026_v43, %v801_v22  ;;  %v7014_v22 = vld [vmem:[#allocation32_spill] sm:$0xff]  ;;  %v7016_v43 = vld [vmem:[#allocation33_spill] sm:$0xff] }
 0x186   : > { %4363 = vrcp.f32 %v1038_v49  ;;  %v1044_v45 = vadd.f32 1.0, %v4362_v19  ;;  %v1028_v14 = vpop.f32.mrf.mxu1  ;;  %v7015_v49 = vld [vmem:[#allocation42_spill] sm:$0xff]  ;;  %v7017_v19 = vld [vmem:[#allocation43_spill] sm:$0xff] }
 0x187   : > { %4365 = vtanh.f32 %v1033_v12  ;;  %v1034_v55 = vadd.f32 %v1028_v14, %v803_v11  ;;  %v7018_v11 = vld [vmem:[#allocation34_spill] sm:$0xff]  ;;  %v7020_v14 = vld [vmem:[#allocation35_spill] sm:$0xff] }
 0x188   : > { %4367 = vrcp.f32 %v1044_v45  ;;  %v7019_v45 = vld [vmem:[#allocation44_spill] sm:$0xff] }
 0x189   : > { %v4071_v57 = vmul.f32 -1.442695, %v1034_v55  ;;  %v7009_v55 = vld [vmem:[#allocation28_spill] sm:$0xff] }
 0x18b   : > { %4369 = vpow2.f32 %v4071_v57  ;;  %v7021_v57 = vld [vmem:[#allocation45_spill] sm:$0xff] }
 0x193   : > { %v4364_v53 = vpop.eup %4363 }
 0x194   : > { %v4366_v13 = vpop.eup %4365 }
 0x195   : > { %v4368_v24 = vpop.eup %4367  ;;  %v1055_v61 = vmul.f32 %v4366_v13, %v4364_v53  ;;  %v7010_v13 = vld [vmem:[#allocation29_spill] sm:$0xff]  ;;  %v7022_v53 = vld [vmem:[#allocation36_spill] sm:$0xff] }
 0x196   : > { %v1054_v26 = vmul.f32 %v4368_v24, %v888_v29  ;;  %v7012_v29 = vld [vmem:[#allocation31_spill] sm:$0xff]  ;;  %v7023_v24 = vld [vmem:[#allocation46_spill] sm:$0xff] }
 0x198   : > { %v4370_v51 = vpop.eup %4369  ;;  %v5453_v59 = vadd.f32 %v1055_v61, %v1054_v26  ;;  %v7011_v26 = vld [vmem:[#allocation40_spill] sm:$0xff]  ;;  %v7013_v61 = vld [vmem:[#allocation41_spill] sm:$0xff] }
 0x199   : > { %v1051_v4 = vadd.f32 1.0, %v4370_v51  ;;  %v7024_v51 = vld [vmem:[#allocation37_spill] sm:$0xff] }
 0x19a   : > { %4371 = vtanh.f32 %v5453_v59 }
 0x19b   : > { %4373 = vrcp.f32 %v1051_v4  ;;  %v7025_v4 = vld [vmem:[#allocation47_spill] sm:$0xff] }
 0x1a7   : > { %v4372_v47 = vpop.eup %4371 }
 0x1a8   : > { %v4374_v32 = vpop.eup %4373 }
 0x1a9   : > { %v5456_v12 = vmul.f32 %v4374_v32, %v4372_v47  ;;  %v7026_v47 = vld [vmem:[#allocation38_spill] sm:$0xff]  ;;  %v7027_v32 = vld [vmem:[#allocation48_spill] sm:$0xff] }
 0x1ab   : > { %7008 = vst [vmem:[#allocation64_spill] sm:$0xff] %v5456_v12  ;;  %1125 = vmatmul.mubr.f32.vlgmr.msra.gmra.mxu0 %v5456_v12  ;;  %1196 = vmatmul.mubr.f32.vlgmr.msra.gmra.mxu1 %v5456_v12  ;;  %v7028_v12 = vld [vmem:[#allocation39_spill] sm:$0xff] }
 0x1ac   : > { %1232 = vmatpush1.msra.mxu0 %v5119_v6  ;;  %1303 = vmatpush1.msra.mxu1 %v5205_v38 }
 0x1ad   : > { %1233 = vmatprep.subr.mxu0 %v5121_v8  ;;  %1304 = vmatprep.subr.mxu1 %v5210_v40 }
 0x1ae   : > { %1234 = vmatpush1.msra.mxu0 %v7009_v55  ;;  %1305 = vmatpush1.msra.mxu1 %v5217_v42 }
 0x1af   : > { %1235 = vmatprep.subr.mxu0 %v7010_v13  ;;  %1306 = vmatprep.subr.mxu1 %v5223_v44 }
 0x1b0   : > { %1236 = vmatpush1.msra.mxu0 %v5133_v16  ;;  %1307 = vmatpush1.msra.mxu1 %v5229_v46 }
 0x1b1   : > { %1237 = vmatprep.subr.mxu0 %v5138_v17  ;;  %1308 = vmatprep.subr.mxu1 %v5235_v48 }
 0x1b2   : > { %1238 = vmatpush1.msra.mxu0 %v5141_v18  ;;  %1309 = vmatpush1.msra.mxu1 %v5241_v50 }
 0x1b3   : > { %1239 = vmatprep.subr.mxu0 %v5147_v20  ;;  %1310 = vmatprep.subr.mxu1 %v5247_v52 }
 0x1b4   : > { %1240 = vmatpush1.msra.mxu0 %v5151_v21  ;;  %1311 = vmatpush1.msra.mxu1 %v5253_v54 }
 0x1b5   : > { %1241 = vmatprep.subr.mxu0 %v5156_v23  ;;  %1312 = vmatprep.subr.mxu1 %v5259_v56 }
 0x1b6   : > { %1242 = vmatpush1.msra.mxu0 %v5160_v25  ;;  %1313 = vmatpush1.msra.mxu1 %v5265_v58 }
 0x1b7   : > { %1243 = vmatprep.subr.mxu0 %v5166_v27  ;;  %1314 = vmatprep.subr.mxu1 %v5271_v60 }
 0x1b8   : > { %1244 = vmatpush1.msra.mxu0 %v5169_v28  ;;  %1315 = vmatpush1.msra.mxu1 %v5275_v62 }
 0x1b9   : > { %1245 = vmatprep.subr.mxu0 %v5176_v30  ;;  %1316 = vmatprep.subr.mxu1 %v5279_v63 }
 0x1ba   : > { %1246 = vmatpush1.msra.mxu0 %v5180_v31  ;;  %1317 = vmatpush1.msra.mxu1 %v5283_v0 }
 0x1bb   : > { %1247 = vmatprep.subr.mxu0 %v5186_v33  ;;  %1318 = vmatprep.subr.mxu1 %v5286_v1 }
 0x1bc   : > { %1248 = vmatpush1.msra.mxu0 %v5190_v34  ;;  %1319 = vmatpush1.msra.mxu1 %v5289_v2 }
 0x1bd   : > { %1249 = vmatprep.subr.mxu0 %v5196_v35  ;;  %1320 = vmatprep.subr.mxu1 %v5293_v3 }
 0x1be   : > { %1250 = vmatpush1.msra.mxu0 %v5200_v36  ;;  %1321 = vmatpush1.msra.mxu1 %v5299_v5 }
 0x1bf   : > { %1251 = vmatprep.subr.mxu0 %v5203_v37  ;;  %1322 = vmatprep.subr.mxu1 %v5302_v7 }
 0x1c0   : > { %1252 = vmatpush1.msra.mxu0 %v5208_v39  ;;  %1323 = vmatpush1.msra.mxu1 %v5306_v9 }
 0x1c1   : > { %1253 = vmatprep.subr.mxu0 %v5215_v41  ;;  %1324 = vmatprep.subr.mxu1 %v7011_v26 }
 0x1c2   : > { %1254 = vmatpush1.msra.mxu0 %v7012_v29  ;;  %1325 = vmatpush1.msra.mxu1 %v7013_v61 }
 0x1c3   : > { %1255 = vmatprep.subr.mxu0 %v7014_v22  ;;  %1326 = vmatprep.subr.mxu1 %v7015_v49 }
 0x1c4   : > { %1256 = vmatpush1.msra.mxu0 %v7016_v43  ;;  %1327 = vmatpush1.msra.mxu1 %v7017_v19 }
 0x1c5   : > { %1257 = vmatprep.subr.mxu0 %v7018_v11  ;;  %1328 = vmatprep.subr.mxu1 %v7019_v45  ;;  %v7029_v11 = vmov 0.0   ;;  %v7030_v45 = vld [vmem:[#allocation49_spill] sm:$0xff] }
 0x1c6   : > { %1258 = vmatpush1.msra.mxu0 %v7020_v14  ;;  %1329 = vmatpush1.msra.mxu1 %v7021_v57  ;;  %v7031_v57 = vld [vmem:[#allocation27_spill] sm:$0xff] }
 0x1c7   : > { %1259 = vmatprep.subr.mxu0 %v7022_v53  ;;  %1330 = vmatprep.subr.mxu1 %v7023_v24  ;;  %v7032_v53 = vld [vmem:[#allocation30_spill] sm:$0xff] }
 0x1c8   : > { %1260 = vmatpush1.msra.mxu0 %v7024_v51  ;;  %1331 = vmatpush1.msra.mxu1 %v7025_v4  ;;  %v7033_v51 = vld [vmem:[#allocation52_spill] sm:$0xff] }
 0x1c9   : > { %1261 = vmatprep.subr.mxu0 %v7026_v47  ;;  %1332 = vmatprep.subr.mxu1 %v7027_v32  ;;  %v7034_v47 = vld [vmem:[#allocation53_spill] sm:$0xff] }
 0x1ca   : > { %1262 = vmatpush1.msra.mxu0 %v7028_v12  ;;  %1295 = vmatprep.mubr.f32.mxu0 %v7029_v11 }
 0x1cb   : > { %1333 = vmatpush1.msra.mxu1 %v7030_v45  ;;  %1366 = vmatprep.mubr.f32.mxu1 %v7029_v11 }
 0x1cc   : > { %1402 = vmatprep.subr.mxu0 %v7031_v57  ;;  %1473 = vmatprep.subr.mxu1 %v7032_v53 }
 0x26b   : > { %v1126_v24 = vpop.f32.mrf.mxu0  ;;  %v1197_v32 = vpop.f32.mrf.mxu1 }
 0x26c   : > { %v1202_v14 = vadd.f32 %v1126_v24, %v7033_v51  ;;  %v1204_v11 = vadd.f32 %v1197_v32, %v5441_v15 }
 0x26d   : > { %v1128_v4 = vpop.f32.mrf.mxu0  ;;  %v1199_v49 = vpop.f32.mrf.mxu1 }
 0x26e   : > { %v4072_v19 = vmul.f32 -1.442695, %v1202_v14  ;;  %v1203_v43 = vadd.f32 %v1128_v4, %v7034_v47  ;;  %v1205_v45 = vadd.f32 %v1199_v49, %v5443_v10 }
 0x270   : > { %4375 = vpow2.f32 %v4072_v19  ;;  %v4073_v12 = vmul.f32 -1.442695, %v1203_v43  ;;  %v4074_v22 = vmul.f32 -1.442695, %v1205_v45 }
 0x272   : > { %4377 = vpow2.f32 %v4073_v12 }
 0x273   : > { %4379 = vtanh.f32 %v1204_v11 }
 0x274   : > { %4381 = vpow2.f32 %v4074_v22 }
 0x27d   : > { %v4376_v57 = vpop.eup %4375 }
 0x27e   : > { %v1209_v61 = vadd.f32 1.0, %v4376_v57  ;;  %v1639_v57 = vld [vmem:[#allocation15 + $0x1e0] sm:$0xff] }
 0x27f   : > { %v4378_v53 = vpop.eup %4377 }
 0x280   : > { %4383 = vrcp.f32 %v1209_v61  ;;  %v1215_v24 = vadd.f32 1.0, %v4378_v53  ;;  %v4380_v14 = vpop.eup %4379  ;;  %v1641_v53 = vld [vmem:[#allocation15 + $0x1f0] sm:$0xff] }
 0x281   : > { %v4382_v51 = vpop.eup %4381 }
 0x282   : > { %4385 = vrcp.f32 %v1215_v24  ;;  %v1222_v12 = vadd.f32 1.0, %v4382_v51  ;;  %v1636_v24 = vld [vmem:[#allocation15 + $0x1c8] sm:$0xff]  ;;  %v1635_v51 = vld [vmem:[#allocation15 + $0x1c0] sm:$0xff] }
 0x284   : > { %4387 = vrcp.f32 %v1222_v12  ;;  %v1631_v12 = vld [vmem:[#allocation15 + $0x1a0] sm:$0xff] }
 0x28d   : > { %v4384_v19 = vpop.eup %4383 }
 0x28e   : > { %v1226_v4 = vmul.f32 %v4384_v19, %v4380_v14  ;;  %v1638_v14 = vld [vmem:[#allocation15 + $0x1d8] sm:$0xff]  ;;  %v1637_v19 = vld [vmem:[#allocation15 + $0x1d0] sm:$0xff] }
 0x28f   : > { %v4386_v43 = vpop.eup %4385 }
 0x290   : > { %v1225_v47 = vmul.f32 %v4386_v43, %v5453_v59  ;;  %v1634_v43 = vld [vmem:[#allocation15 + $0x1b8] sm:$0xff] }
 0x291   : > { %v4388_v15 = vpop.eup %4387 }
 0x292   : > { %v5531_v10 = vadd.f32 %v1226_v4, %v1225_v47  ;;  %v1632_v4 = vld [vmem:[#allocation15 + $0x1a8] sm:$0xff]  ;;  %v1633_v47 = vld [vmem:[#allocation15 + $0x1b0] sm:$0xff] }
 0x294   : > { %4389 = vtanh.f32 %v5531_v10 }
 0x2a1   : > { %v4390_v49 = vpop.eup %4389 }
 0x2a2   : > { %v5534_v11 = vmul.f32 %v4390_v49, %v4388_v15  ;;  %v1630_v15 = vld [vmem:[#allocation15 + $0x198] sm:$0xff]  ;;  %v1627_v49 = vld [vmem:[#allocation15 + $0x180] sm:$0xff] }
 0x2a4   : > { %1296 = vmatmul.mubr.f32.vlgmr.msra.gmra.mxu0 %v5534_v11  ;;  %1367 = vmatmul.mubr.f32.vlgmr.msra.gmra.mxu1 %v5534_v11 }
 0x2a5   : > { %1403 = vmatpush1.msra.mxu0 %v5119_v6  ;;  %1474 = vmatpush1.msra.mxu1 %v5205_v38  ;;  %v7035_v6 = vld [vmem:[#allocation41_spill] sm:$0xff]  ;;  %v1640_v38 = vld [vmem:[#allocation15 + $0x1e8] sm:$0xff] }
 0x2a6   : > { %1404 = vmatprep.subr.mxu0 %v5121_v8  ;;  %1475 = vmatprep.subr.mxu1 %v5210_v40  ;;  %v7036_v8 = vld [vmem:[#allocation32_spill] sm:$0xff] }
 0x2a7   : > { %1405 = vmatpush1.msra.mxu0 %v7009_v55  ;;  %1476 = vmatpush1.msra.mxu1 %v5217_v42 }
 0x2a8   : > { %1406 = vmatprep.subr.mxu0 %v7010_v13  ;;  %1477 = vmatprep.subr.mxu1 %v5223_v44 }
 0x2a9   : > { %1407 = vmatpush1.msra.mxu0 %v5133_v16  ;;  %1478 = vmatpush1.msra.mxu1 %v5229_v46  ;;  %v7037_v16 = vld [vmem:[#allocation42_spill] sm:$0xff] }
 0x2aa   : > { %1408 = vmatprep.subr.mxu0 %v5138_v17  ;;  %1479 = vmatprep.subr.mxu1 %v5235_v48  ;;  %v7038_v17 = vld [vmem:[#allocation33_spill] sm:$0xff]  ;;  %v7054_v48 = vld [vmem:[#allocation55_spill] sm:$0xff] }
 0x2ab   : > { %1409 = vmatpush1.msra.mxu0 %v5141_v18  ;;  %1480 = vmatpush1.msra.mxu1 %v5241_v50  ;;  %v7039_v18 = vld [vmem:[#allocation43_spill] sm:$0xff] }
 0x2ac   : > { %1410 = vmatprep.subr.mxu0 %v5147_v20  ;;  %1481 = vmatprep.subr.mxu1 %v5247_v52  ;;  %v7040_v20 = vld [vmem:[#allocation34_spill] sm:$0xff] }
 0x2ad   : > { %1411 = vmatpush1.msra.mxu0 %v5151_v21  ;;  %1482 = vmatpush1.msra.mxu1 %v5253_v54  ;;  %v7041_v21 = vld [vmem:[#allocation44_spill] sm:$0xff] }
 0x2ae   : > { %1412 = vmatprep.subr.mxu0 %v5156_v23  ;;  %1483 = vmatprep.subr.mxu1 %v5259_v56  ;;  %v7042_v23 = vld [vmem:[#allocation35_spill] sm:$0xff] }
 0x2af   : > { %1413 = vmatpush1.msra.mxu0 %v5160_v25  ;;  %1484 = vmatpush1.msra.mxu1 %v5265_v58  ;;  %v7043_v25 = vld [vmem:[#allocation45_spill] sm:$0xff] }
 0x2b0   : > { %1414 = vmatprep.subr.mxu0 %v5166_v27  ;;  %1485 = vmatprep.subr.mxu1 %v5271_v60  ;;  %v7044_v27 = vld [vmem:[#allocation36_spill] sm:$0xff]  ;;  %v7055_v58 = vld [vmem:[#allocation61_spill] sm:$0xff] }
 0x2b1   : > { %1415 = vmatpush1.msra.mxu0 %v5169_v28  ;;  %1486 = vmatpush1.msra.mxu1 %v5275_v62  ;;  %v7045_v28 = vld [vmem:[#allocation46_spill] sm:$0xff]  ;;  %v7056_v62 = vld [vmem:[#allocation60_spill] sm:$0xff] }
 0x2b2   : > { %1416 = vmatprep.subr.mxu0 %v5176_v30  ;;  %1487 = vmatprep.subr.mxu1 %v5279_v63  ;;  %v7046_v30 = vld [vmem:[#allocation37_spill] sm:$0xff] }
 0x2b3   : > { %1417 = vmatpush1.msra.mxu0 %v5180_v31  ;;  %1488 = vmatpush1.msra.mxu1 %v5283_v0  ;;  %v7047_v31 = vld [vmem:[#allocation47_spill] sm:$0xff] }
 0x2b4   : > { %1418 = vmatprep.subr.mxu0 %v5186_v33  ;;  %1489 = vmatprep.subr.mxu1 %v5286_v1  ;;  %v7048_v33 = vld [vmem:[#allocation38_spill] sm:$0xff] }
 0x2b5   : > { %1419 = vmatpush1.msra.mxu0 %v5190_v34  ;;  %1490 = vmatpush1.msra.mxu1 %v5289_v2  ;;  %v7049_v34 = vld [vmem:[#allocation48_spill] sm:$0xff] }
 0x2b6   : > { %1420 = vmatprep.subr.mxu0 %v5196_v35  ;;  %1491 = vmatprep.subr.mxu1 %v5293_v3  ;;  %v7050_v35 = vld [vmem:[#allocation39_spill] sm:$0xff] }
 0x2b7   : > { %1421 = vmatpush1.msra.mxu0 %v5200_v36  ;;  %1492 = vmatpush1.msra.mxu1 %v5299_v5  ;;  %v7051_v36 = vld [vmem:[#allocation49_spill] sm:$0xff] }
 0x2b8   : > { %1422 = vmatprep.subr.mxu0 %v5203_v37  ;;  %1493 = vmatprep.subr.mxu1 %v5302_v7  ;;  %v7052_v37 = vmov 0.0  }
 0x2b9   : > { %1423 = vmatpush1.msra.mxu0 %v5208_v39  ;;  %1494 = vmatpush1.msra.mxu1 %v5306_v9  ;;  %v1642_v39 = vld [vmem:[#allocation15 + $0x1f8] sm:$0xff] }
 0x2ba   : > { %1424 = vmatprep.subr.mxu0 %v5215_v41  ;;  %1495 = vmatprep.subr.mxu1 %v7011_v26  ;;  %v7053_v41 = vld [vmem:[#allocation54_spill] sm:$0xff] }
 0x2bb   : > { %1425 = vmatpush1.msra.mxu0 %v7012_v29  ;;  %1496 = vmatpush1.msra.mxu1 %v7035_v6  ;;  %v1629_v6 = vld [vmem:[#allocation15 + $0x190] sm:$0xff] }
 0x2bc   : > { %1426 = vmatprep.subr.mxu0 %v7036_v8  ;;  %1497 = vmatprep.subr.mxu1 %v7037_v16  ;;  %v1624_v8 = vld [vmem:[#allocation15 + $0x168] sm:$0xff]  ;;  %v1626_v16 = vld [vmem:[#allocation15 + $0x178] sm:$0xff] }
 0x2bd   : > { %1427 = vmatpush1.msra.mxu0 %v7038_v17  ;;  %1498 = vmatpush1.msra.mxu1 %v7039_v18  ;;  %v1623_v17 = vld [vmem:[#allocation15 + $0x160] sm:$0xff]  ;;  %v1625_v18 = vld [vmem:[#allocation15 + $0x170] sm:$0xff] }
 0x2be   : > { %1428 = vmatprep.subr.mxu0 %v7040_v20  ;;  %1499 = vmatprep.subr.mxu1 %v7041_v21  ;;  %v1620_v20 = vld [vmem:[#allocation15 + $0x148] sm:$0xff]  ;;  %v1622_v21 = vld [vmem:[#allocation15 + $0x158] sm:$0xff] }
 0x2bf   : > { %1429 = vmatpush1.msra.mxu0 %v7042_v23  ;;  %1500 = vmatpush1.msra.mxu1 %v7043_v25  ;;  %v1619_v23 = vld [vmem:[#allocation15 + $0x140] sm:$0xff]  ;;  %v1621_v25 = vld [vmem:[#allocation15 + $0x150] sm:$0xff] }
 0x2c0   : > { %1430 = vmatprep.subr.mxu0 %v7044_v27  ;;  %1501 = vmatprep.subr.mxu1 %v7045_v28  ;;  %v1616_v27 = vld [vmem:[#allocation15 + $0x128] sm:$0xff]  ;;  %v1618_v28 = vld [vmem:[#allocation15 + $0x138] sm:$0xff] }
 0x2c1   : > { %1431 = vmatpush1.msra.mxu0 %v7046_v30  ;;  %1502 = vmatpush1.msra.mxu1 %v7047_v31  ;;  %v1615_v30 = vld [vmem:[#allocation15 + $0x120] sm:$0xff]  ;;  %v1617_v31 = vld [vmem:[#allocation15 + $0x130] sm:$0xff] }
 0x2c2   : > { %1432 = vmatprep.subr.mxu0 %v7048_v33  ;;  %1503 = vmatprep.subr.mxu1 %v7049_v34  ;;  %v1612_v33 = vld [vmem:[#allocation15 + $0x108] sm:$0xff]  ;;  %v1614_v34 = vld [vmem:[#allocation15 + $0x118] sm:$0xff] }
 0x2c3   : > { %1433 = vmatpush1.msra.mxu0 %v7050_v35  ;;  %1504 = vmatpush1.msra.mxu1 %v7051_v36  ;;  %v1611_v35 = vld [vmem:[#allocation15 + $0x100] sm:$0xff]  ;;  %v1613_v36 = vld [vmem:[#allocation15 + $0x110] sm:$0xff] }
 0x2c4   : > { %1466 = vmatprep.mubr.f32.mxu0 %v7052_v37  ;;  %1537 = vmatprep.mubr.f32.mxu1 %v7052_v37 }
 0x2c5   : > { %1665 = vmatprep.subr.mxu0 %v1640_v38  ;;  %1754 = vmatprep.subr.mxu1 %v1642_v39  ;;  %v1608_v38 = vld [vmem:[#allocation15 + $0xe8] sm:$0xff]  ;;  %v1610_v39 = vld [vmem:[#allocation15 + $0xf8] sm:$0xff] }
 0x364   : > { %v1297_v40 = vpop.f32.mrf.mxu0  ;;  %v1368_v52 = vpop.f32.mrf.mxu1 }
 0x365   : > { %v1373_v42 = vadd.f32 %v1297_v40, %v7053_v41  ;;  %v1375_v63 = vadd.f32 %v1368_v52, %v7056_v62  ;;  %v1607_v40 = vld [vmem:[#allocation15 + $0xe0] sm:$0xff]  ;;  %v1609_v41 = vld [vmem:[#allocation15 + $0xf0] sm:$0xff]  ;;  %v1602_v52 = vld [vmem:[#allocation15 + $0xb8] sm:$0xff] }
 0x366   : > { %v1299_v44 = vpop.f32.mrf.mxu0  ;;  %v1370_v56 = vpop.f32.mrf.mxu1  ;;  %v1595_v62 = vld [vmem:[#allocation15 + $0x80] sm:$0xff] }
 0x367   : > { %v4075_v46 = vmul.f32 -1.442695, %v1373_v42  ;;  %v1374_v50 = vadd.f32 %v1299_v44, %v7054_v48  ;;  %v1376_v60 = vadd.f32 %v1370_v56, %v7055_v58  ;;  %v1604_v42 = vld [vmem:[#allocation15 + $0xc8] sm:$0xff]  ;;  %v1606_v44 = vld [vmem:[#allocation15 + $0xd8] sm:$0xff]  ;;  %v1605_v48 = vld [vmem:[#allocation15 + $0xd0] sm:$0xff] }
 0x368   : > { %v1601_v56 = vld [vmem:[#allocation15 + $0xb0] sm:$0xff]  ;;  %v1596_v58 = vld [vmem:[#allocation15 + $0x88] sm:$0xff] }
 0x369   : > { %4391 = vpow2.f32 %v4075_v46  ;;  %v4076_v54 = vmul.f32 -1.442695, %v1374_v50  ;;  %v4077_v0 = vmul.f32 -1.442695, %v1376_v60  ;;  %v1603_v46 = vld [vmem:[#allocation15 + $0xc0] sm:$0xff]  ;;  %v1600_v50 = vld [vmem:[#allocation15 + $0xa8] sm:$0xff] }
 0x36a   : > { %v1598_v60 = vld [vmem:[#allocation15 + $0x98] sm:$0xff] }
 0x36b   : > { %4393 = vpow2.f32 %v4076_v54  ;;  %v1599_v54 = vld [vmem:[#allocation15 + $0xa0] sm:$0xff] }
 0x36c   : > { %4395 = vtanh.f32 %v1375_v63  ;;  %v1597_v63 = vld [vmem:[#allocation15 + $0x90] sm:$0xff] }
 0x36d   : > { %4397 = vpow2.f32 %v4077_v0  ;;  %v1592_v0 = vld [vmem:[#allocation15 + $0x68] sm:$0xff] }
 0x376   : > { %v4392_v1 = vpop.eup %4391 }
 0x377   : > { %v1380_v2 = vadd.f32 1.0, %v4392_v1  ;;  %v1594_v1 = vld [vmem:[#allocation15 + $0x78] sm:$0xff] }
 0x378   : > { %v4394_v3 = vpop.eup %4393 }
 0x379   : > { %4399 = vrcp.f32 %v1380_v2  ;;  %v1386_v5 = vadd.f32 1.0, %v4394_v3  ;;  %v4396_v7 = vpop.eup %4395  ;;  %v1591_v2 = vld [vmem:[#allocation15 + $0x60] sm:$0xff]  ;;  %v1593_v3 = vld [vmem:[#allocation15 + $0x70] sm:$0xff] }
 0x37a   : > { %v4398_v9 = vpop.eup %4397 }
 0x37b   : > { %4401 = vrcp.f32 %v1386_v5  ;;  %v1393_v26 = vadd.f32 1.0, %v4398_v9  ;;  %v1588_v5 = vld [vmem:[#allocation15 + $0x48] sm:$0xff]  ;;  %v1587_v9 = vld [vmem:[#allocation15 + $0x40] sm:$0xff] }
 0x37d   : > { %4403 = vrcp.f32 %v1393_v26  ;;  %v1583_v26 = vld [vmem:[#allocation15 + $0x20] sm:$0xff] }
 0x386   : > { %v4400_v59 = vpop.eup %4399 }
 0x387   : > { %v1397_v55 = vmul.f32 %v4400_v59, %v4396_v7  ;;  %v1590_v7 = vld [vmem:[#allocation15 + $0x58] sm:$0xff]  ;;  %v1589_v59 = vld [vmem:[#allocation15 + $0x50] sm:$0xff] }
 0x388   : > { %v4402_v13 = vpop.eup %4401 }
 0x389   : > { %v1396_v29 = vmul.f32 %v4402_v13, %v5531_v10  ;;  %v1628_v10 = vld [vmem:[#allocation15 + $0x188] sm:$0xff]  ;;  %v1586_v13 = vld [vmem:[#allocation15 + $0x38] sm:$0xff] }
 0x38a   : > { %v4404_v22 = vpop.eup %4403 }
 0x38b   : > { %v5607_v61 = vadd.f32 %v1397_v55, %v1396_v29  ;;  %v1584_v55 = vld [vmem:[#allocation15 + $0x28] sm:$0xff]  ;;  %v1585_v29 = vld [vmem:[#allocation15 + $0x30] sm:$0xff] }
 0x38d   : > { %4405 = vtanh.f32 %v5607_v61 }
 0x39a   : > { %v4406_v45 = vpop.eup %4405 }
 0x39b   : > { %v5610_v32 = vmul.f32 %v4406_v45, %v4404_v22  ;;  %v1580_v22 = vld [vmem:[#allocation15 + $0x8] sm:$0xff]  ;;  %v1582_v45 = vld [vmem:[#allocation15 + $0x18] sm:$0xff] }
 0x39d   : > { %1467 = vmatmul.mubr.f32.vlgmr.msra.gmra.mxu0 %v5610_v32  ;;  %1538 = vmatmul.mubr.f32.vlgmr.msra.gmra.mxu1 %v5610_v32 }
 0x39e   : > { %1666 = vmatpush1.msra.mxu0 %v1639_v57  ;;  %1755 = vmatpush1.msra.mxu1 %v1641_v53  ;;  %v1579_v57 = vld [vmem:[#allocation15] sm:$0xff]  ;;  %v1581_v53 = vld [vmem:[#allocation15 + $0x10] sm:$0xff] }
 0x39f   : > { %1667 = vmatprep.subr.mxu0 %v1636_v24  ;;  %1756 = vmatprep.subr.mxu1 %v1638_v14  ;;  %v7057_v24 = vld [vmem:[#allocation64_spill] sm:$0xff]  ;;  %v5628_v14 = vld [vmem:[#allocation17 + $0x1e8] sm:$0xff] }
 0x3a0   : > { %1668 = vmatpush1.msra.mxu0 %v1635_v51  ;;  %1757 = vmatpush1.msra.mxu1 %v1637_v19  ;;  %7058 = vst [vmem:[#allocation28_spill] sm:$0xff] %v5628_v14  ;;  %v5630_v51 = vld [vmem:[#allocation17 + $0x1f8] sm:$0xff]  ;;  %v5636_v19 = vld [vmem:[#allocation17 + $0x1f0] sm:$0xff] }
 0x3a1   : > { %1669 = vmatprep.subr.mxu0 %v1632_v4  ;;  %1758 = vmatprep.subr.mxu1 %v1634_v43  ;;  %7059 = vst [vmem:[#allocation29_spill] sm:$0xff] %v5630_v51  ;;  %v5642_v4 = vld [vmem:[#allocation17 + $0x1d8] sm:$0xff]  ;;  %v5646_v43 = vld [vmem:[#allocation17 + $0x1c0] sm:$0xff] }
 0x3a2   : > { %1670 = vmatpush1.msra.mxu0 %v1631_v12  ;;  %1759 = vmatpush1.msra.mxu1 %v1633_v47  ;;  %v5648_v12 = vld [vmem:[#allocation17 + $0x1d0] sm:$0xff]  ;;  %v5652_v47 = vld [vmem:[#allocation17 + $0x1a8] sm:$0xff] }
 0x3a3   : > { %1671 = vmatprep.subr.mxu0 %v1628_v10  ;;  %1760 = vmatprep.subr.mxu1 %v1630_v15  ;;  %v5654_v10 = vld [vmem:[#allocation17 + $0x1b8] sm:$0xff]  ;;  %v5658_v15 = vld [vmem:[#allocation17 + $0x1a0] sm:$0xff] }
 0x3a4   : > { %1672 = vmatpush1.msra.mxu0 %v1627_v49  ;;  %1761 = vmatpush1.msra.mxu1 %v1629_v6  ;;  %v5660_v49 = vld [vmem:[#allocation17 + $0x1b0] sm:$0xff]  ;;  %v5664_v6 = vld [vmem:[#allocation17 + $0x188] sm:$0xff] }
 0x3a5   : > { %1673 = vmatprep.subr.mxu0 %v1624_v8  ;;  %1762 = vmatprep.subr.mxu1 %v1626_v16  ;;  %v5666_v8 = vld [vmem:[#allocation17 + $0x198] sm:$0xff]  ;;  %v5670_v16 = vld [vmem:[#allocation17 + $0x180] sm:$0xff] }
 0x3a6   : > { %1674 = vmatpush1.msra.mxu0 %v1623_v17  ;;  %1763 = vmatpush1.msra.mxu1 %v1625_v18  ;;  %v5672_v17 = vld [vmem:[#allocation17 + $0x190] sm:$0xff]  ;;  %v5676_v18 = vld [vmem:[#allocation17 + $0x168] sm:$0xff] }
 0x3a7   : > { %1675 = vmatprep.subr.mxu0 %v1620_v20  ;;  %1764 = vmatprep.subr.mxu1 %v1622_v21  ;;  %v5678_v20 = vld [vmem:[#allocation17 + $0x178] sm:$0xff]  ;;  %v5682_v21 = vld [vmem:[#allocation17 + $0x160] sm:$0xff] }
 0x3a8   : > { %1676 = vmatpush1.msra.mxu0 %v1619_v23  ;;  %1765 = vmatpush1.msra.mxu1 %v1621_v25  ;;  %v5684_v23 = vld [vmem:[#allocation17 + $0x170] sm:$0xff]  ;;  %v5688_v25 = vld [vmem:[#allocation17 + $0x148] sm:$0xff] }
 0x3a9   : > { %1677 = vmatprep.subr.mxu0 %v1616_v27  ;;  %1766 = vmatprep.subr.mxu1 %v1618_v28  ;;  %v5690_v27 = vld [vmem:[#allocation17 + $0x158] sm:$0xff]  ;;  %v5694_v28 = vld [vmem:[#allocation17 + $0x140] sm:$0xff] }
 0x3aa   : > { %1678 = vmatpush1.msra.mxu0 %v1615_v30  ;;  %1767 = vmatpush1.msra.mxu1 %v1617_v31  ;;  %v5696_v30 = vld [vmem:[#allocation17 + $0x150] sm:$0xff]  ;;  %v5700_v31 = vld [vmem:[#allocation17 + $0x128] sm:$0xff] }
 0x3ab   : > { %1679 = vmatprep.subr.mxu0 %v1612_v33  ;;  %1768 = vmatprep.subr.mxu1 %v1614_v34  ;;  %v5702_v33 = vld [vmem:[#allocation17 + $0x138] sm:$0xff]  ;;  %v5706_v34 = vld [vmem:[#allocation17 + $0x120] sm:$0xff] }
 0x3ac   : > { %1680 = vmatpush1.msra.mxu0 %v1611_v35  ;;  %1769 = vmatpush1.msra.mxu1 %v1613_v36  ;;  %v5708_v35 = vld [vmem:[#allocation17 + $0x130] sm:$0xff]  ;;  %v5712_v36 = vld [vmem:[#allocation17 + $0x108] sm:$0xff] }
 0x3ad   : > { %1681 = vmatprep.subr.mxu0 %v1608_v38  ;;  %1770 = vmatprep.subr.mxu1 %v1610_v39  ;;  %v5714_v38 = vld [vmem:[#allocation17 + $0x118] sm:$0xff]  ;;  %v5716_v39 = vld [vmem:[#allocation17 + $0x100] sm:$0xff] }
 0x3ae   : > { %1682 = vmatpush1.msra.mxu0 %v1607_v40  ;;  %1771 = vmatpush1.msra.mxu1 %v1609_v41  ;;  %v5720_v40 = vld [vmem:[#allocation17 + $0x110] sm:$0xff]  ;;  %v5722_v41 = vld [vmem:[#allocation17 + $0xe8] sm:$0xff] }
 0x3af   : > { %1683 = vmatprep.subr.mxu0 %v1604_v42  ;;  %1772 = vmatprep.subr.mxu1 %v1606_v44  ;;  %v5724_v42 = vld [vmem:[#allocation17 + $0xf8] sm:$0xff]  ;;  %v5728_v44 = vld [vmem:[#allocation17 + $0xe0] sm:$0xff] }
 0x3b0   : > { %1684 = vmatpush1.msra.mxu0 %v1603_v46  ;;  %1773 = vmatpush1.msra.mxu1 %v1605_v48  ;;  %v5730_v46 = vld [vmem:[#allocation17 + $0xf0] sm:$0xff]  ;;  %v5732_v48 = vld [vmem:[#allocation17 + $0xc8] sm:$0xff] }
 0x3b1   : > { %1685 = vmatprep.subr.mxu0 %v1600_v50  ;;  %1774 = vmatprep.subr.mxu1 %v1602_v52  ;;  %v5736_v50 = vld [vmem:[#allocation17 + $0xd8] sm:$0xff]  ;;  %v5738_v52 = vld [vmem:[#allocation17 + $0xc0] sm:$0xff] }
 0x3b2   : > { %1686 = vmatpush1.msra.mxu0 %v1599_v54  ;;  %1775 = vmatpush1.msra.mxu1 %v1601_v56  ;;  %v5740_v54 = vld [vmem:[#allocation17 + $0xd0] sm:$0xff]  ;;  %v5744_v56 = vld [vmem:[#allocation17 + $0xa8] sm:$0xff] }
 0x3b3   : > { %1687 = vmatprep.subr.mxu0 %v1596_v58  ;;  %1776 = vmatprep.subr.mxu1 %v1598_v60  ;;  %v5746_v58 = vld [vmem:[#allocation17 + $0xb8] sm:$0xff]  ;;  %v5750_v60 = vld [vmem:[#allocation17 + $0xa0] sm:$0xff] }
 0x3b4   : > { %1688 = vmatpush1.msra.mxu0 %v1595_v62  ;;  %1777 = vmatpush1.msra.mxu1 %v1597_v63  ;;  %v5752_v62 = vld [vmem:[#allocation17 + $0xb0] sm:$0xff]  ;;  %v5756_v63 = vld [vmem:[#allocation17 + $0x88] sm:$0xff] }
 0x3b5   : > { %1689 = vmatprep.subr.mxu0 %v1592_v0  ;;  %1778 = vmatprep.subr.mxu1 %v1594_v1  ;;  %7060 = vst [vmem:[#allocation40_spill] sm:$0xff] %v5752_v62  ;;  %7061 = vst [vmem:[#allocation31_spill] sm:$0xff] %v5756_v63  ;;  %v5758_v0 = vld [vmem:[#allocation17 + $0x98] sm:$0xff]  ;;  %v5762_v1 = vld [vmem:[#allocation17 + $0x80] sm:$0xff] }
 0x3b6   : > { %1690 = vmatpush1.msra.mxu0 %v1591_v2  ;;  %1779 = vmatpush1.msra.mxu1 %v1593_v3  ;;  %7062 = vst [vmem:[#allocation27_spill] sm:$0xff] %v5758_v0  ;;  %7063 = vst [vmem:[#allocation30_spill] sm:$0xff] %v5762_v1  ;;  %v5764_v2 = vld [vmem:[#allocation17 + $0x90] sm:$0xff]  ;;  %v5768_v3 = vld [vmem:[#allocation17 + $0x68] sm:$0xff] }
 0x3b7   : > { %1691 = vmatprep.subr.mxu0 %v1588_v5  ;;  %1780 = vmatprep.subr.mxu1 %v1590_v7  ;;  %7064 = vst [vmem:[#allocation52_spill] sm:$0xff] %v5764_v2  ;;  %7065 = vst [vmem:[#allocation53_spill] sm:$0xff] %v5768_v3  ;;  %v5770_v5 = vld [vmem:[#allocation17 + $0x78] sm:$0xff]  ;;  %v5774_v7 = vld [vmem:[#allocation17 + $0x60] sm:$0xff] }
 0x3b8   : > { %1692 = vmatpush1.msra.mxu0 %v1587_v9  ;;  %1781 = vmatpush1.msra.mxu1 %v1589_v59  ;;  %7066 = vst [vmem:[#allocation41_spill] sm:$0xff] %v5770_v5  ;;  %7067 = vst [vmem:[#allocation32_spill] sm:$0xff] %v5774_v7  ;;  %v5776_v9 = vld [vmem:[#allocation17 + $0x70] sm:$0xff]  ;;  %v5780_v59 = vld [vmem:[#allocation17 + $0x48] sm:$0xff] }
 0x3b9   : > { %1693 = vmatprep.subr.mxu0 %v1584_v55  ;;  %1782 = vmatprep.subr.mxu1 %v1586_v13  ;;  %7068 = vst [vmem:[#allocation42_spill] sm:$0xff] %v5776_v9  ;;  %7069 = vst [vmem:[#allocation33_spill] sm:$0xff] %v5780_v59  ;;  %v5782_v55 = vld [vmem:[#allocation17 + $0x58] sm:$0xff]  ;;  %v5786_v13 = vld [vmem:[#allocation17 + $0x40] sm:$0xff] }
 0x3ba   : > { %1694 = vmatpush1.msra.mxu0 %v1583_v26  ;;  %1783 = vmatpush1.msra.mxu1 %v1585_v29  ;;  %7070 = vst [vmem:[#allocation43_spill] sm:$0xff] %v5782_v55  ;;  %7071 = vst [vmem:[#allocation34_spill] sm:$0xff] %v5786_v13  ;;  %v5788_v26 = vld [vmem:[#allocation17 + $0x50] sm:$0xff]  ;;  %v5794_v29 = vld [vmem:[#allocation17 + $0x28] sm:$0xff] }
 0x3bb   : > { %1695 = vmatprep.subr.mxu0 %v1580_v22  ;;  %1784 = vmatprep.subr.mxu1 %v1582_v45  ;;  %7072 = vst [vmem:[#allocation44_spill] sm:$0xff] %v5788_v26  ;;  %7073 = vst [vmem:[#allocation35_spill] sm:$0xff] %v5794_v29  ;;  %v5796_v22 = vld [vmem:[#allocation17 + $0x38] sm:$0xff]  ;;  %v5798_v45 = vld [vmem:[#allocation17 + $0x20] sm:$0xff] }
 0x3bc   : > { %1696 = vmatpush1.msra.mxu0 %v1579_v57  ;;  %1729 = vmatprep.mubr.f32.mxu0 %v7052_v37  ;;  %7074 = vst [vmem:[#allocation45_spill] sm:$0xff] %v5796_v22  ;;  %7075 = vst [vmem:[#allocation36_spill] sm:$0xff] %v5798_v45  ;;  %v5802_v57 = vld [vmem:[#allocation17 + $0x30] sm:$0xff] }
 0x3bd   : > { %1785 = vmatpush1.msra.mxu1 %v1581_v53  ;;  %1818 = vmatprep.mubr.f32.mxu1 %v7052_v37  ;;  %7076 = vst [vmem:[#allocation46_spill] sm:$0xff] %v5802_v57  ;;  %v5804_v53 = vld [vmem:[#allocation17 + $0x8] sm:$0xff] }
 0x3be   : > { %1730 = vmatmul.mubr.f32.vlgmr.msra.gmra.mxu0 %v7057_v24  ;;  %1819 = vmatmul.mubr.f32.vlgmr.msra.gmra.mxu1 %v7057_v24  ;;  %7077 = vst [vmem:[#allocation37_spill] sm:$0xff] %v5804_v53  ;;  %v5806_v24 = vld [vmem:[#allocation17 + $0x18] sm:$0xff] }
 0x3bf   : > { %1735 = vmatprep.mubr.f32.mxu0 %v7052_v37  ;;  %1824 = vmatprep.mubr.f32.mxu1 %v7052_v37  ;;  %7078 = vst [vmem:[#allocation47_spill] sm:$0xff] %v5806_v24 }
 0x3c0   : > { %1911 = vmatprep.subr.mxu0 %v5628_v14  ;;  %1982 = vmatprep.subr.mxu1 %v5630_v51 }
 0x3c1   : > { %1983 = vmatpush1.msra.mxu1 %v5636_v19 }
 0x3c2   : > { %1736 = vmatmul.mubr.f32.gmra.mxu0 %v5534_v11  ;;  %1825 = vmatmul.mubr.f32.gmra.mxu1 %v5534_v11  ;;  %v5634_v11 = vld [vmem:[#allocation17 + $0x1e0] sm:$0xff] }
 0x3c3   : > { %1741 = vmatprep.mubr.f32.mxu0 %v7052_v37  ;;  %1830 = vmatprep.mubr.f32.mxu1 %v7052_v37 }
 0x3c4   : > { %1912 = vmatpush1.msra.mxu0 %v5634_v11  ;;  %1984 = vmatprep.subr.mxu1 %v5642_v4 }
 0x3c5   : > { %1985 = vmatpush1.msra.mxu1 %v5648_v12 }
 0x3c6   : > { %1742 = vmatmul.mubr.f32.gmra.mxu0 %v5610_v32  ;;  %1831 = vmatmul.mubr.f32.gmra.mxu1 %v5610_v32  ;;  %v5640_v32 = vld [vmem:[#allocation17 + $0x1c8] sm:$0xff] }
 0x3c7   : > { %1747 = vmatprep.mubr.f32.mxu0 %v7052_v37  ;;  %1836 = vmatprep.mubr.f32.mxu1 %v7052_v37 }
 0x3c8   : > { %1913 = vmatprep.subr.mxu0 %v5640_v32  ;;  %1986 = vmatprep.subr.mxu1 %v5654_v10 }
 0x3c9   : > { %1914 = vmatpush1.msra.mxu0 %v5646_v43  ;;  %1987 = vmatpush1.msra.mxu1 %v5660_v49 }
 0x3ca   : > { %1915 = vmatprep.subr.mxu0 %v5652_v47  ;;  %1988 = vmatprep.subr.mxu1 %v5666_v8 }
 0x3cb   : > { %1916 = vmatpush1.msra.mxu0 %v5658_v15  ;;  %1989 = vmatpush1.msra.mxu1 %v5672_v17 }
 0x3cc   : > { %1917 = vmatprep.subr.mxu0 %v5664_v6  ;;  %1990 = vmatprep.subr.mxu1 %v5678_v20 }
 0x3cd   : > { %1918 = vmatpush1.msra.mxu0 %v5670_v16  ;;  %1991 = vmatpush1.msra.mxu1 %v5684_v23 }
 0x3ce   : > { %1919 = vmatprep.subr.mxu0 %v5676_v18  ;;  %1992 = vmatprep.subr.mxu1 %v5690_v27 }
 0x3cf   : > { %1920 = vmatpush1.msra.mxu0 %v5682_v21  ;;  %1993 = vmatpush1.msra.mxu1 %v5696_v30 }
 0x3d0   : > { %1921 = vmatprep.subr.mxu0 %v5688_v25  ;;  %1994 = vmatprep.subr.mxu1 %v5702_v33 }
 0x3d1   : > { %1922 = vmatpush1.msra.mxu0 %v5694_v28  ;;  %1995 = vmatpush1.msra.mxu1 %v5708_v35 }
 0x3d2   : > { %1923 = vmatprep.subr.mxu0 %v5700_v31  ;;  %1996 = vmatprep.subr.mxu1 %v5714_v38 }
 0x3d3   : > { %1924 = vmatpush1.msra.mxu0 %v5706_v34  ;;  %1997 = vmatpush1.msra.mxu1 %v5720_v40 }
 0x3d4   : > { %1925 = vmatprep.subr.mxu0 %v5712_v36  ;;  %1998 = vmatprep.subr.mxu1 %v5724_v42 }
 0x3d5   : > { %1926 = vmatpush1.msra.mxu0 %v5716_v39  ;;  %1999 = vmatpush1.msra.mxu1 %v5730_v46 }
 0x3d6   : > { %1927 = vmatprep.subr.mxu0 %v5722_v41  ;;  %2000 = vmatprep.subr.mxu1 %v5736_v50 }
 0x3d7   : > { %1928 = vmatpush1.msra.mxu0 %v5728_v44  ;;  %2001 = vmatpush1.msra.mxu1 %v5740_v54 }
 0x3d8   : > { %1929 = vmatprep.subr.mxu0 %v5732_v48  ;;  %2002 = vmatprep.subr.mxu1 %v5746_v58 }
 0x3d9   : > { %1930 = vmatpush1.msra.mxu0 %v5738_v52  ;;  %2003 = vmatpush1.msra.mxu1 %v5752_v62 }
 0x3da   : > { %1931 = vmatprep.subr.mxu0 %v5744_v56  ;;  %2004 = vmatprep.subr.mxu1 %v5758_v0 }
 0x3db   : > { %1932 = vmatpush1.msra.mxu0 %v5750_v60  ;;  %2005 = vmatpush1.msra.mxu1 %v5764_v2 }
 0x3dc   : > { %1933 = vmatprep.subr.mxu0 %v5756_v63  ;;  %2006 = vmatprep.subr.mxu1 %v5770_v5  ;;  %v7083_v5 = vld [vmem:[#allocation63_spill] sm:$0xff] }
 0x3dd   : > { %1934 = vmatpush1.msra.mxu0 %v5762_v1  ;;  %2007 = vmatpush1.msra.mxu1 %v5776_v9 }
 0x3de   : > { %1935 = vmatprep.subr.mxu0 %v5768_v3  ;;  %2008 = vmatprep.subr.mxu1 %v5782_v55  ;;  %v5810_v55 = vld [vmem:[#allocation17] sm:$0xff] }
 0x3df   : > { %1936 = vmatpush1.msra.mxu0 %v5774_v7  ;;  %2009 = vmatpush1.msra.mxu1 %v5788_v26  ;;  %7079 = vst [vmem:[#allocation38_spill] sm:$0xff] %v5810_v55  ;;  %v7084_v3 = vld [vmem:[#allocation62_spill] sm:$0xff] }
 0x3e0   : > { %1937 = vmatprep.subr.mxu0 %v5780_v59  ;;  %2010 = vmatprep.subr.mxu1 %v5796_v22  ;;  %v5812_v59 = vld [vmem:[#allocation17 + $0x10] sm:$0xff] }
 0x3e1   : > { %1938 = vmatpush1.msra.mxu0 %v5786_v13  ;;  %7080 = vst [vmem:[#allocation48_spill] sm:$0xff] %v5812_v59  ;;  %2011 = vmatpush1.msra.mxu1 %v5802_v57 }
 0x3e2   : > { %1939 = vmatprep.subr.mxu0 %v5794_v29  ;;  %2012 = vmatprep.subr.mxu1 %v5806_v24  ;;  %v7081_v29 = vld [vmem:[#allocation56_spill] sm:$0xff] }
 0x3e3   : > { %1940 = vmatpush1.msra.mxu0 %v5798_v45  ;;  %2013 = vmatpush1.msra.mxu1 %v5812_v59  ;;  %v7082_v45 = vld [vmem:[#allocation57_spill] sm:$0xff] }
 0x3e4   : > { %1941 = vmatprep.subr.mxu0 %v5804_v53  ;;  %2153 = vmatprep.subr.mxu1 %v5630_v51 }
 0x3e5   : > { %1942 = vmatpush1.msra.mxu0 %v5810_v55 }
 0x3e6   : > { %2082 = vmatprep.subr.mxu0 %v5628_v14 }
 0x45d   : > { %v1468_v22 = vpop.f32.mrf.mxu0  ;;  %v1539_v57 = vpop.f32.mrf.mxu1 }
 0x45e   : > { %v1544_v26 = vadd.f32 %v1468_v22, %v7081_v29  ;;  %v1546_v59 = vadd.f32 %v1539_v57, %v7084_v3  ;;  %v7089_v57 = vld [vmem:[#allocation32_spill] sm:$0xff] }
 0x45f   : > { %v1470_v13 = vpop.f32.mrf.mxu0  ;;  %v1541_v24 = vpop.f32.mrf.mxu1 }
 0x460   : > { %v4078_v9 = vmul.f32 -1.442695, %v1544_v26  ;;  %v1545_v7 = vadd.f32 %v1470_v13, %v7082_v45  ;;  %v1547_v55 = vadd.f32 %v1541_v24, %v7083_v5  ;;  %v7090_v24 = vld [vmem:[#allocation42_spill] sm:$0xff] }
 0x462   : > { %4407 = vpow2.f32 %v4078_v9  ;;  %v4079_v53 = vmul.f32 -1.442695, %v1545_v7  ;;  %v4080_v2 = vmul.f32 -1.442695, %v1547_v55  ;;  %v7088_v55 = vld [vmem:[#allocation41_spill] sm:$0xff] }
 0x464   : > { %4409 = vpow2.f32 %v4079_v53 }
 0x465   : > { %4411 = vtanh.f32 %v1546_v59 }
 0x466   : > { %4413 = vpow2.f32 %v4080_v2  ;;  %v7087_v2 = vld [vmem:[#allocation53_spill] sm:$0xff] }
 0x46f   : > { %v4408_v14 = vpop.eup %4407 }
 0x470   : > { %v1551_v1 = vadd.f32 1.0, %v4408_v14 }
 0x471   : > { %v4410_v51 = vpop.eup %4409 }
 0x472   : > { %4415 = vrcp.f32 %v1551_v1  ;;  %v1557_v29 = vadd.f32 1.0, %v4410_v51  ;;  %v4412_v26 = vpop.eup %4411  ;;  %v1908_v51 = vld [vmem:[#allocation2] sm:$0xff] }
 0x473   : > { %v4414_v13 = vpop.eup %4413  ;;  %v7086_v1 = vld [vmem:[#allocation52_spill] sm:$0xff] }
 0x474   : > { %4417 = vrcp.f32 %v1557_v29  ;;  %v1564_v45 = vadd.f32 1.0, %v4414_v13  ;;  %v7091_v29 = vld [vmem:[#allocation33_spill] sm:$0xff]  ;;  %v7093_v13 = vld [vmem:[#allocation34_spill] sm:$0xff] }
 0x476   : > { %4419 = vrcp.f32 %v1564_v45  ;;  %v7097_v45 = vld [vmem:[#allocation36_spill] sm:$0xff] }
 0x47f   : > { %v4416_v9 = vpop.eup %4415 }
 0x480   : > { %v1568_v22 = vmul.f32 %v4416_v9, %v4412_v26  ;;  %v7092_v26 = vld [vmem:[#allocation43_spill] sm:$0xff]  ;;  %v7094_v9 = vld [vmem:[#allocation44_spill] sm:$0xff] }
 0x481   : > { %v4418_v7 = vpop.eup %4417 }
 0x482   : > { %v1567_v53 = vmul.f32 %v4418_v7, %v5607_v61  ;;  %v7085_v61 = vld [vmem:[#allocation30_spill] sm:$0xff]  ;;  %v7096_v7 = vld [vmem:[#allocation45_spill] sm:$0xff] }
 0x483   : > { %v4420_v3 = vpop.eup %4419 }
 0x484   : > { %v1569_v5 = vadd.f32 %v1568_v22, %v1567_v53  ;;  %v7095_v22 = vld [vmem:[#allocation35_spill] sm:$0xff]  ;;  %v7098_v53 = vld [vmem:[#allocation46_spill] sm:$0xff] }
 0x486   : > { %4421 = vtanh.f32 %v1569_v5  ;;  %1574 = vst [vmem:[#allocation3 + $0x8] sm:$0xff] %v1569_v5  ;;  %v7099_v5 = vld [vmem:[#allocation37_spill] sm:$0xff] }
 0x493   : > { %v4422_v14 = vpop.eup %4421 }
 0x494   : > { %v1571_v59 = vmul.f32 %v4422_v14, %v4420_v3  ;;  %v7100_v3 = vld [vmem:[#allocation47_spill] sm:$0xff]  ;;  %v7101_v14 = vld [vmem:[#allocation38_spill] sm:$0xff] }
 0x496   : > { %1573 = vst [vmem:[#allocation2 + $0x10] sm:$0xff] %v1571_v59  ;;  %1748 = vmatmul.mubr.f32.gmra.mxu0 %v1571_v59  ;;  %1837 = vmatmul.mubr.f32.gmra.mxu1 %v1571_v59  ;;  %v7102_v59 = vld [vmem:[#allocation48_spill] sm:$0xff] }
 0x497   : > { %1975 = vmatprep.mubr.f32.mxu0 %v7052_v37  ;;  %2046 = vmatprep.mubr.f32.mxu1 %v7052_v37 }
 0x49a   : > { %1976 = vmatmul.mubr.f32.vlgmr.msra.gmra.mxu0 %v1908_v51  ;;  %2047 = vmatmul.mubr.f32.vlgmr.msra.gmra.mxu1 %v1908_v51  ;;  %v7103_v51 = vld [vmem:[#allocation28_spill] sm:$0xff] }
 0x49b   : > { %2083 = vmatpush1.msra.mxu0 %v5634_v11  ;;  %2154 = vmatpush1.msra.mxu1 %v5636_v19 }
 0x49c   : > { %2084 = vmatprep.subr.mxu0 %v5640_v32  ;;  %2155 = vmatprep.subr.mxu1 %v5642_v4 }
 0x49d   : > { %2085 = vmatpush1.msra.mxu0 %v5646_v43  ;;  %2156 = vmatpush1.msra.mxu1 %v5648_v12 }
 0x49e   : > { %2086 = vmatprep.subr.mxu0 %v5652_v47  ;;  %2157 = vmatprep.subr.mxu1 %v5654_v10 }
 0x49f   : > { %2087 = vmatpush1.msra.mxu0 %v5658_v15  ;;  %2158 = vmatpush1.msra.mxu1 %v5660_v49 }
 0x4a0   : > { %2088 = vmatprep.subr.mxu0 %v5664_v6  ;;  %2159 = vmatprep.subr.mxu1 %v5666_v8 }
 0x4a1   : > { %2089 = vmatpush1.msra.mxu0 %v5670_v16  ;;  %2160 = vmatpush1.msra.mxu1 %v5672_v17 }
 0x4a2   : > { %2090 = vmatprep.subr.mxu0 %v5676_v18  ;;  %2161 = vmatprep.subr.mxu1 %v5678_v20 }
 0x4a3   : > { %2091 = vmatpush1.msra.mxu0 %v5682_v21  ;;  %2162 = vmatpush1.msra.mxu1 %v5684_v23 }
 0x4a4   : > { %2092 = vmatprep.subr.mxu0 %v5688_v25  ;;  %2163 = vmatprep.subr.mxu1 %v5690_v27 }
 0x4a5   : > { %2093 = vmatpush1.msra.mxu0 %v5694_v28  ;;  %2164 = vmatpush1.msra.mxu1 %v5696_v30 }
 0x4a6   : > { %2094 = vmatprep.subr.mxu0 %v5700_v31  ;;  %2165 = vmatprep.subr.mxu1 %v5702_v33 }
 0x4a7   : > { %2095 = vmatpush1.msra.mxu0 %v5706_v34  ;;  %2166 = vmatpush1.msra.mxu1 %v5708_v35 }
 0x4a8   : > { %2096 = vmatprep.subr.mxu0 %v5712_v36  ;;  %2167 = vmatprep.subr.mxu1 %v5714_v38 }
 0x4a9   : > { %2097 = vmatpush1.msra.mxu0 %v5716_v39  ;;  %2168 = vmatpush1.msra.mxu1 %v5720_v40 }
 0x4aa   : > { %2098 = vmatprep.subr.mxu0 %v5722_v41  ;;  %2169 = vmatprep.subr.mxu1 %v5724_v42 }
 0x4ab   : > { %2099 = vmatpush1.msra.mxu0 %v5728_v44  ;;  %2170 = vmatpush1.msra.mxu1 %v5730_v46 }
 0x4ac   : > { %2100 = vmatprep.subr.mxu0 %v5732_v48  ;;  %2171 = vmatprep.subr.mxu1 %v5736_v50 }
 0x4ad   : > { %2101 = vmatpush1.msra.mxu0 %v5738_v52  ;;  %2172 = vmatpush1.msra.mxu1 %v5740_v54 }
 0x4ae   : > { %2102 = vmatprep.subr.mxu0 %v5744_v56  ;;  %2173 = vmatprep.subr.mxu1 %v5746_v58 }
 0x4af   : > { %2103 = vmatpush1.msra.mxu0 %v5750_v60  ;;  %2174 = vmatpush1.msra.mxu1 %v5752_v62 }
 0x4b0   : > { %2104 = vmatprep.subr.mxu0 %v5756_v63  ;;  %2175 = vmatprep.subr.mxu1 %v5758_v0 }
 0x4b1   : > { %2105 = vmatpush1.msra.mxu0 %v7085_v61  ;;  %2176 = vmatpush1.msra.mxu1 %v7086_v1 }
 0x4b2   : > { %2106 = vmatprep.subr.mxu0 %v7087_v2  ;;  %2177 = vmatprep.subr.mxu1 %v7088_v55 }
 0x4b3   : > { %2107 = vmatpush1.msra.mxu0 %v7089_v57  ;;  %2178 = vmatpush1.msra.mxu1 %v7090_v24 }
 0x4b4   : > { %2108 = vmatprep.subr.mxu0 %v7091_v29  ;;  %2179 = vmatprep.subr.mxu1 %v7092_v26 }
 0x4b5   : > { %2109 = vmatpush1.msra.mxu0 %v7093_v13  ;;  %2180 = vmatpush1.msra.mxu1 %v7094_v9 }
 0x4b6   : > { %2110 = vmatprep.subr.mxu0 %v7095_v22  ;;  %2181 = vmatprep.subr.mxu1 %v7096_v7  ;;  %v7104_v22 = vld [vmem:[#allocation29_spill] sm:$0xff]  ;;  %v1731_v7 = vpop.f32.mrf.mxu0 }
 0x4b7   : > { %2111 = vmatpush1.msra.mxu0 %v7097_v45  ;;  %2182 = vmatpush1.msra.mxu1 %v7098_v53  ;;  %v1820_v45 = vpop.f32.mrf.mxu1 }
 0x4b8   : > { %2112 = vmatprep.subr.mxu0 %v7099_v5  ;;  %2183 = vmatprep.subr.mxu1 %v7100_v3  ;;  %v1733_v9 = vpop.f32.mrf.mxu0 }
 0x4b9   : > { %2113 = vmatpush1.msra.mxu0 %v7101_v14  ;;  %2146 = vmatprep.mubr.f32.mxu0 %v7052_v37  ;;  %v1822_v53 = vpop.f32.mrf.mxu1 }
 0x4ba   : > { %2184 = vmatpush1.msra.mxu1 %v7102_v59  ;;  %2217 = vmatprep.mubr.f32.mxu1 %v7052_v37  ;;  %v5895_v13 = vpop.f32.mrf.mxu0  ;;  %v7112_v37 = vld [vmem:[#allocation50_spill] sm:$0xff] }
 0x4bb   : > { %2253 = vmatprep.subr.mxu0 %v7103_v51  ;;  %2324 = vmatprep.subr.mxu1 %v7104_v22  ;;  %7105 = vst [vmem:[#allocation39_spill] sm:$0xff] %v5895_v13  ;;  %v5897_v5 = vpop.f32.mrf.mxu1  ;;  %v1643_v22 = vld [vmem:[%s6775_s6] sm:$0xf] }
 0x4bc   : > { %7106 = vst [vmem:[#allocation49_spill] sm:$0xff] %v5897_v5  ;;  %v5899_v3 = vpop.f32.mrf.mxu0  ;;  %v5913_v29 = vrot.slane %v1643_v22, %v7112_v37 }
 0x4bd   : > { %7107 = vst [vmem:[#allocation54_spill] sm:$0xff] %v5899_v3  ;;  %v5901_v14 = vpop.f32.mrf.mxu1  ;;  %v7116_v3 = vld [vmem:[#allocation51_spill] sm:$0xff] }
 0x4be   : > { %7108 = vst [vmem:[#allocation55_spill] sm:$0xff] %v5901_v14  ;;  %v5903_v26 = vpop.f32.mrf.mxu0  ;;  %7113 = vst [vmem:[#allocation56_spill] sm:$0xff] %v5913_v29  ;;  %v5920_v24 = vrot.slane %v1643_v22, %v7116_v3  ;;  %v7120_v3 = vld [vmem:[#allocation59_spill] sm:$0xff] }
 0x4bf   : > { %7109 = vst [vmem:[#allocation61_spill] sm:$0xff] %v5903_v26  ;;  %v5905_v59 = vpop.f32.mrf.mxu1  ;;  %v5931_v0 = vrot.slane %v1643_v22, %v7120_v3  ;;  %v1910_v3 = vld [vmem:[#allocation3] sm:$0xff] }
 0x4c0   : > { %7110 = vst [vmem:[#allocation60_spill] sm:$0xff] %v5905_v59  ;;  %v5910_v51 = vpop.f32.mrf.mxu0  ;;  %v1732_v59 = vadd.f32 %v1731_v7, %v5913_v29  ;;  %v1734_v55 = vadd.f32 %v1733_v9, %v5920_v24  ;;  %v7122_v7 = vld [vmem:[#allocation58_spill] sm:$0xff] }
 0x4c1   : > { %7111 = vst [vmem:[#allocation64_spill] sm:$0xff] %v5910_v51  ;;  %v5915_v13 = vpop.f32.mrf.mxu1  ;;  %7121 = vst [vmem:[#allocation67_spill] sm:$0xff] %v5931_v0  ;;  %v5935_v29 = vrot.slane %v1643_v22, %v7122_v7 }
 0x4c2   : > { %7114 = vst [vmem:[#allocation57_spill] sm:$0xff] %v5915_v13 }
 0x556   : > { %v5917_v5 = vpop.f32.mrf.mxu0  ;;  %v5922_v14 = vpop.f32.mrf.mxu1 }
 0x557   : > { %7115 = vst [vmem:[#allocation63_spill] sm:$0xff] %v5917_v5  ;;  %7117 = vst [vmem:[#allocation62_spill] sm:$0xff] %v5922_v14 }
 0x558   : > { %v5924_v26 = vpop.f32.mrf.mxu0  ;;  %v5928_v51 = vpop.f32.mrf.mxu1 }
 0x559   : > { %7118 = vst [vmem:[#allocation65_spill] sm:$0xff] %v5924_v26  ;;  %7119 = vst [vmem:[#allocation66_spill] sm:$0xff] %v5928_v51  ;;  %v1823_v26 = vadd.f32 %v1822_v53, %v5931_v0  ;;  %v1821_v51 = vadd.f32 %v1820_v45, %v5935_v29 }
 0x55a   : > { %v1977_v57 = vpop.f32.mrf.mxu0  ;;  %v2048_v5 = vpop.f32.mrf.mxu1 }
 0x55b   : > { %v2053_v37 = vadd.f32 %v1977_v57, %v1732_v59 }
 0x55c   : > { %v1979_v2 = vpop.f32.mrf.mxu0  ;;  %v2050_v14 = vpop.f32.mrf.mxu1 }
 0x55d   : > { %v4081_v1 = vmul.f32 -1.442695, %v2053_v37  ;;  %v2054_v13 = vadd.f32 %v1979_v2, %v1734_v55  ;;  %v2056_v9 = vadd.f32 %v2050_v14, %v1823_v26  ;;  %v2055_v37 = vadd.f32 %v2048_v5, %v1821_v51 }
 0x55f   : > { %4423 = vpow2.f32 %v4081_v1  ;;  %v4082_v61 = vmul.f32 -1.442695, %v2054_v13  ;;  %v4083_v57 = vmul.f32 -1.442695, %v2056_v9  ;;  %v7127_v9 = vld [vmem:[#allocation53_spill] sm:$0xff] }
 0x561   : > { %4425 = vpow2.f32 %v4082_v61 }
 0x562   : > { %4427 = vpow2.f32 %v4083_v57  ;;  %v7128_v57 = vld [vmem:[#allocation41_spill] sm:$0xff] }
 0x56c   : > { %v4424_v59 = vpop.eup %4423 }
 0x56d   : > { %v2060_v2 = vadd.f32 1.0, %v4424_v59  ;;  %v7129_v59 = vld [vmem:[#allocation32_spill] sm:$0xff] }
 0x56e   : > { %v4426_v1 = vpop.eup %4425 }
 0x56f   : > { %4429 = vrcp.f32 %v2060_v2  ;;  %v2066_v55 = vadd.f32 1.0, %v4426_v1  ;;  %v4428_v61 = vpop.eup %4427  ;;  %v7131_v2 = vld [vmem:[#allocation33_spill] sm:$0xff]  ;;  %v7132_v1 = vld [vmem:[#allocation43_spill] sm:$0xff] }
 0x570   : > { %4431 = vtanh.f32 %v2055_v37  ;;  %v2073_v22 = vadd.f32 1.0, %v4428_v61  ;;  %v7130_v37 = vld [vmem:[#allocation42_spill] sm:$0xff]  ;;  %v7134_v61 = vld [vmem:[#allocation44_spill] sm:$0xff] }
 0x571   : > { %4433 = vrcp.f32 %v2066_v55  ;;  %v7133_v55 = vld [vmem:[#allocation34_spill] sm:$0xff] }
 0x572   : > { %4435 = vrcp.f32 %v2073_v22  ;;  %v7137_v22 = vld [vmem:[#allocation36_spill] sm:$0xff] }
 0x57c   : > { %v4430_v13 = vpop.eup %4429 }
 0x57d   : > { %v4432_v53 = vpop.eup %4431 }
 0x57e   : > { %v4434_v0 = vpop.eup %4433  ;;  %v2077_v7 = vmul.f32 %v4432_v53, %v4430_v13  ;;  %v7135_v13 = vld [vmem:[#allocation35_spill] sm:$0xff]  ;;  %v7136_v53 = vld [vmem:[#allocation45_spill] sm:$0xff] }
 0x57f   : > { %v2076_v26 = vmul.f32 %v4434_v0, %v1910_v3  ;;  %v4436_v45 = vpop.eup %4435  ;;  %v7124_v0 = vld [vmem:[#allocation27_spill] sm:$0xff]  ;;  %v7125_v3 = vld [vmem:[#allocation30_spill] sm:$0xff] }
 0x581   : > { %v5938_v14 = vadd.f32 %v2077_v7, %v2076_v26  ;;  %v7126_v7 = vld [vmem:[#allocation52_spill] sm:$0xff]  ;;  %v7138_v26 = vld [vmem:[#allocation46_spill] sm:$0xff] }
 0x583   : > { %4437 = vtanh.f32 %v5938_v14 }
 0x590   : > { %v4438_v5 = vpop.eup %4437 }
 0x591   : > { %v5941_v51 = vmul.f32 %v4438_v5, %v4436_v45  ;;  %v7139_v45 = vld [vmem:[#allocation37_spill] sm:$0xff]  ;;  %v7140_v5 = vld [vmem:[#allocation47_spill] sm:$0xff] }
 0x593   : > { %7123 = vst [vmem:[#allocation68_spill] sm:$0xff] %v5941_v51  ;;  %2147 = vmatmul.mubr.f32.vlgmr.msra.gmra.mxu0 %v5941_v51  ;;  %2218 = vmatmul.mubr.f32.vlgmr.msra.gmra.mxu1 %v5941_v51  ;;  %v7141_v51 = vld [vmem:[#allocation38_spill] sm:$0xff] }
 0x594   : > { %2254 = vmatpush1.msra.mxu0 %v5634_v11  ;;  %2325 = vmatpush1.msra.mxu1 %v5636_v19 }
 0x595   : > { %2255 = vmatprep.subr.mxu0 %v5640_v32  ;;  %2326 = vmatprep.subr.mxu1 %v5642_v4 }
 0x596   : > { %2256 = vmatpush1.msra.mxu0 %v5646_v43  ;;  %2327 = vmatpush1.msra.mxu1 %v5648_v12 }
 0x597   : > { %2257 = vmatprep.subr.mxu0 %v5652_v47  ;;  %2328 = vmatprep.subr.mxu1 %v5654_v10 }
 0x598   : > { %2258 = vmatpush1.msra.mxu0 %v5658_v15  ;;  %2329 = vmatpush1.msra.mxu1 %v5660_v49 }
 0x599   : > { %2259 = vmatprep.subr.mxu0 %v5664_v6  ;;  %2330 = vmatprep.subr.mxu1 %v5666_v8 }
 0x59a   : > { %2260 = vmatpush1.msra.mxu0 %v5670_v16  ;;  %2331 = vmatpush1.msra.mxu1 %v5672_v17 }
 0x59b   : > { %2261 = vmatprep.subr.mxu0 %v5676_v18  ;;  %2332 = vmatprep.subr.mxu1 %v5678_v20 }
 0x59c   : > { %2262 = vmatpush1.msra.mxu0 %v5682_v21  ;;  %2333 = vmatpush1.msra.mxu1 %v5684_v23 }
 0x59d   : > { %2263 = vmatprep.subr.mxu0 %v5688_v25  ;;  %2334 = vmatprep.subr.mxu1 %v5690_v27 }
 0x59e   : > { %2264 = vmatpush1.msra.mxu0 %v5694_v28  ;;  %2335 = vmatpush1.msra.mxu1 %v5696_v30 }
 0x59f   : > { %2265 = vmatprep.subr.mxu0 %v5700_v31  ;;  %2336 = vmatprep.subr.mxu1 %v5702_v33 }
 0x5a0   : > { %2266 = vmatpush1.msra.mxu0 %v5706_v34  ;;  %2337 = vmatpush1.msra.mxu1 %v5708_v35 }
 0x5a1   : > { %2267 = vmatprep.subr.mxu0 %v5712_v36  ;;  %2338 = vmatprep.subr.mxu1 %v5714_v38 }
 0x5a2   : > { %2268 = vmatpush1.msra.mxu0 %v5716_v39  ;;  %2339 = vmatpush1.msra.mxu1 %v5720_v40 }
 0x5a3   : > { %2269 = vmatprep.subr.mxu0 %v5722_v41  ;;  %2340 = vmatprep.subr.mxu1 %v5724_v42 }
 0x5a4   : > { %2270 = vmatpush1.msra.mxu0 %v5728_v44  ;;  %2341 = vmatpush1.msra.mxu1 %v5730_v46 }
 0x5a5   : > { %2271 = vmatprep.subr.mxu0 %v5732_v48  ;;  %2342 = vmatprep.subr.mxu1 %v5736_v50 }
 0x5a6   : > { %2272 = vmatpush1.msra.mxu0 %v5738_v52  ;;  %2343 = vmatpush1.msra.mxu1 %v5740_v54 }
 0x5a7   : > { %2273 = vmatprep.subr.mxu0 %v5744_v56  ;;  %2344 = vmatprep.subr.mxu1 %v5746_v58 }
 0x5a8   : > { %2274 = vmatpush1.msra.mxu0 %v5750_v60  ;;  %2345 = vmatpush1.msra.mxu1 %v5752_v62 }
 0x5a9   : > { %2275 = vmatprep.subr.mxu0 %v5756_v63  ;;  %2346 = vmatprep.subr.mxu1 %v7124_v0  ;;  %v7151_v0 = vld [vmem:[#allocation49_spill] sm:$0xff] }
 0x5aa   : > { %2276 = vmatpush1.msra.mxu0 %v7125_v3  ;;  %2347 = vmatpush1.msra.mxu1 %v7126_v7  ;;  %v7149_v7 = vld [vmem:[#allocation67_spill] sm:$0xff] }
 0x5ab   : > { %2277 = vmatprep.subr.mxu0 %v7127_v9  ;;  %2348 = vmatprep.subr.mxu1 %v7128_v57 }
 0x5ac   : > { %2278 = vmatpush1.msra.mxu0 %v7129_v59  ;;  %2349 = vmatpush1.msra.mxu1 %v7130_v37 }
 0x5ad   : > { %2279 = vmatprep.subr.mxu0 %v7131_v2  ;;  %2350 = vmatprep.subr.mxu1 %v7132_v1  ;;  %v7142_v2 = vmov 0.0   ;;  %v7143_v1 = vld [vmem:[#allocation48_spill] sm:$0xff] }
 0x5ae   : > { %2280 = vmatpush1.msra.mxu0 %v7133_v55  ;;  %2351 = vmatpush1.msra.mxu1 %v7134_v61  ;;  %v7144_v61 = vld [vmem:[#allocation28_spill] sm:$0xff] }
 0x5af   : > { %2281 = vmatprep.subr.mxu0 %v7135_v13  ;;  %2352 = vmatprep.subr.mxu1 %v7136_v53  ;;  %v7145_v13 = vld [vmem:[#allocation29_spill] sm:$0xff]  ;;  %v7146_v53 = vld [vmem:[#allocation56_spill] sm:$0xff] }
 0x5b0   : > { %2282 = vmatpush1.msra.mxu0 %v7137_v22  ;;  %2353 = vmatpush1.msra.mxu1 %v7138_v26  ;;  %v7147_v22 = vld [vmem:[#allocation39_spill] sm:$0xff] }
 0x5b1   : > { %2283 = vmatprep.subr.mxu0 %v7139_v45  ;;  %2354 = vmatprep.subr.mxu1 %v7140_v5  ;;  %v1738_v55 = vadd.f32 %v7147_v22, %v7146_v53  ;;  %v7148_v45 = vld [vmem:[#allocation54_spill] sm:$0xff]  ;;  %v1827_v22 = vadd.f32 %v7151_v0, %v5935_v29 }
 0x5b2   : > { %2284 = vmatpush1.msra.mxu0 %v7141_v51  ;;  %2317 = vmatprep.mubr.f32.mxu0 %v7142_v2  ;;  %v1740_v37 = vadd.f32 %v7148_v45, %v5920_v24 }
 0x5b3   : > { %2355 = vmatpush1.msra.mxu1 %v7143_v1  ;;  %2388 = vmatprep.mubr.f32.mxu1 %v7142_v2 }
 0x5b4   : > { %2424 = vmatprep.subr.mxu0 %v7144_v61  ;;  %2495 = vmatprep.subr.mxu1 %v7145_v13  ;;  %v7150_v61 = vld [vmem:[#allocation55_spill] sm:$0xff] }
 0x5b5   : > { %v1829_v3 = vadd.f32 %v7150_v61, %v7149_v7 }
 0x653   : > { %v2148_v26 = vpop.f32.mrf.mxu0  ;;  %v2219_v9 = vpop.f32.mrf.mxu1 }
 0x654   : > { %v2224_v5 = vadd.f32 %v2148_v26, %v1738_v55  ;;  %v2226_v53 = vadd.f32 %v2219_v9, %v1827_v22 }
 0x655   : > { %v2150_v59 = vpop.f32.mrf.mxu0  ;;  %v2221_v2 = vpop.f32.mrf.mxu1 }
 0x656   : > { %v4084_v51 = vmul.f32 -1.442695, %v2224_v5  ;;  %v2225_v57 = vadd.f32 %v2150_v59, %v1740_v37  ;;  %v2227_v13 = vadd.f32 %v2221_v2, %v1829_v3 }
 0x658   : > { %4439 = vpow2.f32 %v4084_v51  ;;  %v4085_v1 = vmul.f32 -1.442695, %v2225_v57  ;;  %v4086_v63 = vmul.f32 -1.442695, %v2227_v13 }
 0x65a   : > { %4441 = vpow2.f32 %v4085_v1 }
 0x65b   : > { %4443 = vtanh.f32 %v2226_v53 }
 0x65c   : > { %4445 = vpow2.f32 %v4086_v63 }
 0x665   : > { %v4440_v62 = vpop.eup %4439 }
 0x666   : > { %v2231_v45 = vadd.f32 1.0, %v4440_v62 }
 0x667   : > { %v4442_v55 = vpop.eup %4441 }
 0x668   : > { %4447 = vrcp.f32 %v2231_v45  ;;  %v2237_v51 = vadd.f32 1.0, %v4442_v55  ;;  %v4444_v57 = vpop.eup %4443 }
 0x669   : > { %v4446_v59 = vpop.eup %4445 }
 0x66a   : > { %4449 = vrcp.f32 %v2237_v51  ;;  %v2244_v5 = vadd.f32 1.0, %v4446_v59 }
 0x66c   : > { %4451 = vrcp.f32 %v2244_v5 }
 0x675   : > { %v4448_v37 = vpop.eup %4447 }
 0x676   : > { %v2248_v1 = vmul.f32 %v4448_v37, %v4444_v57 }
 0x677   : > { %v4450_v26 = vpop.eup %4449 }
 0x678   : > { %v2247_v3 = vmul.f32 %v4450_v26, %v5938_v14 }
 0x679   : > { %v4452_v62 = vpop.eup %4451 }
 0x67a   : > { %v6020_v2 = vadd.f32 %v2248_v1, %v2247_v3 }
 0x67c   : > { %4453 = vtanh.f32 %v6020_v2 }
 0x689   : > { %v4454_v0 = vpop.eup %4453 }
 0x68a   : > { %v6023_v9 = vmul.f32 %v4454_v0, %v4452_v62 }
 0x68c   : > { %2318 = vmatmul.mubr.f32.vlgmr.msra.gmra.mxu0 %v6023_v9  ;;  %2389 = vmatmul.mubr.f32.vlgmr.msra.gmra.mxu1 %v6023_v9 }
 0x68d   : > { %2425 = vmatpush1.msra.mxu0 %v5634_v11  ;;  %2496 = vmatpush1.msra.mxu1 %v5636_v19  ;;  %v7152_v11 = vld [vmem:[#allocation40_spill] sm:$0xff]  ;;  %v7153_v19 = vld [vmem:[#allocation31_spill] sm:$0xff] }
 0x68e   : > { %2426 = vmatprep.subr.mxu0 %v5640_v32  ;;  %2497 = vmatprep.subr.mxu1 %v5642_v4  ;;  %v7154_v32 = vld [vmem:[#allocation27_spill] sm:$0xff]  ;;  %v7155_v4 = vld [vmem:[#allocation30_spill] sm:$0xff] }
 0x68f   : > { %2427 = vmatpush1.msra.mxu0 %v5646_v43  ;;  %2498 = vmatpush1.msra.mxu1 %v5648_v12  ;;  %v7156_v43 = vld [vmem:[#allocation52_spill] sm:$0xff]  ;;  %v7157_v12 = vld [vmem:[#allocation53_spill] sm:$0xff] }
 0x690   : > { %2428 = vmatprep.subr.mxu0 %v5652_v47  ;;  %2499 = vmatprep.subr.mxu1 %v5654_v10  ;;  %v7158_v47 = vld [vmem:[#allocation41_spill] sm:$0xff]  ;;  %v7159_v10 = vld [vmem:[#allocation32_spill] sm:$0xff] }
 0x691   : > { %2429 = vmatpush1.msra.mxu0 %v5658_v15  ;;  %2500 = vmatpush1.msra.mxu1 %v5660_v49  ;;  %v7160_v15 = vld [vmem:[#allocation42_spill] sm:$0xff]  ;;  %v7161_v49 = vld [vmem:[#allocation33_spill] sm:$0xff] }
 0x692   : > { %2430 = vmatprep.subr.mxu0 %v5664_v6  ;;  %2501 = vmatprep.subr.mxu1 %v5666_v8  ;;  %v7162_v6 = vld [vmem:[#allocation43_spill] sm:$0xff]  ;;  %v7163_v8 = vld [vmem:[#allocation34_spill] sm:$0xff] }
 0x693   : > { %2431 = vmatpush1.msra.mxu0 %v5670_v16  ;;  %2502 = vmatpush1.msra.mxu1 %v5672_v17  ;;  %v7164_v16 = vld [vmem:[#allocation44_spill] sm:$0xff]  ;;  %v7165_v17 = vld [vmem:[#allocation35_spill] sm:$0xff] }
 0x694   : > { %2432 = vmatprep.subr.mxu0 %v5676_v18  ;;  %2503 = vmatprep.subr.mxu1 %v5678_v20  ;;  %v7166_v18 = vld [vmem:[#allocation45_spill] sm:$0xff]  ;;  %v7167_v20 = vld [vmem:[#allocation36_spill] sm:$0xff] }
 0x695   : > { %2433 = vmatpush1.msra.mxu0 %v5682_v21  ;;  %2504 = vmatpush1.msra.mxu1 %v5684_v23  ;;  %v7168_v21 = vld [vmem:[#allocation46_spill] sm:$0xff]  ;;  %v7169_v23 = vld [vmem:[#allocation37_spill] sm:$0xff] }
 0x696   : > { %2434 = vmatprep.subr.mxu0 %v5688_v25  ;;  %2505 = vmatprep.subr.mxu1 %v5690_v27  ;;  %v7170_v25 = vld [vmem:[#allocation47_spill] sm:$0xff]  ;;  %v7171_v27 = vld [vmem:[#allocation38_spill] sm:$0xff] }
 0x697   : > { %2435 = vmatpush1.msra.mxu0 %v5694_v28  ;;  %2506 = vmatpush1.msra.mxu1 %v5696_v30  ;;  %v7172_v28 = vld [vmem:[#allocation48_spill] sm:$0xff]  ;;  %v7173_v30 = vmov 0.0  }
 0x698   : > { %2436 = vmatprep.subr.mxu0 %v5700_v31  ;;  %2507 = vmatprep.subr.mxu1 %v5702_v33  ;;  %v2662_v31 = vld [vmem:[#allocation18 + $0x1e8] sm:$0xff]  ;;  %v2664_v33 = vld [vmem:[#allocation18 + $0x1f8] sm:$0xff] }
 0x699   : > { %2437 = vmatpush1.msra.mxu0 %v5706_v34  ;;  %2508 = vmatpush1.msra.mxu1 %v5708_v35  ;;  %v7174_v34 = vld [vmem:[#allocation56_spill] sm:$0xff]  ;;  %v7175_v35 = vld [vmem:[#allocation61_spill] sm:$0xff] }
 0x69a   : > { %2438 = vmatprep.subr.mxu0 %v5712_v36  ;;  %2509 = vmatprep.subr.mxu1 %v5714_v38  ;;  %v1744_v36 = vadd.f32 %v7175_v35, %v7174_v34  ;;  %v2637_v35 = vld [vmem:[#allocation18 + $0x120] sm:$0xff] }
 0x69b   : > { %2439 = vmatpush1.msra.mxu0 %v5716_v39  ;;  %2510 = vmatpush1.msra.mxu1 %v5720_v40  ;;  %v7176_v39 = vld [vmem:[#allocation64_spill] sm:$0xff] }
 0x69c   : > { %2440 = vmatprep.subr.mxu0 %v5722_v41  ;;  %2511 = vmatprep.subr.mxu1 %v5724_v42  ;;  %v1746_v40 = vadd.f32 %v7176_v39, %v5920_v24  ;;  %v2636_v39 = vld [vmem:[#allocation18 + $0x118] sm:$0xff] }
 0x69d   : > { %2441 = vmatpush1.msra.mxu0 %v5728_v44  ;;  %2512 = vmatpush1.msra.mxu1 %v5730_v46 }
 0x69e   : > { %2442 = vmatprep.subr.mxu0 %v5732_v48  ;;  %2513 = vmatprep.subr.mxu1 %v5736_v50 }
 0x69f   : > { %2443 = vmatpush1.msra.mxu0 %v5738_v52  ;;  %2514 = vmatpush1.msra.mxu1 %v5740_v54  ;;  %v7177_v54 = vld [vmem:[#allocation57_spill] sm:$0xff] }
 0x6a0   : > { %2444 = vmatprep.subr.mxu0 %v5744_v56  ;;  %2515 = vmatprep.subr.mxu1 %v5746_v58  ;;  %v1835_v56 = vadd.f32 %v7177_v54, %v7149_v7  ;;  %v2625_v54 = vld [vmem:[#allocation18 + $0xc0] sm:$0xff] }
 0x6a1   : > { %2445 = vmatpush1.msra.mxu0 %v5750_v60  ;;  %2516 = vmatpush1.msra.mxu1 %v7152_v11  ;;  %v7178_v60 = vld [vmem:[#allocation60_spill] sm:$0xff]  ;;  %v2661_v11 = vld [vmem:[#allocation18 + $0x1e0] sm:$0xff] }
 0x6a2   : > { %2446 = vmatprep.subr.mxu0 %v7153_v19  ;;  %2517 = vmatprep.subr.mxu1 %v7154_v32  ;;  %v1833_v63 = vadd.f32 %v7178_v60, %v5935_v29  ;;  %v2663_v19 = vld [vmem:[#allocation18 + $0x1f0] sm:$0xff]  ;;  %v2658_v32 = vld [vmem:[#allocation18 + $0x1c8] sm:$0xff]  ;;  %v2624_v60 = vld [vmem:[#allocation18 + $0xb8] sm:$0xff] }
 0x6a3   : > { %2447 = vmatpush1.msra.mxu0 %v7155_v4  ;;  %2518 = vmatpush1.msra.mxu1 %v7156_v43  ;;  %v2660_v4 = vld [vmem:[#allocation18 + $0x1d8] sm:$0xff]  ;;  %v2657_v43 = vld [vmem:[#allocation18 + $0x1c0] sm:$0xff] }
 0x6a4   : > { %2448 = vmatprep.subr.mxu0 %v7157_v12  ;;  %2519 = vmatprep.subr.mxu1 %v7158_v47  ;;  %v2659_v12 = vld [vmem:[#allocation18 + $0x1d0] sm:$0xff]  ;;  %v2656_v47 = vld [vmem:[#allocation18 + $0x1b8] sm:$0xff] }
 0x6a5   : > { %2449 = vmatpush1.msra.mxu0 %v7159_v10  ;;  %2520 = vmatpush1.msra.mxu1 %v7160_v15  ;;  %v2653_v10 = vld [vmem:[#allocation18 + $0x1a0] sm:$0xff]  ;;  %v2655_v15 = vld [vmem:[#allocation18 + $0x1b0] sm:$0xff] }
 0x6a6   : > { %2450 = vmatprep.subr.mxu0 %v7161_v49  ;;  %2521 = vmatprep.subr.mxu1 %v7162_v6  ;;  %v2650_v49 = vld [vmem:[#allocation18 + $0x188] sm:$0xff]  ;;  %v2652_v6 = vld [vmem:[#allocation18 + $0x198] sm:$0xff] }
 0x6a7   : > { %2451 = vmatpush1.msra.mxu0 %v7163_v8  ;;  %2522 = vmatpush1.msra.mxu1 %v7164_v16  ;;  %v2649_v8 = vld [vmem:[#allocation18 + $0x180] sm:$0xff]  ;;  %v2651_v16 = vld [vmem:[#allocation18 + $0x190] sm:$0xff] }
 0x6a8   : > { %2452 = vmatprep.subr.mxu0 %v7165_v17  ;;  %2523 = vmatprep.subr.mxu1 %v7166_v18  ;;  %v2646_v17 = vld [vmem:[#allocation18 + $0x168] sm:$0xff]  ;;  %v2648_v18 = vld [vmem:[#allocation18 + $0x178] sm:$0xff] }
 0x6a9   : > { %2453 = vmatpush1.msra.mxu0 %v7167_v20  ;;  %2524 = vmatpush1.msra.mxu1 %v7168_v21  ;;  %v2645_v20 = vld [vmem:[#allocation18 + $0x160] sm:$0xff]  ;;  %v2647_v21 = vld [vmem:[#allocation18 + $0x170] sm:$0xff] }
 0x6aa   : > { %2454 = vmatprep.subr.mxu0 %v7169_v23  ;;  %2525 = vmatprep.subr.mxu1 %v7170_v25  ;;  %v2642_v23 = vld [vmem:[#allocation18 + $0x148] sm:$0xff]  ;;  %v2644_v25 = vld [vmem:[#allocation18 + $0x158] sm:$0xff] }
 0x6ab   : > { %2455 = vmatpush1.msra.mxu0 %v7171_v27  ;;  %2526 = vmatpush1.msra.mxu1 %v7172_v28  ;;  %v2641_v27 = vld [vmem:[#allocation18 + $0x140] sm:$0xff]  ;;  %v2643_v28 = vld [vmem:[#allocation18 + $0x150] sm:$0xff] }
 0x6ac   : > { %2488 = vmatprep.mubr.f32.mxu0 %v7173_v30  ;;  %2559 = vmatprep.mubr.f32.mxu1 %v7173_v30 }
 0x6ad   : > { %2687 = vmatprep.subr.mxu0 %v2662_v31  ;;  %2776 = vmatprep.subr.mxu1 %v2664_v33  ;;  %v2638_v31 = vld [vmem:[#allocation18 + $0x128] sm:$0xff]  ;;  %v2640_v33 = vld [vmem:[#allocation18 + $0x138] sm:$0xff] }
 0x74c   : > { %v2319_v38 = vpop.f32.mrf.mxu0  ;;  %v2390_v48 = vpop.f32.mrf.mxu1 }
 0x74d   : > { %v2395_v41 = vadd.f32 %v2319_v38, %v1744_v36  ;;  %v2397_v14 = vadd.f32 %v2390_v48, %v1833_v63  ;;  %v2639_v36 = vld [vmem:[#allocation18 + $0x130] sm:$0xff]  ;;  %v2634_v38 = vld [vmem:[#allocation18 + $0x108] sm:$0xff]  ;;  %v2621_v63 = vld [vmem:[#allocation18 + $0xa0] sm:$0xff] }
 0x74e   : > { %v2321_v42 = vpop.f32.mrf.mxu0  ;;  %v2392_v52 = vpop.f32.mrf.mxu1  ;;  %v2631_v48 = vld [vmem:[#allocation18 + $0xf0] sm:$0xff] }
 0x74f   : > { %v4087_v44 = vmul.f32 -1.442695, %v2395_v41  ;;  %v2396_v46 = vadd.f32 %v2321_v42, %v1746_v40  ;;  %v2398_v58 = vadd.f32 %v2392_v52, %v1835_v56  ;;  %v2633_v40 = vld [vmem:[#allocation18 + $0x100] sm:$0xff]  ;;  %v2635_v41 = vld [vmem:[#allocation18 + $0x110] sm:$0xff]  ;;  %v2630_v42 = vld [vmem:[#allocation18 + $0xe8] sm:$0xff] }
 0x750   : > { %v2628_v52 = vld [vmem:[#allocation18 + $0xd8] sm:$0xff]  ;;  %v2627_v56 = vld [vmem:[#allocation18 + $0xd0] sm:$0xff] }
 0x751   : > { %4455 = vpow2.f32 %v4087_v44  ;;  %v4088_v50 = vmul.f32 -1.442695, %v2396_v46  ;;  %v4089_v53 = vmul.f32 -1.442695, %v2398_v58  ;;  %v2632_v44 = vld [vmem:[#allocation18 + $0xf8] sm:$0xff]  ;;  %v2629_v46 = vld [vmem:[#allocation18 + $0xe0] sm:$0xff] }
 0x752   : > { %v2622_v58 = vld [vmem:[#allocation18 + $0xa8] sm:$0xff] }
 0x753   : > { %4457 = vpow2.f32 %v4088_v50  ;;  %v2626_v50 = vld [vmem:[#allocation18 + $0xc8] sm:$0xff] }
 0x754   : > { %4459 = vtanh.f32 %v2397_v14  ;;  %v2623_v14 = vld [vmem:[#allocation18 + $0xb0] sm:$0xff] }
 0x755   : > { %4461 = vpow2.f32 %v4089_v53  ;;  %v2618_v53 = vld [vmem:[#allocation18 + $0x88] sm:$0xff] }
 0x75e   : > { %v4456_v61 = vpop.eup %4455 }
 0x75f   : > { %v2402_v13 = vadd.f32 1.0, %v4456_v61  ;;  %v2620_v61 = vld [vmem:[#allocation18 + $0x98] sm:$0xff] }
 0x760   : > { %v4458_v22 = vpop.eup %4457 }
 0x761   : > { %4463 = vrcp.f32 %v2402_v13  ;;  %v2408_v45 = vadd.f32 1.0, %v4458_v22  ;;  %v4460_v55 = vpop.eup %4459  ;;  %v2617_v13 = vld [vmem:[#allocation18 + $0x80] sm:$0xff]  ;;  %v2619_v22 = vld [vmem:[#allocation18 + $0x90] sm:$0xff] }
 0x762   : > { %v4462_v51 = vpop.eup %4461 }
 0x763   : > { %4465 = vrcp.f32 %v2408_v45  ;;  %v2415_v1 = vadd.f32 1.0, %v4462_v51  ;;  %v2614_v45 = vld [vmem:[#allocation18 + $0x68] sm:$0xff]  ;;  %v2613_v51 = vld [vmem:[#allocation18 + $0x60] sm:$0xff] }
 0x765   : > { %4467 = vrcp.f32 %v2415_v1  ;;  %v2609_v1 = vld [vmem:[#allocation18 + $0x40] sm:$0xff] }
 0x76e   : > { %v4464_v57 = vpop.eup %4463 }
 0x76f   : > { %v2419_v59 = vmul.f32 %v4464_v57, %v4460_v55  ;;  %v2616_v55 = vld [vmem:[#allocation18 + $0x78] sm:$0xff]  ;;  %v2615_v57 = vld [vmem:[#allocation18 + $0x70] sm:$0xff] }
 0x770   : > { %v4466_v37 = vpop.eup %4465 }
 0x771   : > { %v2418_v26 = vmul.f32 %v4466_v37, %v6020_v2  ;;  %v2654_v2 = vld [vmem:[#allocation18 + $0x1a8] sm:$0xff]  ;;  %v2612_v37 = vld [vmem:[#allocation18 + $0x58] sm:$0xff] }
 0x772   : > { %v4468_v3 = vpop.eup %4467 }
 0x773   : > { %v6100_v5 = vadd.f32 %v2419_v59, %v2418_v26  ;;  %v2610_v59 = vld [vmem:[#allocation18 + $0x48] sm:$0xff]  ;;  %v2611_v26 = vld [vmem:[#allocation18 + $0x50] sm:$0xff] }
 0x775   : > { %4469 = vtanh.f32 %v6100_v5 }
 0x782   : > { %v4470_v62 = vpop.eup %4469 }
 0x783   : > { %v6103_v0 = vmul.f32 %v4470_v62, %v4468_v3  ;;  %v2606_v3 = vld [vmem:[#allocation18 + $0x28] sm:$0xff]  ;;  %v2608_v62 = vld [vmem:[#allocation18 + $0x38] sm:$0xff] }
 0x785   : > { %2489 = vmatmul.mubr.f32.vlgmr.msra.gmra.mxu0 %v6103_v0  ;;  %2560 = vmatmul.mubr.f32.vlgmr.msra.gmra.mxu1 %v6103_v0 }
 0x786   : > { %2688 = vmatpush1.msra.mxu0 %v2661_v11  ;;  %2777 = vmatpush1.msra.mxu1 %v2663_v19  ;;  %v2605_v11 = vld [vmem:[#allocation18 + $0x20] sm:$0xff]  ;;  %v2607_v19 = vld [vmem:[#allocation18 + $0x30] sm:$0xff] }
 0x787   : > { %2689 = vmatprep.subr.mxu0 %v2658_v32  ;;  %2778 = vmatprep.subr.mxu1 %v2660_v4  ;;  %v2602_v32 = vld [vmem:[#allocation18 + $0x8] sm:$0xff]  ;;  %v2604_v4 = vld [vmem:[#allocation18 + $0x18] sm:$0xff] }
 0x788   : > { %2690 = vmatpush1.msra.mxu0 %v2657_v43  ;;  %2779 = vmatpush1.msra.mxu1 %v2659_v12  ;;  %v2601_v43 = vld [vmem:[#allocation18] sm:$0xff]  ;;  %v2603_v12 = vld [vmem:[#allocation18 + $0x10] sm:$0xff] }
 0x789   : > { %2691 = vmatprep.subr.mxu0 %v2654_v2  ;;  %2780 = vmatprep.subr.mxu1 %v2656_v47  ;;  %v7179_v2 = vld [vmem:[#allocation68_spill] sm:$0xff]  ;;  %v6121_v47 = vld [vmem:[#allocation20 + $0x1e8] sm:$0xff] }
 0x78a   : > { %2692 = vmatpush1.msra.mxu0 %v2653_v10  ;;  %2781 = vmatpush1.msra.mxu1 %v2655_v15  ;;  %7180 = vst [vmem:[#allocation28_spill] sm:$0xff] %v6121_v47  ;;  %v6123_v10 = vld [vmem:[#allocation20 + $0x1f8] sm:$0xff]  ;;  %v6129_v15 = vld [vmem:[#allocation20 + $0x1f0] sm:$0xff] }
 0x78b   : > { %2693 = vmatprep.subr.mxu0 %v2650_v49  ;;  %2782 = vmatprep.subr.mxu1 %v2652_v6  ;;  %7181 = vst [vmem:[#allocation29_spill] sm:$0xff] %v6123_v10  ;;  %v6135_v49 = vld [vmem:[#allocation20 + $0x1d8] sm:$0xff]  ;;  %v6139_v6 = vld [vmem:[#allocation20 + $0x1c0] sm:$0xff] }
 0x78c   : > { %2694 = vmatpush1.msra.mxu0 %v2649_v8  ;;  %2783 = vmatpush1.msra.mxu1 %v2651_v16  ;;  %v6141_v8 = vld [vmem:[#allocation20 + $0x1d0] sm:$0xff]  ;;  %v6145_v16 = vld [vmem:[#allocation20 + $0x1a8] sm:$0xff] }
 0x78d   : > { %2695 = vmatprep.subr.mxu0 %v2646_v17  ;;  %2784 = vmatprep.subr.mxu1 %v2648_v18  ;;  %v6147_v17 = vld [vmem:[#allocation20 + $0x1b8] sm:$0xff]  ;;  %v6151_v18 = vld [vmem:[#allocation20 + $0x1a0] sm:$0xff] }
 0x78e   : > { %2696 = vmatpush1.msra.mxu0 %v2645_v20  ;;  %2785 = vmatpush1.msra.mxu1 %v2647_v21  ;;  %v6153_v20 = vld [vmem:[#allocation20 + $0x1b0] sm:$0xff]  ;;  %v6157_v21 = vld [vmem:[#allocation20 + $0x188] sm:$0xff] }
 0x78f   : > { %2697 = vmatprep.subr.mxu0 %v2642_v23  ;;  %2786 = vmatprep.subr.mxu1 %v2644_v25  ;;  %v6159_v23 = vld [vmem:[#allocation20 + $0x198] sm:$0xff]  ;;  %v6163_v25 = vld [vmem:[#allocation20 + $0x180] sm:$0xff] }
 0x790   : > { %2698 = vmatpush1.msra.mxu0 %v2641_v27  ;;  %2787 = vmatpush1.msra.mxu1 %v2643_v28  ;;  %v6165_v27 = vld [vmem:[#allocation20 + $0x190] sm:$0xff]  ;;  %v6169_v28 = vld [vmem:[#allocation20 + $0x168] sm:$0xff] }
 0x791   : > { %2699 = vmatprep.subr.mxu0 %v2638_v31  ;;  %2788 = vmatprep.subr.mxu1 %v2640_v33  ;;  %v6171_v31 = vld [vmem:[#allocation20 + $0x178] sm:$0xff]  ;;  %v6175_v33 = vld [vmem:[#allocation20 + $0x160] sm:$0xff] }
 0x792   : > { %2700 = vmatpush1.msra.mxu0 %v2637_v35  ;;  %2789 = vmatpush1.msra.mxu1 %v2639_v36  ;;  %v6177_v35 = vld [vmem:[#allocation20 + $0x170] sm:$0xff]  ;;  %v6181_v36 = vld [vmem:[#allocation20 + $0x148] sm:$0xff] }
 0x793   : > { %2701 = vmatprep.subr.mxu0 %v2634_v38  ;;  %2790 = vmatprep.subr.mxu1 %v2636_v39  ;;  %v6183_v38 = vld [vmem:[#allocation20 + $0x158] sm:$0xff]  ;;  %v6187_v39 = vld [vmem:[#allocation20 + $0x140] sm:$0xff] }
 0x794   : > { %2702 = vmatpush1.msra.mxu0 %v2633_v40  ;;  %2791 = vmatpush1.msra.mxu1 %v2635_v41  ;;  %v6189_v40 = vld [vmem:[#allocation20 + $0x150] sm:$0xff]  ;;  %v6193_v41 = vld [vmem:[#allocation20 + $0x128] sm:$0xff] }
 0x795   : > { %2703 = vmatprep.subr.mxu0 %v2630_v42  ;;  %2792 = vmatprep.subr.mxu1 %v2632_v44  ;;  %v6195_v42 = vld [vmem:[#allocation20 + $0x138] sm:$0xff]  ;;  %v6199_v44 = vld [vmem:[#allocation20 + $0x120] sm:$0xff] }
 0x796   : > { %2704 = vmatpush1.msra.mxu0 %v2629_v46  ;;  %2793 = vmatpush1.msra.mxu1 %v2631_v48  ;;  %v6201_v46 = vld [vmem:[#allocation20 + $0x130] sm:$0xff]  ;;  %v6205_v48 = vld [vmem:[#allocation20 + $0x108] sm:$0xff] }
 0x797   : > { %2705 = vmatprep.subr.mxu0 %v2626_v50  ;;  %2794 = vmatprep.subr.mxu1 %v2628_v52  ;;  %v6207_v50 = vld [vmem:[#allocation20 + $0x118] sm:$0xff]  ;;  %v6209_v52 = vld [vmem:[#allocation20 + $0x100] sm:$0xff] }
 0x798   : > { %2706 = vmatpush1.msra.mxu0 %v2625_v54  ;;  %2795 = vmatpush1.msra.mxu1 %v2627_v56  ;;  %v6213_v54 = vld [vmem:[#allocation20 + $0x110] sm:$0xff]  ;;  %v6215_v56 = vld [vmem:[#allocation20 + $0xe8] sm:$0xff] }
 0x799   : > { %2707 = vmatprep.subr.mxu0 %v2622_v58  ;;  %2796 = vmatprep.subr.mxu1 %v2624_v60  ;;  %v6217_v58 = vld [vmem:[#allocation20 + $0xf8] sm:$0xff]  ;;  %v6221_v60 = vld [vmem:[#allocation20 + $0xe0] sm:$0xff] }
 0x79a   : > { %2708 = vmatpush1.msra.mxu0 %v2621_v63  ;;  %2797 = vmatpush1.msra.mxu1 %v2623_v14  ;;  %v6223_v63 = vld [vmem:[#allocation20 + $0xf0] sm:$0xff]  ;;  %v6225_v14 = vld [vmem:[#allocation20 + $0xc8] sm:$0xff] }
 0x79b   : > { %2709 = vmatprep.subr.mxu0 %v2618_v53  ;;  %2798 = vmatprep.subr.mxu1 %v2620_v61  ;;  %v6229_v53 = vld [vmem:[#allocation20 + $0xd8] sm:$0xff]  ;;  %v6231_v61 = vld [vmem:[#allocation20 + $0xc0] sm:$0xff] }
 0x79c   : > { %2710 = vmatpush1.msra.mxu0 %v2617_v13  ;;  %2799 = vmatpush1.msra.mxu1 %v2619_v22  ;;  %v6233_v13 = vld [vmem:[#allocation20 + $0xd0] sm:$0xff]  ;;  %v6237_v22 = vld [vmem:[#allocation20 + $0xa8] sm:$0xff] }
 0x79d   : > { %2711 = vmatprep.subr.mxu0 %v2614_v45  ;;  %2800 = vmatprep.subr.mxu1 %v2616_v55  ;;  %v6239_v45 = vld [vmem:[#allocation20 + $0xb8] sm:$0xff]  ;;  %v6243_v55 = vld [vmem:[#allocation20 + $0xa0] sm:$0xff] }
 0x79e   : > { %2712 = vmatpush1.msra.mxu0 %v2613_v51  ;;  %2801 = vmatpush1.msra.mxu1 %v2615_v57  ;;  %7182 = vst [vmem:[#allocation39_spill] sm:$0xff] %v6243_v55  ;;  %v6245_v51 = vld [vmem:[#allocation20 + $0xb0] sm:$0xff]  ;;  %v6249_v57 = vld [vmem:[#allocation20 + $0x88] sm:$0xff] }
 0x79f   : > { %2713 = vmatprep.subr.mxu0 %v2610_v59  ;;  %2802 = vmatprep.subr.mxu1 %v2612_v37  ;;  %7183 = vst [vmem:[#allocation54_spill] sm:$0xff] %v6245_v51  ;;  %7184 = vst [vmem:[#allocation67_spill] sm:$0xff] %v6249_v57  ;;  %v6251_v59 = vld [vmem:[#allocation20 + $0x98] sm:$0xff]  ;;  %v6255_v37 = vld [vmem:[#allocation20 + $0x80] sm:$0xff] }
 0x7a0   : > { %2714 = vmatpush1.msra.mxu0 %v2609_v1  ;;  %2803 = vmatpush1.msra.mxu1 %v2611_v26  ;;  %7185 = vst [vmem:[#allocation55_spill] sm:$0xff] %v6251_v59  ;;  %7186 = vst [vmem:[#allocation49_spill] sm:$0xff] %v6255_v37  ;;  %v6257_v1 = vld [vmem:[#allocation20 + $0x90] sm:$0xff]  ;;  %v6261_v26 = vld [vmem:[#allocation20 + $0x68] sm:$0xff] }
 0x7a1   : > { %2715 = vmatprep.subr.mxu0 %v2606_v3  ;;  %2804 = vmatprep.subr.mxu1 %v2608_v62  ;;  %7187 = vst [vmem:[#allocation40_spill] sm:$0xff] %v6257_v1  ;;  %7188 = vst [vmem:[#allocation31_spill] sm:$0xff] %v6261_v26  ;;  %v6263_v3 = vld [vmem:[#allocation20 + $0x78] sm:$0xff]  ;;  %v6267_v62 = vld [vmem:[#allocation20 + $0x60] sm:$0xff] }
 0x7a2   : > { %2716 = vmatpush1.msra.mxu0 %v2605_v11  ;;  %2805 = vmatpush1.msra.mxu1 %v2607_v19  ;;  %7189 = vst [vmem:[#allocation27_spill] sm:$0xff] %v6263_v3  ;;  %7190 = vst [vmem:[#allocation30_spill] sm:$0xff] %v6267_v62  ;;  %v6269_v11 = vld [vmem:[#allocation20 + $0x70] sm:$0xff]  ;;  %v6273_v19 = vld [vmem:[#allocation20 + $0x48] sm:$0xff] }
 0x7a3   : > { %2717 = vmatprep.subr.mxu0 %v2602_v32  ;;  %2806 = vmatprep.subr.mxu1 %v2604_v4  ;;  %7191 = vst [vmem:[#allocation52_spill] sm:$0xff] %v6269_v11  ;;  %7192 = vst [vmem:[#allocation53_spill] sm:$0xff] %v6273_v19  ;;  %v6275_v32 = vld [vmem:[#allocation20 + $0x58] sm:$0xff]  ;;  %v6279_v4 = vld [vmem:[#allocation20 + $0x40] sm:$0xff] }
 0x7a4   : > { %2718 = vmatpush1.msra.mxu0 %v2601_v43  ;;  %2751 = vmatprep.mubr.f32.mxu0 %v7173_v30  ;;  %7193 = vst [vmem:[#allocation41_spill] sm:$0xff] %v6275_v32  ;;  %7194 = vst [vmem:[#allocation32_spill] sm:$0xff] %v6279_v4  ;;  %v6281_v43 = vld [vmem:[#allocation20 + $0x50] sm:$0xff] }
 0x7a5   : > { %2807 = vmatpush1.msra.mxu1 %v2603_v12  ;;  %2840 = vmatprep.mubr.f32.mxu1 %v7173_v30  ;;  %7195 = vst [vmem:[#allocation42_spill] sm:$0xff] %v6281_v43  ;;  %v6287_v12 = vld [vmem:[#allocation20 + $0x28] sm:$0xff] }
 0x7a6   : > { %2752 = vmatmul.mubr.f32.vlgmr.msra.gmra.mxu0 %v7179_v2  ;;  %2841 = vmatmul.mubr.f32.vlgmr.msra.gmra.mxu1 %v7179_v2  ;;  %7196 = vst [vmem:[#allocation33_spill] sm:$0xff] %v6287_v12  ;;  %v6289_v2 = vld [vmem:[#allocation20 + $0x38] sm:$0xff] }
 0x7a7   : > { %2757 = vmatprep.mubr.f32.mxu0 %v7173_v30  ;;  %2846 = vmatprep.mubr.f32.mxu1 %v7173_v30  ;;  %7197 = vst [vmem:[#allocation43_spill] sm:$0xff] %v6289_v2 }
 0x7a8   : > { %2933 = vmatprep.subr.mxu0 %v6121_v47  ;;  %3004 = vmatprep.subr.mxu1 %v6123_v10 }
 0x7a9   : > { %3005 = vmatpush1.msra.mxu1 %v6129_v15 }
 0x7aa   : > { %2758 = vmatmul.mubr.f32.gmra.mxu0 %v6023_v9  ;;  %2847 = vmatmul.mubr.f32.gmra.mxu1 %v6023_v9  ;;  %v6127_v9 = vld [vmem:[#allocation20 + $0x1e0] sm:$0xff] }
 0x7ab   : > { %2763 = vmatprep.mubr.f32.mxu0 %v7173_v30  ;;  %2852 = vmatprep.mubr.f32.mxu1 %v7173_v30 }
 0x7ac   : > { %2934 = vmatpush1.msra.mxu0 %v6127_v9  ;;  %3006 = vmatprep.subr.mxu1 %v6135_v49 }
 0x7ad   : > { %3007 = vmatpush1.msra.mxu1 %v6141_v8 }
 0x7ae   : > { %2764 = vmatmul.mubr.f32.gmra.mxu0 %v6103_v0  ;;  %2853 = vmatmul.mubr.f32.gmra.mxu1 %v6103_v0  ;;  %v6133_v0 = vld [vmem:[#allocation20 + $0x1c8] sm:$0xff] }
 0x7af   : > { %2769 = vmatprep.mubr.f32.mxu0 %v7173_v30  ;;  %2858 = vmatprep.mubr.f32.mxu1 %v7173_v30 }
 0x7b0   : > { %2935 = vmatprep.subr.mxu0 %v6133_v0  ;;  %3008 = vmatprep.subr.mxu1 %v6147_v17 }
 0x7b1   : > { %2936 = vmatpush1.msra.mxu0 %v6139_v6  ;;  %3009 = vmatpush1.msra.mxu1 %v6153_v20 }
 0x7b2   : > { %2937 = vmatprep.subr.mxu0 %v6145_v16  ;;  %3010 = vmatprep.subr.mxu1 %v6159_v23 }
 0x7b3   : > { %2938 = vmatpush1.msra.mxu0 %v6151_v18  ;;  %3011 = vmatpush1.msra.mxu1 %v6165_v27 }
 0x7b4   : > { %2939 = vmatprep.subr.mxu0 %v6157_v21  ;;  %3012 = vmatprep.subr.mxu1 %v6171_v31 }
 0x7b5   : > { %2940 = vmatpush1.msra.mxu0 %v6163_v25  ;;  %3013 = vmatpush1.msra.mxu1 %v6177_v35 }
 0x7b6   : > { %2941 = vmatprep.subr.mxu0 %v6169_v28  ;;  %3014 = vmatprep.subr.mxu1 %v6183_v38 }
 0x7b7   : > { %2942 = vmatpush1.msra.mxu0 %v6175_v33  ;;  %3015 = vmatpush1.msra.mxu1 %v6189_v40 }
 0x7b8   : > { %2943 = vmatprep.subr.mxu0 %v6181_v36  ;;  %3016 = vmatprep.subr.mxu1 %v6195_v42 }
 0x7b9   : > { %2944 = vmatpush1.msra.mxu0 %v6187_v39  ;;  %3017 = vmatpush1.msra.mxu1 %v6201_v46 }
 0x7ba   : > { %2945 = vmatprep.subr.mxu0 %v6193_v41  ;;  %3018 = vmatprep.subr.mxu1 %v6207_v50 }
 0x7bb   : > { %2946 = vmatpush1.msra.mxu0 %v6199_v44  ;;  %3019 = vmatpush1.msra.mxu1 %v6213_v54 }
 0x7bc   : > { %2947 = vmatprep.subr.mxu0 %v6205_v48  ;;  %3020 = vmatprep.subr.mxu1 %v6217_v58 }
 0x7bd   : > { %2948 = vmatpush1.msra.mxu0 %v6209_v52  ;;  %3021 = vmatpush1.msra.mxu1 %v6223_v63 }
 0x7be   : > { %2949 = vmatprep.subr.mxu0 %v6215_v56  ;;  %3022 = vmatprep.subr.mxu1 %v6229_v53 }
 0x7bf   : > { %2950 = vmatpush1.msra.mxu0 %v6221_v60  ;;  %3023 = vmatpush1.msra.mxu1 %v6233_v13 }
 0x7c0   : > { %2951 = vmatprep.subr.mxu0 %v6225_v14  ;;  %3024 = vmatprep.subr.mxu1 %v6239_v45 }
 0x7c1   : > { %2952 = vmatpush1.msra.mxu0 %v6231_v61  ;;  %3025 = vmatpush1.msra.mxu1 %v6245_v51 }
 0x7c2   : > { %2953 = vmatprep.subr.mxu0 %v6237_v22  ;;  %3026 = vmatprep.subr.mxu1 %v6251_v59 }
 0x7c3   : > { %2954 = vmatpush1.msra.mxu0 %v6243_v55  ;;  %3027 = vmatpush1.msra.mxu1 %v6257_v1  ;;  %v6291_v1 = vld [vmem:[#allocation20 + $0x20] sm:$0xff] }
 0x7c4   : > { %2955 = vmatprep.subr.mxu0 %v6249_v57  ;;  %3028 = vmatprep.subr.mxu1 %v6263_v3  ;;  %7198 = vst [vmem:[#allocation34_spill] sm:$0xff] %v6291_v1  ;;  %v6295_v3 = vld [vmem:[#allocation20 + $0x30] sm:$0xff]  ;;  %v7207_v57 = vld [vmem:[#allocation62_spill] sm:$0xff] }
 0x7c5   : > { %2956 = vmatpush1.msra.mxu0 %v6255_v37  ;;  %3029 = vmatpush1.msra.mxu1 %v6269_v11  ;;  %7199 = vst [vmem:[#allocation44_spill] sm:$0xff] %v6295_v3 }
 0x7c6   : > { %2957 = vmatprep.subr.mxu0 %v6261_v26  ;;  %3030 = vmatprep.subr.mxu1 %v6275_v32  ;;  %v6297_v26 = vld [vmem:[#allocation20 + $0x8] sm:$0xff]  ;;  %v6303_v32 = vld [vmem:[#allocation20] sm:$0xff] }
 0x7c7   : > { %2958 = vmatpush1.msra.mxu0 %v6267_v62  ;;  %3031 = vmatpush1.msra.mxu1 %v6281_v43  ;;  %7200 = vst [vmem:[#allocation35_spill] sm:$0xff] %v6297_v26  ;;  %v6299_v62 = vld [vmem:[#allocation20 + $0x18] sm:$0xff]  ;;  %7202 = vst [vmem:[#allocation36_spill] sm:$0xff] %v6303_v32 }
 0x7c8   : > { %2959 = vmatprep.subr.mxu0 %v6273_v19  ;;  %7201 = vst [vmem:[#allocation45_spill] sm:$0xff] %v6299_v62  ;;  %3032 = vmatprep.subr.mxu1 %v6289_v2  ;;  %v6305_v19 = vld [vmem:[#allocation20 + $0x10] sm:$0xff]  ;;  %v7204_v2 = vld [vmem:[#allocation63_spill] sm:$0xff] }
 0x7c9   : > { %2960 = vmatpush1.msra.mxu0 %v6279_v4  ;;  %7203 = vst [vmem:[#allocation46_spill] sm:$0xff] %v6305_v19  ;;  %3033 = vmatpush1.msra.mxu1 %v6295_v3 }
 0x7ca   : > { %2961 = vmatprep.subr.mxu0 %v6287_v12  ;;  %3034 = vmatprep.subr.mxu1 %v6299_v62  ;;  %v1750_v12 = vadd.f32 %v7204_v2, %v7174_v34  ;;  %v1839_v34 = vadd.f32 %v7207_v57, %v5935_v29  ;;  %v7209_v57 = vld [vmem:[#allocation54_spill] sm:$0xff] }
 0x7cb   : > { %2962 = vmatpush1.msra.mxu0 %v6291_v1  ;;  %3035 = vmatpush1.msra.mxu1 %v6305_v19  ;;  %v7205_v1 = vld [vmem:[#allocation65_spill] sm:$0xff] }
 0x7cc   : > { %2963 = vmatprep.subr.mxu0 %v6297_v26  ;;  %3175 = vmatprep.subr.mxu1 %v6123_v10  ;;  %v1752_v4 = vadd.f32 %v7205_v1, %v5920_v24 }
 0x7cd   : > { %2964 = vmatpush1.msra.mxu0 %v6303_v32 }
 0x7ce   : > { %3104 = vmatprep.subr.mxu0 %v6121_v47  ;;  %v7206_v47 = vld [vmem:[#allocation66_spill] sm:$0xff] }
 0x7cf   : > { %v1841_v59 = vadd.f32 %v7206_v47, %v7149_v7 }
 0x845   : > { %v2490_v43 = vpop.f32.mrf.mxu0  ;;  %v2561_v62 = vpop.f32.mrf.mxu1 }
 0x846   : > { %v2566_v3 = vadd.f32 %v2490_v43, %v1750_v12  ;;  %v2568_v2 = vadd.f32 %v2561_v62, %v1839_v34  ;;  %v7210_v62 = vld [vmem:[#allocation67_spill] sm:$0xff]  ;;  %v7212_v43 = vld [vmem:[#allocation49_spill] sm:$0xff]  ;;  %v7213_v12 = vld [vmem:[#allocation40_spill] sm:$0xff] }
 0x847   : > { %v2492_v11 = vpop.f32.mrf.mxu0  ;;  %v2563_v19 = vpop.f32.mrf.mxu1  ;;  %v7214_v34 = vld [vmem:[#allocation31_spill] sm:$0xff] }
 0x848   : > { %v4090_v26 = vmul.f32 -1.442695, %v2566_v3  ;;  %v2567_v37 = vadd.f32 %v2492_v11, %v1752_v4  ;;  %v2569_v10 = vadd.f32 %v2563_v19, %v1841_v59  ;;  %v7211_v19 = vld [vmem:[#allocation55_spill] sm:$0xff] }
 0x84a   : > { %4471 = vpow2.f32 %v4090_v26  ;;  %v4091_v32 = vmul.f32 -1.442695, %v2567_v37  ;;  %v4092_v51 = vmul.f32 -1.442695, %v2569_v10 }
 0x84c   : > { %4473 = vpow2.f32 %v4091_v32 }
 0x84d   : > { %4475 = vtanh.f32 %v2568_v2  ;;  %v7215_v2 = vld [vmem:[#allocation27_spill] sm:$0xff] }
 0x84e   : > { %4477 = vpow2.f32 %v4092_v51  ;;  %v2930_v51 = vld [vmem:[#allocation2 + $0x8] sm:$0xff] }
 0x857   : > { %v4472_v55 = vpop.eup %4471 }
 0x858   : > { %v2573_v24 = vadd.f32 1.0, %v4472_v55 }
 0x859   : > { %v4474_v1 = vpop.eup %4473 }
 0x85a   : > { %4479 = vrcp.f32 %v2573_v24  ;;  %v2579_v26 = vadd.f32 1.0, %v4474_v1  ;;  %v4476_v37 = vpop.eup %4475  ;;  %v7216_v24 = vld [vmem:[#allocation30_spill] sm:$0xff]  ;;  %v7217_v1 = vld [vmem:[#allocation52_spill] sm:$0xff] }
 0x85b   : > { %v4478_v3 = vpop.eup %4477 }
 0x85c   : > { %4481 = vrcp.f32 %v2579_v26  ;;  %v2586_v7 = vadd.f32 1.0, %v4478_v3  ;;  %v7218_v26 = vld [vmem:[#allocation53_spill] sm:$0xff]  ;;  %v7220_v3 = vld [vmem:[#allocation32_spill] sm:$0xff] }
 0x85e   : > { %4483 = vrcp.f32 %v2586_v7  ;;  %v7224_v7 = vld [vmem:[#allocation34_spill] sm:$0xff] }
 0x867   : > { %v4480_v11 = vpop.eup %4479 }
 0x868   : > { %v2590_v32 = vmul.f32 %v4480_v11, %v4476_v37  ;;  %v7219_v37 = vld [vmem:[#allocation41_spill] sm:$0xff]  ;;  %v7221_v11 = vld [vmem:[#allocation42_spill] sm:$0xff] }
 0x869   : > { %v4482_v4 = vpop.eup %4481 }
 0x86a   : > { %v2589_v47 = vmul.f32 %v4482_v4, %v6100_v5  ;;  %v7208_v5 = vld [vmem:[#allocation39_spill] sm:$0xff] }
 0x86b   : > { %v4484_v29 = vpop.eup %4483  ;;  %v7223_v4 = vld [vmem:[#allocation43_spill] sm:$0xff] }
 0x86c   : > { %v2591_v59 = vadd.f32 %v2590_v32, %v2589_v47  ;;  %v7222_v32 = vld [vmem:[#allocation33_spill] sm:$0xff]  ;;  %v7225_v47 = vld [vmem:[#allocation44_spill] sm:$0xff] }
 0x86e   : > { %4485 = vtanh.f32 %v2591_v59  ;;  %2596 = vst [vmem:[#allocation3] sm:$0xff] %v2591_v59  ;;  %v7226_v59 = vld [vmem:[#allocation35_spill] sm:$0xff] }
 0x87b   : > { %v4486_v10 = vpop.eup %4485 }
 0x87c   : > { %v2593_v55 = vmul.f32 %v4486_v10, %v4484_v29  ;;  %v7227_v29 = vld [vmem:[#allocation45_spill] sm:$0xff]  ;;  %v7228_v10 = vld [vmem:[#allocation36_spill] sm:$0xff] }
 0x87e   : > { %2595 = vst [vmem:[#allocation2] sm:$0xff] %v2593_v55  ;;  %2770 = vmatmul.mubr.f32.gmra.mxu0 %v2593_v55  ;;  %2859 = vmatmul.mubr.f32.gmra.mxu1 %v2593_v55  ;;  %v7229_v55 = vld [vmem:[#allocation46_spill] sm:$0xff] }
 0x87f   : > { %2997 = vmatprep.mubr.f32.mxu0 %v7173_v30  ;;  %3068 = vmatprep.mubr.f32.mxu1 %v7173_v30 }
 0x882   : > { %2998 = vmatmul.mubr.f32.vlgmr.msra.gmra.mxu0 %v2930_v51  ;;  %3069 = vmatmul.mubr.f32.vlgmr.msra.gmra.mxu1 %v2930_v51  ;;  %v7230_v51 = vld [vmem:[#allocation28_spill] sm:$0xff] }
 0x883   : > { %3105 = vmatpush1.msra.mxu0 %v6127_v9  ;;  %3176 = vmatpush1.msra.mxu1 %v6129_v15 }
 0x884   : > { %3106 = vmatprep.subr.mxu0 %v6133_v0  ;;  %3177 = vmatprep.subr.mxu1 %v6135_v49 }
 0x885   : > { %3107 = vmatpush1.msra.mxu0 %v6139_v6  ;;  %3178 = vmatpush1.msra.mxu1 %v6141_v8 }
 0x886   : > { %3108 = vmatprep.subr.mxu0 %v6145_v16  ;;  %3179 = vmatprep.subr.mxu1 %v6147_v17 }
 0x887   : > { %3109 = vmatpush1.msra.mxu0 %v6151_v18  ;;  %3180 = vmatpush1.msra.mxu1 %v6153_v20 }
 0x888   : > { %3110 = vmatprep.subr.mxu0 %v6157_v21  ;;  %3181 = vmatprep.subr.mxu1 %v6159_v23 }
 0x889   : > { %3111 = vmatpush1.msra.mxu0 %v6163_v25  ;;  %3182 = vmatpush1.msra.mxu1 %v6165_v27 }
 0x88a   : > { %3112 = vmatprep.subr.mxu0 %v6169_v28  ;;  %3183 = vmatprep.subr.mxu1 %v6171_v31 }
 0x88b   : > { %3113 = vmatpush1.msra.mxu0 %v6175_v33  ;;  %3184 = vmatpush1.msra.mxu1 %v6177_v35 }
 0x88c   : > { %3114 = vmatprep.subr.mxu0 %v6181_v36  ;;  %3185 = vmatprep.subr.mxu1 %v6183_v38 }
 0x88d   : > { %3115 = vmatpush1.msra.mxu0 %v6187_v39  ;;  %3186 = vmatpush1.msra.mxu1 %v6189_v40 }
 0x88e   : > { %3116 = vmatprep.subr.mxu0 %v6193_v41  ;;  %3187 = vmatprep.subr.mxu1 %v6195_v42 }
 0x88f   : > { %3117 = vmatpush1.msra.mxu0 %v6199_v44  ;;  %3188 = vmatpush1.msra.mxu1 %v6201_v46 }
 0x890   : > { %3118 = vmatprep.subr.mxu0 %v6205_v48  ;;  %3189 = vmatprep.subr.mxu1 %v6207_v50 }
 0x891   : > { %3119 = vmatpush1.msra.mxu0 %v6209_v52  ;;  %3190 = vmatpush1.msra.mxu1 %v6213_v54 }
 0x892   : > { %3120 = vmatprep.subr.mxu0 %v6215_v56  ;;  %3191 = vmatprep.subr.mxu1 %v6217_v58 }
 0x893   : > { %3121 = vmatpush1.msra.mxu0 %v6221_v60  ;;  %3192 = vmatpush1.msra.mxu1 %v6223_v63 }
 0x894   : > { %3122 = vmatprep.subr.mxu0 %v6225_v14  ;;  %3193 = vmatprep.subr.mxu1 %v6229_v53 }
 0x895   : > { %3123 = vmatpush1.msra.mxu0 %v6231_v61  ;;  %3194 = vmatpush1.msra.mxu1 %v6233_v13 }
 0x896   : > { %3124 = vmatprep.subr.mxu0 %v6237_v22  ;;  %3195 = vmatprep.subr.mxu1 %v6239_v45 }
 0x897   : > { %3125 = vmatpush1.msra.mxu0 %v7208_v5  ;;  %3196 = vmatpush1.msra.mxu1 %v7209_v57 }
 0x898   : > { %3126 = vmatprep.subr.mxu0 %v7210_v62  ;;  %3197 = vmatprep.subr.mxu1 %v7211_v19 }
 0x899   : > { %3127 = vmatpush1.msra.mxu0 %v7212_v43  ;;  %3198 = vmatpush1.msra.mxu1 %v7213_v12 }
 0x89a   : > { %3128 = vmatprep.subr.mxu0 %v7214_v34  ;;  %3199 = vmatprep.subr.mxu1 %v7215_v2 }
 0x89b   : > { %3129 = vmatpush1.msra.mxu0 %v7216_v24  ;;  %3200 = vmatpush1.msra.mxu1 %v7217_v1 }
 0x89c   : > { %3130 = vmatprep.subr.mxu0 %v7218_v26  ;;  %3201 = vmatprep.subr.mxu1 %v7219_v37 }
 0x89d   : > { %3131 = vmatpush1.msra.mxu0 %v7220_v3  ;;  %3202 = vmatpush1.msra.mxu1 %v7221_v11 }
 0x89e   : > { %3132 = vmatprep.subr.mxu0 %v7222_v32  ;;  %3203 = vmatprep.subr.mxu1 %v7223_v4  ;;  %v7231_v32 = vld [vmem:[#allocation29_spill] sm:$0xff]  ;;  %v2753_v4 = vpop.f32.mrf.mxu0 }
 0x89f   : > { %3133 = vmatpush1.msra.mxu0 %v7224_v7  ;;  %3204 = vmatpush1.msra.mxu1 %v7225_v47  ;;  %v2842_v7 = vpop.f32.mrf.mxu1 }
 0x8a0   : > { %3134 = vmatprep.subr.mxu0 %v7226_v59  ;;  %3205 = vmatprep.subr.mxu1 %v7227_v29  ;;  %v2755_v11 = vpop.f32.mrf.mxu0 }
 0x8a1   : > { %3135 = vmatpush1.msra.mxu0 %v7228_v10  ;;  %3168 = vmatprep.mubr.f32.mxu0 %v7173_v30  ;;  %v2844_v47 = vpop.f32.mrf.mxu1 }
 0x8a2   : > { %3206 = vmatpush1.msra.mxu1 %v7229_v55  ;;  %3239 = vmatprep.mubr.f32.mxu1 %v7173_v30  ;;  %v6392_v3 = vpop.f32.mrf.mxu0  ;;  %v7239_v30 = vld [vmem:[#allocation50_spill] sm:$0xff] }
 0x8a3   : > { %3275 = vmatprep.subr.mxu0 %v7230_v51  ;;  %3346 = vmatprep.subr.mxu1 %v7231_v32  ;;  %7232 = vst [vmem:[#allocation37_spill] sm:$0xff] %v6392_v3  ;;  %v6394_v59 = vpop.f32.mrf.mxu1  ;;  %v2665_v32 = vld [vmem:[%s6778_s9] sm:$0xf] }
 0x8a4   : > { %7233 = vst [vmem:[#allocation47_spill] sm:$0xff] %v6394_v59  ;;  %v6396_v29 = vpop.f32.mrf.mxu0  ;;  %v6410_v26 = vrot.slane %v2665_v32, %v7239_v30 }
 0x8a5   : > { %7234 = vst [vmem:[#allocation38_spill] sm:$0xff] %v6396_v29  ;;  %v6398_v10 = vpop.f32.mrf.mxu1  ;;  %v7243_v29 = vld [vmem:[#allocation51_spill] sm:$0xff] }
 0x8a6   : > { %7235 = vst [vmem:[#allocation48_spill] sm:$0xff] %v6398_v10  ;;  %v6400_v37 = vpop.f32.mrf.mxu0  ;;  %7240 = vst [vmem:[#allocation57_spill] sm:$0xff] %v6410_v26  ;;  %v6417_v1 = vrot.slane %v2665_v32, %v7243_v29  ;;  %v7247_v29 = vld [vmem:[#allocation59_spill] sm:$0xff] }
 0x8a7   : > { %7236 = vst [vmem:[#allocation56_spill] sm:$0xff] %v6400_v37  ;;  %v6402_v55 = vpop.f32.mrf.mxu1  ;;  %v6428_v19 = vrot.slane %v2665_v32, %v7247_v29  ;;  %v2932_v29 = vld [vmem:[#allocation3 + $0x10] sm:$0xff] }
 0x8a8   : > { %7237 = vst [vmem:[#allocation61_spill] sm:$0xff] %v6402_v55  ;;  %v6407_v51 = vpop.f32.mrf.mxu0  ;;  %v2754_v55 = vadd.f32 %v2753_v4, %v6410_v26  ;;  %v2756_v2 = vadd.f32 %v2755_v11, %v6417_v1  ;;  %v7249_v4 = vld [vmem:[#allocation58_spill] sm:$0xff] }
 0x8a9   : > { %7238 = vst [vmem:[#allocation64_spill] sm:$0xff] %v6407_v51  ;;  %v6412_v3 = vpop.f32.mrf.mxu1  ;;  %7248 = vst [vmem:[#allocation62_spill] sm:$0xff] %v6428_v19  ;;  %v6432_v26 = vrot.slane %v2665_v32, %v7249_v4 }
 0x8aa   : > { %7241 = vst [vmem:[#allocation60_spill] sm:$0xff] %v6412_v3 }
 0x93e   : > { %v6414_v59 = vpop.f32.mrf.mxu0  ;;  %v6419_v10 = vpop.f32.mrf.mxu1 }
 0x93f   : > { %7242 = vst [vmem:[#allocation68_spill] sm:$0xff] %v6414_v59  ;;  %7244 = vst [vmem:[#allocation63_spill] sm:$0xff] %v6419_v10 }
 0x940   : > { %v6421_v37 = vpop.f32.mrf.mxu0  ;;  %v6425_v51 = vpop.f32.mrf.mxu1 }
 0x941   : > { %7245 = vst [vmem:[#allocation65_spill] sm:$0xff] %v6421_v37  ;;  %7246 = vst [vmem:[#allocation66_spill] sm:$0xff] %v6425_v51  ;;  %v2845_v37 = vadd.f32 %v2844_v47, %v6428_v19  ;;  %v2843_v51 = vadd.f32 %v2842_v7, %v6432_v26 }
 0x942   : > { %v2999_v24 = vpop.f32.mrf.mxu0  ;;  %v3070_v59 = vpop.f32.mrf.mxu1 }
 0x943   : > { %v3075_v30 = vadd.f32 %v2999_v24, %v2754_v55 }
 0x944   : > { %v3001_v34 = vpop.f32.mrf.mxu0  ;;  %v3072_v10 = vpop.f32.mrf.mxu1 }
 0x945   : > { %v4093_v12 = vmul.f32 -1.442695, %v3075_v30  ;;  %v3076_v3 = vadd.f32 %v3001_v34, %v2756_v2  ;;  %v3078_v11 = vadd.f32 %v3072_v10, %v2845_v37  ;;  %v3077_v30 = vadd.f32 %v3070_v59, %v2843_v51 }
 0x947   : > { %4487 = vpow2.f32 %v4093_v12  ;;  %v4094_v43 = vmul.f32 -1.442695, %v3076_v3  ;;  %v4095_v24 = vmul.f32 -1.442695, %v3078_v11  ;;  %v7252_v11 = vld [vmem:[#allocation49_spill] sm:$0xff] }
 0x949   : > { %4489 = vpow2.f32 %v4094_v43 }
 0x94a   : > { %4491 = vpow2.f32 %v4095_v24  ;;  %v7253_v24 = vld [vmem:[#allocation40_spill] sm:$0xff] }
 0x954   : > { %v4488_v55 = vpop.eup %4487 }
 0x955   : > { %v3082_v34 = vadd.f32 1.0, %v4488_v55  ;;  %v7254_v55 = vld [vmem:[#allocation31_spill] sm:$0xff] }
 0x956   : > { %v4490_v12 = vpop.eup %4489 }
 0x957   : > { %4493 = vrcp.f32 %v3082_v34  ;;  %v3088_v2 = vadd.f32 1.0, %v4490_v12  ;;  %v4492_v43 = vpop.eup %4491  ;;  %v7256_v34 = vld [vmem:[#allocation30_spill] sm:$0xff]  ;;  %v7257_v12 = vld [vmem:[#allocation52_spill] sm:$0xff] }
 0x958   : > { %4495 = vtanh.f32 %v3077_v30  ;;  %v3095_v32 = vadd.f32 1.0, %v4492_v43  ;;  %v7255_v30 = vld [vmem:[#allocation27_spill] sm:$0xff]  ;;  %v7259_v43 = vld [vmem:[#allocation41_spill] sm:$0xff] }
 0x959   : > { %4497 = vrcp.f32 %v3088_v2  ;;  %v7258_v2 = vld [vmem:[#allocation53_spill] sm:$0xff] }
 0x95a   : > { %4499 = vrcp.f32 %v3095_v32  ;;  %v7263_v32 = vld [vmem:[#allocation43_spill] sm:$0xff] }
 0x964   : > { %v4494_v3 = vpop.eup %4493 }
 0x965   : > { %v4496_v47 = vpop.eup %4495 }
 0x966   : > { %v4498_v19 = vpop.eup %4497  ;;  %v3099_v4 = vmul.f32 %v4496_v47, %v4494_v3  ;;  %v7260_v3 = vld [vmem:[#allocation32_spill] sm:$0xff]  ;;  %v7262_v47 = vld [vmem:[#allocation33_spill] sm:$0xff] }
 0x967   : > { %v3098_v37 = vmul.f32 %v4498_v19, %v2932_v29  ;;  %v4500_v7 = vpop.eup %4499  ;;  %v7251_v19 = vld [vmem:[#allocation55_spill] sm:$0xff]  ;;  %v7261_v29 = vld [vmem:[#allocation42_spill] sm:$0xff] }
 0x969   : > { %v6435_v10 = vadd.f32 %v3099_v4, %v3098_v37  ;;  %v7264_v4 = vld [vmem:[#allocation34_spill] sm:$0xff]  ;;  %v7265_v37 = vld [vmem:[#allocation44_spill] sm:$0xff] }
 0x96b   : > { %4501 = vtanh.f32 %v6435_v10 }
 0x978   : > { %v4502_v59 = vpop.eup %4501 }
 0x979   : > { %v6438_v51 = vmul.f32 %v4502_v59, %v4500_v7  ;;  %v7266_v7 = vld [vmem:[#allocation35_spill] sm:$0xff]  ;;  %v7267_v59 = vld [vmem:[#allocation45_spill] sm:$0xff] }
 0x97b   : > { %7250 = vst [vmem:[#allocation39_spill] sm:$0xff] %v6438_v51  ;;  %3169 = vmatmul.mubr.f32.vlgmr.msra.gmra.mxu0 %v6438_v51  ;;  %3240 = vmatmul.mubr.f32.vlgmr.msra.gmra.mxu1 %v6438_v51  ;;  %v7268_v51 = vld [vmem:[#allocation36_spill] sm:$0xff] }
 0x97c   : > { %3276 = vmatpush1.msra.mxu0 %v6127_v9  ;;  %3347 = vmatpush1.msra.mxu1 %v6129_v15 }
 0x97d   : > { %3277 = vmatprep.subr.mxu0 %v6133_v0  ;;  %3348 = vmatprep.subr.mxu1 %v6135_v49 }
 0x97e   : > { %3278 = vmatpush1.msra.mxu0 %v6139_v6  ;;  %3349 = vmatpush1.msra.mxu1 %v6141_v8 }
 0x97f   : > { %3279 = vmatprep.subr.mxu0 %v6145_v16  ;;  %3350 = vmatprep.subr.mxu1 %v6147_v17 }
 0x980   : > { %3280 = vmatpush1.msra.mxu0 %v6151_v18  ;;  %3351 = vmatpush1.msra.mxu1 %v6153_v20 }
 0x981   : > { %3281 = vmatprep.subr.mxu0 %v6157_v21  ;;  %3352 = vmatprep.subr.mxu1 %v6159_v23 }
 0x982   : > { %3282 = vmatpush1.msra.mxu0 %v6163_v25  ;;  %3353 = vmatpush1.msra.mxu1 %v6165_v27 }
 0x983   : > { %3283 = vmatprep.subr.mxu0 %v6169_v28  ;;  %3354 = vmatprep.subr.mxu1 %v6171_v31 }
 0x984   : > { %3284 = vmatpush1.msra.mxu0 %v6175_v33  ;;  %3355 = vmatpush1.msra.mxu1 %v6177_v35 }
 0x985   : > { %3285 = vmatprep.subr.mxu0 %v6181_v36  ;;  %3356 = vmatprep.subr.mxu1 %v6183_v38 }
 0x986   : > { %3286 = vmatpush1.msra.mxu0 %v6187_v39  ;;  %3357 = vmatpush1.msra.mxu1 %v6189_v40 }
 0x987   : > { %3287 = vmatprep.subr.mxu0 %v6193_v41  ;;  %3358 = vmatprep.subr.mxu1 %v6195_v42 }
 0x988   : > { %3288 = vmatpush1.msra.mxu0 %v6199_v44  ;;  %3359 = vmatpush1.msra.mxu1 %v6201_v46 }
 0x989   : > { %3289 = vmatprep.subr.mxu0 %v6205_v48  ;;  %3360 = vmatprep.subr.mxu1 %v6207_v50 }
 0x98a   : > { %3290 = vmatpush1.msra.mxu0 %v6209_v52  ;;  %3361 = vmatpush1.msra.mxu1 %v6213_v54 }
 0x98b   : > { %3291 = vmatprep.subr.mxu0 %v6215_v56  ;;  %3362 = vmatprep.subr.mxu1 %v6217_v58 }
 0x98c   : > { %3292 = vmatpush1.msra.mxu0 %v6221_v60  ;;  %3363 = vmatpush1.msra.mxu1 %v6223_v63 }
 0x98d   : > { %3293 = vmatprep.subr.mxu0 %v6225_v14  ;;  %3364 = vmatprep.subr.mxu1 %v6229_v53 }
 0x98e   : > { %3294 = vmatpush1.msra.mxu0 %v6231_v61  ;;  %3365 = vmatpush1.msra.mxu1 %v6233_v13 }
 0x98f   : > { %3295 = vmatprep.subr.mxu0 %v6237_v22  ;;  %3366 = vmatprep.subr.mxu1 %v6239_v45 }
 0x990   : > { %3296 = vmatpush1.msra.mxu0 %v7208_v5  ;;  %3367 = vmatpush1.msra.mxu1 %v7209_v57 }
 0x991   : > { %3297 = vmatprep.subr.mxu0 %v7210_v62  ;;  %3368 = vmatprep.subr.mxu1 %v7251_v19  ;;  %v7278_v19 = vld [vmem:[#allocation47_spill] sm:$0xff] }
 0x992   : > { %3298 = vmatpush1.msra.mxu0 %v7252_v11  ;;  %3369 = vmatpush1.msra.mxu1 %v7253_v24  ;;  %v7276_v24 = vld [vmem:[#allocation62_spill] sm:$0xff] }
 0x993   : > { %3299 = vmatprep.subr.mxu0 %v7254_v55  ;;  %3370 = vmatprep.subr.mxu1 %v7255_v30 }
 0x994   : > { %3300 = vmatpush1.msra.mxu0 %v7256_v34  ;;  %3371 = vmatpush1.msra.mxu1 %v7257_v12 }
 0x995   : > { %3301 = vmatprep.subr.mxu0 %v7258_v2  ;;  %3372 = vmatprep.subr.mxu1 %v7259_v43  ;;  %v7269_v2 = vmov 0.0   ;;  %v7270_v43 = vld [vmem:[#allocation46_spill] sm:$0xff] }
 0x996   : > { %3302 = vmatpush1.msra.mxu0 %v7260_v3  ;;  %3373 = vmatpush1.msra.mxu1 %v7261_v29  ;;  %v7271_v29 = vld [vmem:[#allocation28_spill] sm:$0xff] }
 0x997   : > { %3303 = vmatprep.subr.mxu0 %v7262_v47  ;;  %3374 = vmatprep.subr.mxu1 %v7263_v32  ;;  %v7272_v47 = vld [vmem:[#allocation29_spill] sm:$0xff] }
 0x998   : > { %3304 = vmatpush1.msra.mxu0 %v7264_v4  ;;  %3375 = vmatpush1.msra.mxu1 %v7265_v37  ;;  %v7273_v32 = vld [vmem:[#allocation57_spill] sm:$0xff] }
 0x999   : > { %3305 = vmatprep.subr.mxu0 %v7266_v7  ;;  %3376 = vmatprep.subr.mxu1 %v7267_v59  ;;  %v7274_v4 = vld [vmem:[#allocation37_spill] sm:$0xff]  ;;  %v7275_v7 = vld [vmem:[#allocation38_spill] sm:$0xff] }
 0x99a   : > { %3306 = vmatpush1.msra.mxu0 %v7268_v51  ;;  %3339 = vmatprep.mubr.f32.mxu0 %v7269_v2  ;;  %v2760_v3 = vadd.f32 %v7274_v4, %v7273_v32  ;;  %v2762_v12 = vadd.f32 %v7275_v7, %v6417_v1  ;;  %v2849_v4 = vadd.f32 %v7278_v19, %v6432_v26 }
 0x99b   : > { %3377 = vmatpush1.msra.mxu1 %v7270_v43  ;;  %3410 = vmatprep.mubr.f32.mxu1 %v7269_v2 }
 0x99c   : > { %3446 = vmatprep.subr.mxu0 %v7271_v29  ;;  %3517 = vmatprep.subr.mxu1 %v7272_v47  ;;  %v7277_v29 = vld [vmem:[#allocation48_spill] sm:$0xff] }
 0x99d   : > { %v2851_v11 = vadd.f32 %v7277_v29, %v7276_v24 }
 0xa3b   : > { %v3170_v37 = vpop.f32.mrf.mxu0  ;;  %v3241_v55 = vpop.f32.mrf.mxu1 }
 0xa3c   : > { %v3246_v59 = vadd.f32 %v3170_v37, %v2760_v3  ;;  %v3248_v32 = vadd.f32 %v3241_v55, %v2849_v4 }
 0xa3d   : > { %v3172_v34 = vpop.f32.mrf.mxu0  ;;  %v3243_v2 = vpop.f32.mrf.mxu1 }
 0xa3e   : > { %v4096_v51 = vmul.f32 -1.442695, %v3246_v59  ;;  %v3247_v30 = vadd.f32 %v3172_v34, %v2762_v12  ;;  %v3249_v47 = vadd.f32 %v3243_v2, %v2851_v11 }
 0xa40   : > { %4503 = vpow2.f32 %v4096_v51  ;;  %v4097_v43 = vmul.f32 -1.442695, %v3247_v30  ;;  %v4098_v62 = vmul.f32 -1.442695, %v3249_v47 }
 0xa42   : > { %4505 = vpow2.f32 %v4097_v43 }
 0xa43   : > { %4507 = vtanh.f32 %v3248_v32 }
 0xa44   : > { %4509 = vpow2.f32 %v4098_v62 }
 0xa4d   : > { %v4504_v57 = vpop.eup %4503 }
 0xa4e   : > { %v3253_v7 = vadd.f32 1.0, %v4504_v57 }
 0xa4f   : > { %v4506_v3 = vpop.eup %4505 }
 0xa50   : > { %4511 = vrcp.f32 %v3253_v7  ;;  %v3259_v51 = vadd.f32 1.0, %v4506_v3  ;;  %v4508_v30 = vpop.eup %4507 }
 0xa51   : > { %v4510_v34 = vpop.eup %4509 }
 0xa52   : > { %4513 = vrcp.f32 %v3259_v51  ;;  %v3266_v59 = vadd.f32 1.0, %v4510_v34 }
 0xa54   : > { %4515 = vrcp.f32 %v3266_v59 }
 0xa5d   : > { %v4512_v12 = vpop.eup %4511 }
 0xa5e   : > { %v3270_v43 = vmul.f32 %v4512_v12, %v4508_v30 }
 0xa5f   : > { %v4514_v37 = vpop.eup %4513 }
 0xa60   : > { %v3269_v11 = vmul.f32 %v4514_v37, %v6435_v10 }
 0xa61   : > { %v4516_v57 = vpop.eup %4515 }
 0xa62   : > { %v6517_v2 = vadd.f32 %v3270_v43, %v3269_v11 }
 0xa64   : > { %4517 = vtanh.f32 %v6517_v2 }
 0xa71   : > { %v4518_v19 = vpop.eup %4517 }
 0xa72   : > { %v6520_v55 = vmul.f32 %v4518_v19, %v4516_v57  ;;  %v3637_v19 = vld [vmem:[%s6779_s10 + $0x70] sm:$0xff] }
 0xa74   : > { %3340 = vmatmul.mubr.f32.vlgmr.msra.gmra.mxu0 %v6520_v55  ;;  %3411 = vmatmul.mubr.f32.vlgmr.msra.gmra.mxu1 %v6520_v55 }
 0xa75   : > { %3447 = vmatpush1.msra.mxu0 %v6127_v9  ;;  %3518 = vmatpush1.msra.mxu1 %v6129_v15  ;;  %v7279_v9 = vld [vmem:[#allocation54_spill] sm:$0xff]  ;;  %v7280_v15 = vld [vmem:[#allocation67_spill] sm:$0xff] }
 0xa76   : > { %3448 = vmatprep.subr.mxu0 %v6133_v0  ;;  %3519 = vmatprep.subr.mxu1 %v6135_v49  ;;  %v7281_v0 = vld [vmem:[#allocation55_spill] sm:$0xff]  ;;  %v7282_v49 = vld [vmem:[#allocation49_spill] sm:$0xff] }
 0xa77   : > { %3449 = vmatpush1.msra.mxu0 %v6139_v6  ;;  %3520 = vmatpush1.msra.mxu1 %v6141_v8  ;;  %v7283_v6 = vld [vmem:[#allocation40_spill] sm:$0xff]  ;;  %v7284_v8 = vld [vmem:[#allocation31_spill] sm:$0xff] }
 0xa78   : > { %3450 = vmatprep.subr.mxu0 %v6145_v16  ;;  %3521 = vmatprep.subr.mxu1 %v6147_v17  ;;  %v7285_v16 = vld [vmem:[#allocation27_spill] sm:$0xff]  ;;  %v7286_v17 = vld [vmem:[#allocation30_spill] sm:$0xff] }
 0xa79   : > { %3451 = vmatpush1.msra.mxu0 %v6151_v18  ;;  %3522 = vmatpush1.msra.mxu1 %v6153_v20  ;;  %v7287_v18 = vld [vmem:[#allocation52_spill] sm:$0xff]  ;;  %v7288_v20 = vld [vmem:[#allocation53_spill] sm:$0xff] }
 0xa7a   : > { %3452 = vmatprep.subr.mxu0 %v6157_v21  ;;  %3523 = vmatprep.subr.mxu1 %v6159_v23  ;;  %v7289_v21 = vld [vmem:[#allocation41_spill] sm:$0xff]  ;;  %v7290_v23 = vld [vmem:[#allocation32_spill] sm:$0xff] }
 0xa7b   : > { %3453 = vmatpush1.msra.mxu0 %v6163_v25  ;;  %3524 = vmatpush1.msra.mxu1 %v6165_v27  ;;  %v7291_v25 = vld [vmem:[#allocation42_spill] sm:$0xff]  ;;  %v7292_v27 = vld [vmem:[#allocation33_spill] sm:$0xff] }
 0xa7c   : > { %3454 = vmatprep.subr.mxu0 %v6169_v28  ;;  %3525 = vmatprep.subr.mxu1 %v6171_v31  ;;  %v7293_v28 = vld [vmem:[#allocation43_spill] sm:$0xff]  ;;  %v7294_v31 = vld [vmem:[#allocation34_spill] sm:$0xff] }
 0xa7d   : > { %3455 = vmatpush1.msra.mxu0 %v6175_v33  ;;  %3526 = vmatpush1.msra.mxu1 %v6177_v35  ;;  %v7295_v33 = vld [vmem:[#allocation44_spill] sm:$0xff]  ;;  %v7296_v35 = vld [vmem:[#allocation35_spill] sm:$0xff] }
 0xa7e   : > { %3456 = vmatprep.subr.mxu0 %v6181_v36  ;;  %3527 = vmatprep.subr.mxu1 %v6183_v38  ;;  %v7297_v36 = vld [vmem:[#allocation45_spill] sm:$0xff]  ;;  %v7298_v38 = vld [vmem:[#allocation36_spill] sm:$0xff] }
 0xa7f   : > { %3457 = vmatpush1.msra.mxu0 %v6187_v39  ;;  %3528 = vmatpush1.msra.mxu1 %v6189_v40  ;;  %v7299_v39 = vmov 0.0   ;;  %v7300_v40 = vld [vmem:[#allocation46_spill] sm:$0xff] }
 0xa80   : > { %3458 = vmatprep.subr.mxu0 %v6193_v41  ;;  %3529 = vmatprep.subr.mxu1 %v6195_v42  ;;  %v3638_v41 = vld [vmem:[%s6779_s10 + $0x78] sm:$0xff]  ;;  %v7301_v42 = vld [vmem:[#allocation57_spill] sm:$0xff] }
 0xa81   : > { %3459 = vmatpush1.msra.mxu0 %v6199_v44  ;;  %3530 = vmatpush1.msra.mxu1 %v6201_v46  ;;  %v7302_v44 = vld [vmem:[#allocation56_spill] sm:$0xff] }
 0xa82   : > { %3460 = vmatprep.subr.mxu0 %v6205_v48  ;;  %3531 = vmatprep.subr.mxu1 %v6207_v50  ;;  %v2766_v46 = vadd.f32 %v7302_v44, %v7301_v42  ;;  %v7303_v50 = vld [vmem:[#allocation64_spill] sm:$0xff] }
 0xa83   : > { %3461 = vmatpush1.msra.mxu0 %v6209_v52  ;;  %3532 = vmatpush1.msra.mxu1 %v6213_v54  ;;  %v2768_v52 = vadd.f32 %v7303_v50, %v6417_v1  ;;  %v7309_v50 = vld [vmem:[#allocation66_spill] sm:$0xff] }
 0xa84   : > { %3462 = vmatprep.subr.mxu0 %v6215_v56  ;;  %3533 = vmatprep.subr.mxu1 %v6217_v58 }
 0xa85   : > { %3463 = vmatpush1.msra.mxu0 %v6221_v60  ;;  %3534 = vmatpush1.msra.mxu1 %v6223_v63 }
 0xa86   : > { %3464 = vmatprep.subr.mxu0 %v6225_v14  ;;  %3535 = vmatprep.subr.mxu1 %v6229_v53 }
 0xa87   : > { %3465 = vmatpush1.msra.mxu0 %v6231_v61  ;;  %3536 = vmatpush1.msra.mxu1 %v6233_v13  ;;  %v7304_v61 = vld [vmem:[#allocation60_spill] sm:$0xff] }
 0xa88   : > { %3466 = vmatprep.subr.mxu0 %v6237_v22  ;;  %3537 = vmatprep.subr.mxu1 %v6239_v45  ;;  %v2857_v13 = vadd.f32 %v7304_v61, %v7276_v24  ;;  %v7305_v45 = vld [vmem:[#allocation61_spill] sm:$0xff] }
 0xa89   : > { %3467 = vmatpush1.msra.mxu0 %v7208_v5  ;;  %3538 = vmatpush1.msra.mxu1 %v7279_v9  ;;  %v2855_v5 = vadd.f32 %v7305_v45, %v6432_v26  ;;  %v7306_v9 = vld [vmem:[#allocation39_spill] sm:$0xff] }
 0xa8a   : > { %3468 = vmatprep.subr.mxu0 %v7280_v15  ;;  %3539 = vmatprep.subr.mxu1 %v7281_v0  ;;  %v3635_v15 = vld [vmem:[%s6779_s10 + $0x60] sm:$0xff]  ;;  %v3634_v0 = vld [vmem:[%s6779_s10 + $0x58] sm:$0xff] }
 0xa8b   : > { %3469 = vmatpush1.msra.mxu0 %v7282_v49  ;;  %3540 = vmatpush1.msra.mxu1 %v7283_v6  ;;  %v3633_v49 = vld [vmem:[%s6779_s10 + $0x50] sm:$0xff]  ;;  %v3632_v6 = vld [vmem:[%s6779_s10 + $0x48] sm:$0xff] }
 0xa8c   : > { %3470 = vmatprep.subr.mxu0 %v7284_v8  ;;  %3541 = vmatprep.subr.mxu1 %v7285_v16  ;;  %v3631_v8 = vld [vmem:[%s6779_s10 + $0x40] sm:$0xff]  ;;  %v3630_v16 = vld [vmem:[%s6779_s10 + $0x38] sm:$0xff] }
 0xa8d   : > { %3471 = vmatpush1.msra.mxu0 %v7286_v17  ;;  %3542 = vmatpush1.msra.mxu1 %v7287_v18  ;;  %v3629_v17 = vld [vmem:[%s6779_s10 + $0x30] sm:$0xff]  ;;  %v3628_v18 = vld [vmem:[%s6779_s10 + $0x28] sm:$0xff] }
 0xa8e   : > { %3472 = vmatprep.subr.mxu0 %v7288_v20  ;;  %3543 = vmatprep.subr.mxu1 %v7289_v21  ;;  %v3627_v20 = vld [vmem:[%s6779_s10 + $0x20] sm:$0xff]  ;;  %v3626_v21 = vld [vmem:[%s6779_s10 + $0x18] sm:$0xff] }
 0xa8f   : > { %3473 = vmatpush1.msra.mxu0 %v7290_v23  ;;  %3544 = vmatpush1.msra.mxu1 %v7291_v25  ;;  %v3625_v23 = vld [vmem:[%s6779_s10 + $0x10] sm:$0xff]  ;;  %v3624_v25 = vld [vmem:[%s6779_s10 + $0x8] sm:$0xff] }
 0xa90   : > { %3474 = vmatprep.subr.mxu0 %v7292_v27  ;;  %3545 = vmatprep.subr.mxu1 %v7293_v28  ;;  %v3623_v27 = vld [vmem:[%s6779_s10] sm:$0xff] }
 0xa91   : > { %3475 = vmatpush1.msra.mxu0 %v7294_v31  ;;  %3546 = vmatpush1.msra.mxu1 %v7295_v33  ;;  %v7307_v28 = vld [vmem:[#allocation68_spill] sm:$0xff] }
 0xa92   : > { %3476 = vmatprep.subr.mxu0 %v7296_v35  ;;  %3547 = vmatprep.subr.mxu1 %v7297_v36  ;;  %v2772_v31 = vadd.f32 %v7307_v28, %v7301_v42  ;;  %v7308_v35 = vld [vmem:[#allocation65_spill] sm:$0xff] }
 0xa93   : > { %3477 = vmatpush1.msra.mxu0 %v7298_v38  ;;  %3510 = vmatprep.mubr.f32.mxu0 %v7299_v39  ;;  %v2774_v36 = vadd.f32 %v7308_v35, %v6417_v1 }
 0xa94   : > { %3548 = vmatpush1.msra.mxu1 %v7300_v40  ;;  %3581 = vmatprep.mubr.f32.mxu1 %v7299_v39 }
 0xa95   : > { %4150 = vmatprep.subr.mxu0 %v3638_v41 }
 0xb34   : > { %v3341_v48 = vpop.f32.mrf.mxu0  ;;  %v3412_v63 = vpop.f32.mrf.mxu1 }
 0xb35   : > { %v3417_v54 = vadd.f32 %v3341_v48, %v2766_v46  ;;  %v3419_v62 = vadd.f32 %v3412_v63, %v2855_v5 }
 0xb36   : > { %v3343_v56 = vpop.f32.mrf.mxu0  ;;  %v3414_v53 = vpop.f32.mrf.mxu1 }
 0xb37   : > { %v4099_v58 = vmul.f32 -1.442695, %v3417_v54  ;;  %v3418_v60 = vadd.f32 %v3343_v56, %v2768_v52  ;;  %v3420_v22 = vadd.f32 %v3414_v53, %v2857_v13  ;;  %v2863_v52 = vadd.f32 %v7309_v50, %v7276_v24  ;;  %v7310_v56 = vld [vmem:[#allocation63_spill] sm:$0xff] }
 0xb38   : > { %v2861_v42 = vadd.f32 %v7310_v56, %v6432_v26 }
 0xb39   : > { %4519 = vpow2.f32 %v4099_v58  ;;  %v4100_v14 = vmul.f32 -1.442695, %v3418_v60  ;;  %v4101_v10 = vmul.f32 -1.442695, %v3420_v22 }
 0xb3b   : > { %4521 = vpow2.f32 %v4100_v14 }
 0xb3c   : > { %4523 = vtanh.f32 %v3419_v62 }
 0xb3d   : > { %4525 = vpow2.f32 %v4101_v10 }
 0xb46   : > { %v4520_v32 = vpop.eup %4519 }
 0xb47   : > { %v3424_v29 = vadd.f32 1.0, %v4520_v32 }
 0xb48   : > { %v4522_v47 = vpop.eup %4521 }
 0xb49   : > { %4527 = vrcp.f32 %v3424_v29  ;;  %v3430_v4 = vadd.f32 1.0, %v4522_v47  ;;  %v4524_v7 = vpop.eup %4523  ;;  %v4854_v47 = vmov 0  }
 0xb4a   : > { %v4526_v3 = vpop.eup %4525  ;;  %4358 = vset.pattern.permute.xlu1 %v4854_v47  ;;  %4357 = vset.pattern.permute.xlu0 %v4854_v47 }
 0xb4b   : > { %4529 = vrcp.f32 %v3430_v4  ;;  %v3437_v12 = vadd.f32 1.0, %v4526_v3  ;;  %v4105_v3 = vld [vmem:[#allocation8] ss:$0 sm:$0xff] }
 0xb4d   : > { %4531 = vrcp.f32 %v3437_v12 }
 0xb56   : > { %v4528_v51 = vpop.eup %4527 }
 0xb57   : > { %v3441_v30 = vmul.f32 %v4528_v51, %v4524_v7 }
 0xb58   : > { %v4530_v34 = vpop.eup %4529 }
 0xb59   : > { %v3440_v43 = vmul.f32 %v4530_v34, %v6517_v2  ;;  %v3636_v2 = vld [vmem:[%s6779_s10 + $0x68] sm:$0xff] }
 0xb5a   : > { %v4532_v59 = vpop.eup %4531 }
 0xb5b   : > { %v6600_v37 = vadd.f32 %v3441_v30, %v3440_v43 }
 0xb5d   : > { %4533 = vtanh.f32 %v6600_v37 }
 0xb6a   : > { %v4534_v11 = vpop.eup %4533 }
 0xb6b   : > { %v6603_v57 = vmul.f32 %v4534_v11, %v4532_v59 }
 0xb6d   : > { %3511 = vmatmul.mubr.f32.vlgmr.msra.gmra.mxu0 %v6603_v57  ;;  %3582 = vmatmul.mubr.f32.vlgmr.msra.gmra.mxu1 %v6603_v57 }
 0xb6e   : > { %4151 = vmatpush3.msra.mxu0 %v3638_v41  ;;  %4182 = vmatprep.mubr.f32.mxu0 %v7306_v9 }
 0xb6f   : > { %4152 = vmatprep.subr.mxu0 %v3637_v19 }
 0xb70   : > { %4153 = vmatpush3.msra.mxu0 %v3637_v19 }
 0xb71   : > { %4154 = vmatprep.subr.mxu0 %v3636_v2 }
 0xb72   : > { %4155 = vmatpush3.msra.mxu0 %v3636_v2 }
 0xb73   : > { %4156 = vmatprep.subr.mxu0 %v3635_v15 }
 0xb74   : > { %4157 = vmatpush3.msra.mxu0 %v3635_v15 }
 0xb75   : > { %4158 = vmatprep.subr.mxu0 %v3634_v0 }
 0xb76   : > { %4159 = vmatpush3.msra.mxu0 %v3634_v0 }
 0xb77   : > { %4160 = vmatprep.subr.mxu0 %v3633_v49 }
 0xb78   : > { %4161 = vmatpush3.msra.mxu0 %v3633_v49  ;;  %v3731_v49 = vld [vmem:[#allocation5] sm:$0xff] }
 0xb79   : > { %4162 = vmatprep.subr.mxu0 %v3632_v6 }
 0xb7a   : > { %4163 = vmatpush3.msra.mxu0 %v3632_v6 }
 0xb7b   : > { %4164 = vmatprep.subr.mxu0 %v3631_v8 }
 0xb7c   : > { %4165 = vmatpush3.msra.mxu0 %v3631_v8 }
 0xb7d   : > { %4166 = vmatprep.subr.mxu0 %v3630_v16 }
 0xb7e   : > { %4167 = vmatpush3.msra.mxu0 %v3630_v16 }
 0xb7f   : > { %4168 = vmatprep.subr.mxu0 %v3629_v17 }
 0xb80   : > { %4169 = vmatpush3.msra.mxu0 %v3629_v17 }
 0xb81   : > { %4170 = vmatprep.subr.mxu0 %v3628_v18 }
 0xb82   : > { %4171 = vmatpush3.msra.mxu0 %v3628_v18 }
 0xb83   : > { %4172 = vmatprep.subr.mxu0 %v3627_v20 }
 0xb84   : > { %4173 = vmatpush3.msra.mxu0 %v3627_v20 }
 0xb85   : > { %4174 = vmatprep.subr.mxu0 %v3626_v21 }
 0xb86   : > { %4175 = vmatpush3.msra.mxu0 %v3626_v21 }
 0xb87   : > { %4176 = vmatprep.subr.mxu0 %v3625_v23 }
 0xb88   : > { %4177 = vmatpush3.msra.mxu0 %v3625_v23 }
 0xb89   : > { %4178 = vmatprep.subr.mxu0 %v3624_v25 }
 0xb8a   : > { %4179 = vmatpush3.msra.mxu0 %v3624_v25 }
 0xb8b   : > { %4180 = vmatprep.subr.mxu0 %v3623_v27 }
 0xb8c   : > { %4181 = vmatpush3.msra.mxu0 %v3623_v27 }
 0xb8d   : > { %4183 = vmatmul.mubr.f32.vlgmr.msra.gmra.mxu0 %v6520_v55 }
 0xb8e   : > { %4185 = vmatprep.mubr.f32.mxu0 %v6603_v57 }
 0xc2d   : > { %v3512_v33 = vpop.f32.mrf.mxu0  ;;  %v3583_v44 = vpop.f32.mrf.mxu1 }
 0xc2e   : > { %v3588_v38 = vadd.f32 %v3512_v33, %v2772_v31  ;;  %v3590_v58 = vadd.f32 %v3583_v44, %v2861_v42 }
 0xc2f   : > { %v3514_v39 = vpop.f32.mrf.mxu0  ;;  %v3585_v48 = vpop.f32.mrf.mxu1 }
 0xc30   : > { %v4102_v40 = vmul.f32 -1.442695, %v3588_v38  ;;  %v3589_v41 = vadd.f32 %v3514_v39, %v2774_v36  ;;  %v3591_v54 = vadd.f32 %v3585_v48, %v2863_v52 }
 0xc32   : > { %4535 = vpow2.f32 %v4102_v40  ;;  %v4103_v46 = vmul.f32 -1.442695, %v3589_v41  ;;  %v4104_v60 = vmul.f32 -1.442695, %v3591_v54 }
 0xc34   : > { %4537 = vpow2.f32 %v4103_v46  ;;  %v3756_v46 = vld [vmem:[#allocation6] sm:$0xff] }
 0xc35   : > { %4539 = vtanh.f32 %v3590_v58 }
 0xc36   : > { %4541 = vpow2.f32 %v4104_v60 }
 0xc3f   : > { %v4536_v63 = vpop.eup %4535 }
 0xc40   : > { %v3595_v1 = vadd.f32 1.0, %v4536_v63 }
 0xc41   : > { %v4538_v14 = vpop.eup %4537 }
 0xc42   : > { %4543 = vrcp.f32 %v3595_v1  ;;  %v3601_v53 = vadd.f32 1.0, %v4538_v14  ;;  %v4540_v61 = vpop.eup %4539 }
 0xc43   : > { %v4542_v13 = vpop.eup %4541 }
 0xc44   : > { %4545 = vrcp.f32 %v3601_v53  ;;  %v3608_v24 = vadd.f32 1.0, %v4542_v13 }
 0xc46   : > { %4547 = vrcp.f32 %v3608_v24 }
 0xc4d   : > { %v4184_v4 = vpop.f32.mrf.mxu0 }
 0xc4e   : > { %v3718_v34 = vadd.f32 %v4184_v4, %v4105_v3 }
 0xc4f   : > { %v4544_v22 = vpop.eup %4543  ;;  %v3712_v7 = vpop.f32.mrf.mxu0 }
 0xc50   : > { %v3612_v45 = vmul.f32 %v4544_v22, %v4540_v61  ;;  %v3713_v51 = vadd.f32 %v4105_v3, %v3712_v7  ;;  %v3734_v11 = vsel %vm3732_vm2, %v3718_v34, -inf  ;;  %v3767_v22 = vld [vmem:[#allocation7] sm:$0xff] }
 0xc51   : > { %v4546_v5 = vpop.eup %4545 }
 0xc52   : > { %v3611_v62 = vmul.f32 %v4546_v5, %v6600_v37  ;;  %v3733_v37 = vsel %vm3732_vm2, %v3713_v51, -inf }
 0xc53   : > { %v4548_v26 = vpop.eup %4547  ;;  %v3737_v15 = vmax.f32 %v3733_v37, %v3734_v11 }
 0xc54   : > { %v3613_v10 = vadd.f32 %v3612_v45, %v3611_v62 }
 0xc56   : > { %4549 = vtanh.f32 %v3613_v10  ;;  %3618 = vst [vmem:[#allocation3 + $0x10] sm:$0xff] %v3613_v10 }
 0xc63   : > { %v4550_v32 = vpop.eup %4549 }
 0xc64   : > { %v6664_v29 = vmul.f32 %v4550_v32, %v4548_v26 }
 0xc66   : > { %3617 = vst [vmem:[#allocation2 + $0x8] sm:$0xff] %v6664_v29  ;;  %4186 = vmatmul.mubr.f32.gmra.mxu0 %v6664_v29 }
 0xd26   : > { %v4187_v30 = vpop.f32.mrf.mxu0 }
 0xd27   : > { %v3728_v12 = vadd.f32 %v4187_v30, %v4105_v3 }
 0xd28   : > { %v3722_v43 = vpop.f32.mrf.mxu0 }
 0xd29   : > { %v3723_v59 = vadd.f32 %v4105_v3, %v3722_v43  ;;  %v3736_v19 = vsel %vm3732_vm2, %v3728_v12, -inf }
 0xd2b   : > { %v3735_v2 = vsel %vm3732_vm2, %v3723_v59, -inf }
 0xd2c   : > { %v3738_v0 = vmax.f32 %v3735_v2, %v3736_v19 }
 0xd2e   : > { %v3739_v6 = vmax.f32 %v3737_v15, %v3738_v0 }
 0xd30   : > { %v3740_v8 = vmax.f32 %v3731_v49, %v3739_v6 }
 0xd32   : > { %v3745_v16 = vsub.f32 %v3718_v34, %v3740_v8  ;;  %v3746_v17 = vsub.f32 %v3723_v59, %v3740_v8  ;;  %3803 = vst.msk [vmem:[#allocation5] sm:$0xff] %vm3732_vm2, %v3740_v8  ;;  %v3744_v18 = vsub.f32 %v3713_v51, %v3740_v8  ;;  %v3747_v20 = vsub.f32 %v3728_v12, %v3740_v8 }
 0xd33   : > { %v3741_v25 = vsub.f32 %v3731_v49, %v3740_v8 }
 0xd34   : > { %v3750_v21 = vmul.f32 1.442695, %v3745_v16  ;;  %v3752_v23 = vmul.f32 1.442695, %v3746_v17  ;;  %v3748_v27 = vmul.f32 1.442695, %v3744_v18 }
 0xd35   : > { %v3754_v28 = vmul.f32 1.442695, %v3747_v20  ;;  %v3742_v31 = vmul.f32 1.442695, %v3741_v25 }
 0xd36   : > { %4551 = vpow2.f32 %v3750_v21 }
 0xd37   : > { %4553 = vpow2.f32 %v3752_v23 }
 0xd38   : > { %4555 = vpow2.f32 %v3748_v27 }
 0xd39   : > { %4557 = vpow2.f32 %v3754_v28 }
 0xd3a   : > { %4559 = vpow2.f32 %v3742_v31 }
 0xd43   : > { %v4552_v33 = vpop.eup %4551 }
 0xd44   : > { %v4554_v35 = vpop.eup %4553  ;;  %v3759_v36 = vsel %vm3732_vm2, %v4552_v33, 0.0 }
 0xd45   : > { %3786 = vperm.xlu1 %4358, %v4554_v35   ;;  %v4556_v38 = vpop.eup %4555  ;;  %v3761_v48 = vsel %vm3732_vm2, %v4554_v35, 0.0 }
 0xd46   : > { %3776 = vperm.xlu0 %4357, %v4556_v38   ;;  %v3758_v39 = vsel %vm3732_vm2, %v4556_v38, 0.0  ;;  %v4558_v40 = vpop.eup %4557 }
 0xd47   : > { %v3760_v41 = vadd.f32 %v3759_v36, %v3758_v39  ;;  %v4560_v44 = vpop.eup %4559  ;;  %v3763_v52 = vsel %vm3732_vm2, %v4558_v40, 0.0 }
 0xd48   : > { %v3757_v54 = vmul.f32 %v4560_v44, %v3756_v46 }
 0xd49   : > { %3791 = vperm.xlu1 %4358, %v4558_v40   ;;  %v3762_v50 = vadd.f32 %v3761_v48, %v3760_v41 }
 0xd4a   : > { %3781 = vperm.xlu0 %4357, %v4552_v33  }
 0xd4b   : > { %v3764_v56 = vadd.f32 %v3763_v52, %v3762_v50 }
 0xd4d   : > { %v3765_v42 = vadd.f32 %v3764_v56, %v3757_v54 }
 0xd4e   : > { %3770 = vperm.xlu0 %4357, %v4560_v44  }
 0xd4f   : > { %3766 = vst.msk [vmem:[#allocation6] sm:$0xff] %vm3732_vm2, %v3765_v42 }
 0xdc0   : > { %v3787_v58 = vpop.permute.xlu1 %3786 }
 0xdc1   : > { %v3777_v60 = vpop.permute.xlu0 %3776  ;;  %v3796_v61 = vmul.f32 %v3787_v58, %v6603_v57 }
 0xdc2   : > { %v3794_v1 = vmul.f32 %v3777_v60, %v7306_v9 }
 0xdc4   : > { %v3792_v53 = vpop.permute.xlu1 %3791 }
 0xdc5   : > { %v3782_v63 = vpop.permute.xlu0 %3781  ;;  %v3797_v5 = vmul.f32 %v3792_v53, %v6664_v29 }
 0xdc6   : > { %v3795_v14 = vmul.f32 %v3782_v63, %v6520_v55 }
 0xdc8   : > { %v3798_v13 = vadd.f32 %v3795_v14, %v3794_v1 }
 0xdc9   : > { %v3771_v45 = vpop.permute.xlu0 %3770 }
 0xdca   : > { %v3799_v24 = vadd.f32 %v3798_v13, %v3796_v61  ;;  %v3773_v10 = vmul.f32 %v3771_v45, %v3767_v22 }
 0xdcc   : > { %v3800_v62 = vadd.f32 %v3799_v24, %v3797_v5  ;;  %3807 = sbr.rel (%p4106_p1) target bundleno = 3875 (0xf23), region = 112 }
 0xdce   : > { %v3801_v26 = vadd.f32 %v3800_v62, %v3773_v10 }
 0xdd0   : > { %3802 = vst [vmem:[#allocation7] sm:$0xff] %v3801_v26 }
 0xdd1   : > { %v3809_v32 = vld [vmem:[#allocation6] sm:$0xff]  ;;  %v4855_v9 = vmov 0   ;;  %v4856_v57 = vmov 0.0   ;;  %v3831_v29 = vld [vmem:[%s7311_s27 + $0x70] sm:$0xff]  ;;  %v3830_v47 = vld [vmem:[%s7311_s27 + $0x68] sm:$0xff]  ;;  %vm4857_vm3 = vmmov 0  }
 0xdd2   : > { %v3832_v55 = vld [vmem:[%s7311_s27 + $0x78] sm:$0xff]  ;;  %4561 = vset.pattern.permute.xlu0 %v4855_v9  ;;  %4188 = vmatprep.subr.mxu0 %v4856_v57  ;;  %v3829_v4 = vld [vmem:[%s7311_s27 + $0x60] sm:$0xff]  ;;  %v3827_v3 = vld [vmem:[%s7311_s27 + $0x50] sm:$0xff] }
 0xdd3   : > { %3812 = vperm.xlu0 %4561, %v3809_v32   ;;  %4189 = vmatpush3.msra.mxu0 %v3832_v55  ;;  %v3828_v7 = vld [vmem:[%s7311_s27 + $0x58] sm:$0xff]  ;;  %v3826_v51 = vld [vmem:[%s7311_s27 + $0x48] sm:$0xff]  ;;  %v3825_v30 = vld [vmem:[%s7311_s27 + $0x40] sm:$0xff] }
 0xdd4   : > { %4190 = vmatprep.subr.mxu0 %v4856_v57  ;;  %4220 = vmatprep.mubr.msk.f32.mxu0 %vm4857_vm3, %v4856_v57  ;;  %v3824_v34 = vld [vmem:[%s7311_s27 + $0x38] sm:$0xff]  ;;  %v3823_v12 = vld [vmem:[%s7311_s27 + $0x30] sm:$0xff]  ;;  %v3822_v43 = vld [vmem:[%s7311_s27 + $0x28] sm:$0xff] }
 0xdd5   : > { %4191 = vmatpush3.msra.mxu0 %v3831_v29  ;;  %v3821_v37 = vld [vmem:[%s7311_s27 + $0x20] sm:$0xff]  ;;  %v3820_v59 = vld [vmem:[%s7311_s27 + $0x18] sm:$0xff]  ;;  %v3819_v11 = vld [vmem:[%s7311_s27 + $0x10] sm:$0xff] }
 0xdd6   : > { %4192 = vmatprep.subr.mxu0 %v4856_v57  ;;  %v3818_v19 = vld [vmem:[%s7311_s27 + $0x8] sm:$0xff]  ;;  %v3817_v2 = vld [vmem:[%s7311_s27] sm:$0xff] }
 0xdd7   : > { %4193 = vmatpush3.msra.mxu0 %v3830_v47  ;;  %v3808_v0 = vld [vmem:[#allocation7] sm:$0xff] }
 0xdd8   : > { %4194 = vmatprep.subr.mxu0 %v4856_v57  ;;  %v4107_v8 = vld [vmem:[%s7312_s22] ss:$0 sm:$0xff] }
 0xdd9   : > { %4195 = vmatpush3.msra.mxu0 %v3829_v4 }
 0xdda   : > { %4196 = vmatprep.subr.mxu0 %v4856_v57 }
 0xddb   : > { %4197 = vmatpush3.msra.mxu0 %v3828_v7 }
 0xddc   : > { %4198 = vmatprep.subr.mxu0 %v4856_v57 }
 0xddd   : > { %4199 = vmatpush3.msra.mxu0 %v3827_v3 }
 0xdde   : > { %4200 = vmatprep.subr.mxu0 %v4856_v57 }
 0xddf   : > { %4201 = vmatpush3.msra.mxu0 %v3826_v51 }
 0xde0   : > { %4202 = vmatprep.subr.mxu0 %v4856_v57 }
 0xde1   : > { %4203 = vmatpush3.msra.mxu0 %v3825_v30 }
 0xde2   : > { %4204 = vmatprep.subr.mxu0 %v4856_v57 }
 0xde3   : > { %4205 = vmatpush3.msra.mxu0 %v3824_v34 }
 0xde4   : > { %4206 = vmatprep.subr.mxu0 %v4856_v57 }
 0xde5   : > { %4207 = vmatpush3.msra.mxu0 %v3823_v12 }
 0xde6   : > { %4208 = vmatprep.subr.mxu0 %v4856_v57 }
 0xde7   : > { %4209 = vmatpush3.msra.mxu0 %v3822_v43 }
 0xde8   : > { %4210 = vmatprep.subr.mxu0 %v4856_v57 }
 0xde9   : > { %4211 = vmatpush3.msra.mxu0 %v3821_v37 }
 0xdea   : > { %4212 = vmatprep.subr.mxu0 %v4856_v57 }
 0xdeb   : > { %4213 = vmatpush3.msra.mxu0 %v3820_v59 }
 0xdec   : > { %4214 = vmatprep.subr.mxu0 %v4856_v57 }
 0xded   : > { %4215 = vmatpush3.msra.mxu0 %v3819_v11 }
 0xdee   : > { %4216 = vmatprep.subr.mxu0 %v4856_v57 }
 0xdef   : > { %4217 = vmatpush3.msra.mxu0 %v3818_v19 }
 0xdf0   : > { %4218 = vmatprep.subr.mxu0 %v4856_v57 }
 0xdf1   : > { %4219 = vmatpush3.msra.mxu0 %v3817_v2 }
 0xe4e   : > { %v3813_v15 = vpop.permute.xlu0 %3812 }
 0xe4f   : > { %4562 = vrcp.f32 %v3813_v15 }
 0xe5c   : > { %v4563_v49 = vpop.eup %4562 }
 0xe5d   : > { %v3816_v6 = vmul.f32 %v4563_v49, %v3808_v0 }
 0xe5f   : > { %4221 = vmatmul.mubr.f32.vlgmr.msra.gmra.mxu0 %v3816_v6 }
 0xf1f   : > { %v3906_v16 = vpop.f32.mrf.mxu0 }
 0xf20   : > { %v3907_v17 = vadd.f32 %v4107_v8, %v3906_v16 }
 0xf21   : > { %v4222_v18 = vpop.f32.mrf.mxu0 }
 0xf22   : > { %3910 = vst [vmem:[#allocation21] sm:$0xff] %v3907_v17 }
 0xf23 PF: > { %s7313_s13 = sadd.s32 4294967295, %s4838_s20   ;;  %s4858_s26 = smov [#allocation21]  }
 0xf24   : > { %p6736_p12 = scmp.eq.s32.totalorder %s7313_s13, 1  ;;  %s3920_s30 = sshll.u32 %s4858_s26, 4  ;;  %s3921_s30 = int_to_ptr.vmem [resolvable:$true] %s3920_s30 }
 0xf25   : > { %s4748_s15 = scalar_lea.vmem %s3921_s30, 128  ;;  %p4755_p4 = scmp.lt.s32.totalorder %s3921_s30, %s3921_s30 }
 0xf26   : > { %p4749_p13 = scmp.ne.s32.totalorder %s3921_s30, %s4748_s15  ;;  %p4756_p7 = scmp.lt.s32.totalorder %s4748_s15, %s4748_s15 }
 0xf28   : > { %p4750_p5 = pnand %p4749_p13, %p6736_p12  ;;  %p4757_p8 = por %p4756_p7, %p4755_p4 }
 0xf2a   : > { %p4751_p2 = pneg %p4750_p5 }
 0xf2c   : > { %p4758_p6 = pnand %p4757_p8, %p4751_p2 }
 0xf2e   : > { %4761 = shalt.err (!%p4758_p6)
}
 0xf2f   : > { %s7315_s1 = sld [smem:[#allocation75_spill]] }
 0xf35   : > { %4250 = dma.vmem_to_hbm [thread:$0]  (%p6736_p12), %s3921_s30, 128, %s7315_s1, [#allocation11]  }
 0xf36   : > { %4813 = dma.done.wait (%p6736_p12), [#allocation11], 128  }
 0xf37   : > { %4815 = vsyncadd (%p6736_p12), [#allocation11], 4294967168 }
 0xf38 PF: > { %s33_s20 = sadd.s32 1, %s4838_s20   ;;  %s7316_s15 = smov %s4822_s16 }
 0xf39   : > { %p30_p9 = scmp.ge.s32.totalorder %s33_s20, 4   ;;  %s7317_s16 = smov %s4826_s17 }
 0xf3a   : > { %s7318_s17 = smov %s5078_s12  ;;  %s7319_s18 = smov %s4834_s19 }
 0xf3b   : > { %s7320_s19 = smov %s7322_s25  ;;  %32 = sbr.rel (!%p30_p9) target bundleno = 16 (0x10), region = 150 }
 0xf40   :  { %3933 = vsyncpa [#allocation10], 1 }
 0xf41   :  { %3935 = vsyncpa [#allocation10 + $0x1], 1 }
 0xf42   :  { %3936 = vsyncpa [#allocation13], 1 }
 0xf43   :  { %3937 = vsyncpa [#allocation16], 1 }
 0xf44   :  { %3938 = vsyncpa [#allocation19], 1 }
 0xf45   :  { %3939 = vsyncpa [#allocation11], 1 }
 0xf46   :  { %3941 = vsyncpa [#allocation11 + $0x1], 1 }

</bundles_post_ra>
